<compile_context>
chip_gen: v7x
topology: tpu7x:2x2x1
jax: 0.10.0
libtpu: 0.0.40
codegen_flags: <defaults>
</compile_context>

<pallas_src>
import functools

import jax
import jax.numpy as jnp
from jax.experimental import pallas as pl
from jax.experimental.pallas import tpu as pltpu

LANE = 128
VMEM_LIMIT = 32 * 1024 * 1024  # conservative: within v7x's 64 MiB physical


def _round_up(x, m):
    return ((x + m - 1) // m) * m


def _pick_tiles(m):
    """Return (tile, padded_M).

    M <= 512: one full-extent lane-dense tile (padded to >=128, no grid split).
    M  > 512: biggest tile in {2048,1024,512} that keeps >= 2 grid steps, so
              the "parallel" grid axis can shard across v7x's two TensorCores.
    """
    mp = _round_up(m, LANE)
    if mp <= 512:
        return mp, mp
    for tile in (2048, 1024, 512):
        if mp >= 2 * tile and mp % tile == 0:
            return tile, mp
    return 512, _round_up(mp, 512)


# ----------------------------- Pallas kernels ------------------------------ #

def _conv_kernel(p_ref, w_ref, b_ref, o_ref, *, act):
    # (Cout, K) @ (K, TM): M on the lane axis -> dense vector stores.
    # Operands live in VMEM as bf16; cast to f32 for the dot (interpret-mode
    # DotThunk has no bf16xbf16->f32).  Bias + SiLU stay in f32 (v5e has no
    # bf16 VPU/EUP).
    acc = jnp.dot(w_ref[...].astype(jnp.float32),
                  p_ref[...].astype(jnp.float32),
                  preferred_element_type=jnp.float32)
    acc = acc + b_ref[...]
    if act:                                   # SiLU: x * sigmoid(x)
        acc = acc * jax.nn.sigmoid(acc)
    o_ref[...] = acc.astype(o_ref.dtype)      # bf16 feature writeback


def _head_kernel(d_ref, w1_ref, b1_ref, w2_ref, b2_ref, o_ref, *, shifts, mout):
    # Fused per-scale detect head with IN-KERNEL im2col:
    #   d_ref holds the whole flat zero-padded diff map (Cin, Min) in bf16.
    #   The 3x3 stride-1 conv is 9 static shifted slices accumulated in f32,
    #   then bias + SiLU, then the 1x1 conv -- hidden activation never leaves
    #   VMEM and the diff map is DMA'd exactly once (no 9x patch expansion).
    nh = b1_ref.shape[0]
    acc = jnp.zeros((nh, mout), jnp.float32)
    for t, s in enumerate(shifts):            # static 9-tap unroll
        xt = d_ref[:, s:s + mout].astype(jnp.float32)       # (Cin, Mout)
        wt = w1_ref[t].astype(jnp.float32)                   # (nh, Cin)
        acc = acc + jnp.dot(wt, xt, preferred_element_type=jnp.float32)
    h = acc + b1_ref[...]
    h = h * jax.nn.sigmoid(h)
    o = jnp.dot(w2_ref[...].astype(jnp.float32), h,
                preferred_element_type=jnp.float32)
    o_ref[...] = (o + b2_ref[...]).astype(o_ref.dtype)


# ----------------------------- Pallas wrappers ------------------------------ #

def _conv_matmul(cols, w_t, b, *, act, out_dtype):
    """act(w_t @ cols + b): cols (Kpad, M) bf16, w_t (N, Kpad) bf16 -> (N, M)."""
    K, M = cols.shape
    N = w_t.shape[0]
    tm, mp = _pick_tiles(M)
    if mp != M:
        cols = jnp.pad(cols, ((0, 0), (0, mp - M)))
    out = pl.pallas_call(
        functools.partial(_conv_kernel, act=act),
        out_shape=jax.ShapeDtypeStruct((N, mp), out_dtype),
        grid=(mp // tm,),
        in_specs=[
            pl.BlockSpec((K, tm), lambda i: (0, i)),   # patch columns
            pl.BlockSpec((N, K), lambda i: (0, 0)),    # full weight resident
            pl.BlockSpec((N, 1), lambda i: (0, 0)),    # bias
        ],
        out_specs=pl.BlockSpec((N, tm), lambda i: (0, i)),
        compiler_params=pltpu.CompilerParams(
            dimension_semantics=("parallel",),
            vmem_limit_bytes=VMEM_LIMIT),
    )(cols, w_t, b)
    return out[:, :M]


def _head_forward_scale(diff_cf, w1, b1, w2t, b2):
    """Fused head for one scale.  diff_cf: (Cin, B, H, W) bf16 -> (B, no, H*W)."""
    C, B, H, W = diff_cf.shape
    Hp, Wp = H + 2, W + 2
    dpad = jnp.pad(diff_cf, ((0, 0), (0, 0), (1, 1), (1, 1)))
    mgrid = B * Hp * Wp                              # flat padded-grid size
    mout = _round_up(mgrid, LANE)                    # lane-dense output width
    max_shift = 2 * Wp + 2
    min_len = _round_up(mout + max_shift, LANE)      # room for all 9 tap slices
    flat = dpad.reshape(C, mgrid)
    flat = jnp.pad(flat, ((0, 0), (0, min_len - mgrid)))
    shifts = tuple(ki * Wp + kj for ki in range(3) for kj in range(3))
    nh = w1.shape[1]
    no = w2t.shape[0]

    out = pl.pallas_call(
        functools.partial(_head_kernel, shifts=shifts, mout=mout),
        out_shape=jax.ShapeDtypeStruct((no, mout), jnp.float32),
        grid=(1,),
        in_specs=[
            pl.BlockSpec((C, min_len), lambda i: (0, 0)),   # flat padded diff
            pl.BlockSpec((9, nh, C), lambda i: (0, 0, 0)),  # 3x3 weight, per tap
            pl.BlockSpec((nh, 1), lambda i: (0, 0)),
            pl.BlockSpec((no, nh), lambda i: (0, 0)),       # 1x1 weight
            pl.BlockSpec((no, 1), lambda i: (0, 0)),
        ],
        out_specs=pl.BlockSpec((no, mout), lambda i: (0, 0)),
        compiler_params=pltpu.CompilerParams(vmem_limit_bytes=VMEM_LIMIT),
    )(flat, w1, b1, w2t, b2)

    # Keep only valid grid positions, then (no, B, H*W) -> (B, no, H*W).
    o = out[:, :mgrid].reshape(no, B, Hp, Wp)[:, :, :H, :W]
    return o.reshape(no, B, H * W).transpose(1, 0, 2)


# ------------------------------- conv glue --------------------------------- #

def _im2col_cf(x, k, stride, pad, k_pad):
    """x: (C, B, H, W) channel-first -> (Kpad, B*Ho*Wo) transposed patches."""
    C, B, H, W = x.shape
    xp = jnp.pad(x, ((0, 0), (0, 0), (pad, pad), (pad, pad)))
    Ho = (H + 2 * pad - k) // stride + 1
    Wo = (W + 2 * pad - k) // stride + 1
    taps = []
    for i in range(k):
        for j in range(k):
            t = xp[:, :, i:i + stride * Ho:stride, j:j + stride * Wo:stride]
            taps.append(t.reshape(C, B * Ho * Wo))
    cols = jnp.concatenate(taps, axis=0)
    if k_pad > cols.shape[0]:
        cols = jnp.pad(cols, ((0, k_pad - cols.shape[0]), (0, 0)))
    return cols, (B, Ho, Wo)


def conv2d_cf(x_cf, wt, b, *, stride=2, pad=1, act=True, out_dtype=jnp.bfloat16):
    """x_cf: (Cin, B, H, W) bf16; wt: (Cout, Kpad) bf16 -> (Cout, B, Ho, Wo)."""
    cout, kpad = wt.shape
    cols, (bsz, ho, wo) = _im2col_cf(x_cf, 3, stride, pad, kpad)
    out = _conv_matmul(cols, wt, b, act=act, out_dtype=out_dtype)
    return out.reshape(cout, bsz, ho, wo)


# ----------------------------- parameter init ------------------------------ #

def _packed_conv(key, k, cin, cout):
    """Pre-packed conv params: (Cout, Kpad) bf16 weight, (Cout, 1) f32 bias."""
    kw, kb = jax.random.split(key)
    fan_in = k * k * cin
    w = jax.random.normal(kw, (k, k, cin, cout), jnp.float32) * (2.0 / fan_in) ** 0.5
    b = jax.random.normal(kb, (cout,), jnp.float32) * 0.01
    k_raw = k * k * cin
    k_pad = _round_up(k_raw, 16)                 # bf16 sublane-tile alignment
    wt = w.reshape(k_raw, cout).T                # (Cout, K), matches im2col order
    wt = jnp.pad(wt, ((0, 0), (0, k_pad - k_raw))).astype(jnp.bfloat16)
    return wt, b.reshape(cout, 1)


def _packed_head(key, cin, hidden, out_ch):
    k1, k2, k3, k4 = jax.random.split(key, 4)
    w1 = jax.random.normal(k1, (3, 3, cin, hidden), jnp.float32) * (2.0 / (9 * cin)) ** 0.5
    b1 = jax.random.normal(k2, (hidden,), jnp.float32) * 0.01
    w2 = jax.random.normal(k3, (1, 1, hidden, out_ch), jnp.float32) * (2.0 / hidden) ** 0.5
    b2 = jax.random.normal(k4, (out_ch,), jnp.float32) * 0.01
    # Per-tap layout (9, hidden, cin): tap index t = ki*3 + kj matches the
    # in-kernel shift order ki*Wp + kj.
    w1p = jnp.transpose(w1, (0, 1, 3, 2)).reshape(9, hidden, cin).astype(jnp.bfloat16)
    w2p = w2.reshape(hidden, out_ch).T.astype(jnp.bfloat16)
    return (w1p, b1.reshape(hidden, 1)), (w2p, b2.reshape(out_ch, 1))


def init_refnet_params(key, nc=8, in_ch=3):
    keys = jax.random.split(key, 8)
    chs = [in_ch, 8, 16, 32, 64, 64]            # stem, c2, p3, p4, p5 channels
    backbone = [_packed_conv(keys[i], 3, chs[i], chs[i + 1]) for i in range(5)]
    hidden = 32
    out_ch = nc + 4                             # box(4) + class scores(nc)
    head = [_packed_head(keys[5 + s], c, hidden, out_ch)
            for s, c in enumerate((chs[3], chs[4], chs[5]))]
    return {"backbone": backbone, "head": head}


# -------------------------------- forward ---------------------------------- #

def backbone_forward(bparams, x_cf):
    """x_cf (C, B, H, W) bf16 -> (p3, p4, p5) channel-first at strides 8/16/32."""
    feats = []
    h = x_cf
    for i, (wt, b) in enumerate(bparams):
        h = conv2d_cf(h, wt, b, stride=2, pad=1, act=True)
        if i >= 2:
            feats.append(h)
    return tuple(feats)


@jax.jit
def refnet_forward(params, x_nchw, xref_nchw):
    batch = x_nchw.shape[0]
    # Single batched backbone pass over [x; x_ref] (channel-first, bf16).
    x_all = jnp.concatenate([x_nchw, xref_nchw], axis=0).astype(jnp.bfloat16)
    x_all = jnp.transpose(x_all, (1, 0, 2, 3))            # (C, 2B, H, W)
    feats_all = backbone_forward(params["backbone"], x_all)

    outs = []
    for ((w1, b1), (w2, b2)), f in zip(params["head"], feats_all):
        # Pre-diff on the explicit batch axis BEFORE any patch extraction:
        # halves the head's (9x-expanded) input bytes and avoids the fragile
        # flat-column split of the previous version.
        diff = f[:, :batch] - f[:, batch:]                 # (C, B, H, W) bf16
        outs.append(_head_forward_scale(diff, w1, b1, w2, b2))
    return jnp.concatenate(outs, axis=2)                   # (B, 4+nc, anchors)


# ---------------------------------- main ------------------------------------ #

if __name__ == "__main__":
    key = jax.random.PRNGKey(0)
    kp, kx, kr = jax.random.split(key, 3)

    nc = 8
    params = init_refnet_params(kp, nc=nc, in_ch=3)

    # Small deterministic inputs: batch=2, 3-channel 64x64 images (NCHW).
    x = jax.random.normal(kx, (2, 3, 64, 64), jnp.float32)
    x_ref = jax.random.normal(kr, (2, 3, 64, 64), jnp.float32)

    y = refnet_forward(params, x, x_ref)
    y = jax.block_until_ready(y)

    total_anchors = 8 * 8 + 4 * 4 + 2 * 2      # P3 + P4 + P5 cells
    assert y.shape == (2, nc + 4, total_anchors), y.shape
    assert bool(jnp.all(jnp.isfinite(y)))
    print("KERNEL_OK")
</pallas_src>

<mosaic_0001>
module attributes {stable_mosaic.version = 11 : i64} {
  func.func @_conv_kernel(%arg0: i32, %arg1: memref<32x2048xbf16, #tpu.memory_space<vmem>>, %arg2: memref<8x32xbf16, #tpu.memory_space<vmem>>, %arg3: memref<8x1xf32, #tpu.memory_space<vmem>>, %arg4: memref<8x2048xbf16, #tpu.memory_space<vmem>>) attributes {dimension_semantics = [#tpu.dimension_semantics<parallel>], iteration_bounds = array<i64: 2>, scalar_prefetch = 0 : i64, scratch_operands = 0 : i64, tpu.core_type = #tpu.core_type<tc>, window_params = [{transform_indices = @transform_0, window_bounds = array<i64: 32, 2048>}, {pipeline_mode = #tpu.pipeline_mode<synchronous>, transform_indices = @transform_1, window_bounds = array<i64: 8, 32>}, {pipeline_mode = #tpu.pipeline_mode<synchronous>, transform_indices = @transform_2, window_bounds = array<i64: 8, 1>}, {transform_indices = @transform_3, window_bounds = array<i64: 8, 2048>}]} {
    %c0 = arith.constant 0 : index
    %c0_0 = arith.constant 0 : index
    %0 = vector.load %arg2[%c0, %c0_0] : memref<8x32xbf16, #tpu.memory_space<vmem>>, vector<8x32xbf16>
    %1 = arith.extf %0 : vector<8x32xbf16> to vector<8x32xf32>
    %c0_1 = arith.constant 0 : index
    %c0_2 = arith.constant 0 : index
    %2 = vector.load %arg1[%c0_1, %c0_2] : memref<32x2048xbf16, #tpu.memory_space<vmem>>, vector<32x2048xbf16>
    %3 = arith.extf %2 : vector<32x2048xbf16> to vector<32x2048xf32>
    %cst = arith.constant dense<0.000000e+00> : vector<8x2048xf32>
    %4 = tpu.matmul %1, %3, %cst {dimension_numbers = #tpu.dot_dimension_numbers<[1], [0], [0], [1], [0, 0, 1, 1], [], []>} : vector<8x32xf32>, vector<32x2048xf32>, vector<8x2048xf32> -> vector<8x2048xf32>
    %c0_3 = arith.constant 0 : index
    %c0_4 = arith.constant 0 : index
    %5 = vector.load %arg3[%c0_3, %c0_4] : memref<8x1xf32, #tpu.memory_space<vmem>>, vector<8x1xf32>
    %6 = vector.broadcast %5 : vector<8x1xf32> to vector<8x2048xf32>
    %7 = arith.addf %4, %6 : vector<8x2048xf32>
    %8 = arith.negf %7 : vector<8x2048xf32>
    %9 = math.exp %8 : vector<8x2048xf32>
    %cst_5 = arith.constant 1.000000e+00 : f32
    %10 = vector.broadcast %cst_5 : f32 to vector<8x2048xf32>
    %11 = arith.addf %10, %9 : vector<8x2048xf32>
    %12 = arith.divf %10, %11 : vector<8x2048xf32>
    %13 = arith.mulf %7, %12 : vector<8x2048xf32>
    %14 = arith.truncf %13 : vector<8x2048xf32> to vector<8x2048xbf16>
    %c0_6 = arith.constant 0 : index
    %c0_7 = arith.constant 0 : index
    %15 = vector.load %arg4[%c0_6, %c0_7] : memref<8x2048xbf16, #tpu.memory_space<vmem>>, vector<8x2048xbf16>
    tpu.vector_store %arg4[%c0_6, %c0_7], %14 {strides = array<i32>} : memref<8x2048xbf16, #tpu.memory_space<vmem>>, vector<8x2048xbf16>,
    return
  }
  func.func @transform_0(%arg0: i32) -> (i32, i32) {
    %c0_i32 = arith.constant 0 : i32
    %c0_i32_0 = arith.constant 0 : i32
    return %c0_i32, %arg0 : i32, i32
  }
  func.func @transform_1(%arg0: i32) -> (i32, i32) {
    %c0_i32 = arith.constant 0 : i32
    %c0_i32_0 = arith.constant 0 : i32
    %c0_i32_1 = arith.constant 0 : i32
    return %c0_i32, %c0_i32_0 : i32, i32
  }
  func.func @transform_2(%arg0: i32) -> (i32, i32) {
    %c0_i32 = arith.constant 0 : i32
    %c0_i32_0 = arith.constant 0 : i32
    %c0_i32_1 = arith.constant 0 : i32
    return %c0_i32, %c0_i32_0 : i32, i32
  }
  func.func @transform_3(%arg0: i32) -> (i32, i32) {
    %c0_i32 = arith.constant 0 : i32
    %c0_i32_0 = arith.constant 0 : i32
    return %c0_i32, %arg0 : i32, i32
  }
}

module attributes {stable_mosaic.version = 11 : i64} {
  func.func @_conv_kernel(%arg0: i32, %arg1: memref<80x512xbf16, #tpu.memory_space<vmem>>, %arg2: memref<16x80xbf16, #tpu.memory_space<vmem>>, %arg3: memref<16x1xf32, #tpu.memory_space<vmem>>, %arg4: memref<16x512xbf16, #tpu.memory_space<vmem>>) attributes {dimension_semantics = [#tpu.dimension_semantics<parallel>], iteration_bounds = array<i64: 2>, scalar_prefetch = 0 : i64, scratch_operands = 0 : i64, tpu.core_type = #tpu.core_type<tc>, window_params = [{transform_indices = @transform_0, window_bounds = array<i64: 80, 512>}, {pipeline_mode = #tpu.pipeline_mode<synchronous>, transform_indices = @transform_1, window_bounds = array<i64: 16, 80>}, {pipeline_mode = #tpu.pipeline_mode<synchronous>, transform_indices = @transform_2, window_bounds = array<i64: 16, 1>}, {transform_indices = @transform_3, window_bounds = array<i64: 16, 512>}]} {
    %c0 = arith.constant 0 : index
    %c0_0 = arith.constant 0 : index
    %0 = vector.load %arg2[%c0, %c0_0] : memref<16x80xbf16, #tpu.memory_space<vmem>>, vector<16x80xbf16>
    %1 = arith.extf %0 : vector<16x80xbf16> to vector<16x80xf32>
    %c0_1 = arith.constant 0 : index
    %c0_2 = arith.constant 0 : index
    %2 = vector.load %arg1[%c0_1, %c0_2] : memref<80x512xbf16, #tpu.memory_space<vmem>>, vector<80x512xbf16>
    %3 = arith.extf %2 : vector<80x512xbf16> to vector<80x512xf32>
    %cst = arith.constant dense<0.000000e+00> : vector<16x512xf32>
    %4 = tpu.matmul %1, %3, %cst {dimension_numbers = #tpu.dot_dimension_numbers<[1], [0], [0], [1], [0, 0, 1, 1], [], []>} : vector<16x80xf32>, vector<80x512xf32>, vector<16x512xf32> -> vector<16x512xf32>
    %c0_3 = arith.constant 0 : index
    %c0_4 = arith.constant 0 : index
    %5 = vector.load %arg3[%c0_3, %c0_4] : memref<16x1xf32, #tpu.memory_space<vmem>>, vector<16x1xf32>
    %6 = vector.broadcast %5 : vector<16x1xf32> to vector<16x512xf32>
    %7 = arith.addf %4, %6 : vector<16x512xf32>
    %8 = arith.negf %7 : vector<16x512xf32>
    %9 = math.exp %8 : vector<16x512xf32>
    %cst_5 = arith.constant 1.000000e+00 : f32
    %10 = vector.broadcast %cst_5 : f32 to vector<16x512xf32>
    %11 = arith.addf %10, %9 : vector<16x512xf32>
    %12 = arith.divf %10, %11 : vector<16x512xf32>
    %13 = arith.mulf %7, %12 : vector<16x512xf32>
    %14 = arith.truncf %13 : vector<16x512xf32> to vector<16x512xbf16>
    %c0_6 = arith.constant 0 : index
    %c0_7 = arith.constant 0 : index
    %15 = vector.load %arg4[%c0_6, %c0_7] : memref<16x512xbf16, #tpu.memory_space<vmem>>, vector<16x512xbf16>
    tpu.vector_store %arg4[%c0_6, %c0_7], %14 {strides = array<i32>} : memref<16x512xbf16, #tpu.memory_space<vmem>>, vector<16x512xbf16>,
    return
  }
  func.func @transform_0(%arg0: i32) -> (i32, i32) {
    %c0_i32 = arith.constant 0 : i32
    %c0_i32_0 = arith.constant 0 : i32
    return %c0_i32, %arg0 : i32, i32
  }
  func.func @transform_1(%arg0: i32) -> (i32, i32) {
    %c0_i32 = arith.constant 0 : i32
    %c0_i32_0 = arith.constant 0 : i32
    %c0_i32_1 = arith.constant 0 : i32
    return %c0_i32, %c0_i32_0 : i32, i32
  }
  func.func @transform_2(%arg0: i32) -> (i32, i32) {
    %c0_i32 = arith.constant 0 : i32
    %c0_i32_0 = arith.constant 0 : i32
    %c0_i32_1 = arith.constant 0 : i32
    return %c0_i32, %c0_i32_0 : i32, i32
  }
  func.func @transform_3(%arg0: i32) -> (i32, i32) {
    %c0_i32 = arith.constant 0 : i32
    %c0_i32_0 = arith.constant 0 : i32
    return %c0_i32, %arg0 : i32, i32
  }
}

module attributes {stable_mosaic.version = 11 : i64} {
  func.func @_conv_kernel(%arg0: i32, %arg1: memref<144x256xbf16, #tpu.memory_space<vmem>>, %arg2: memref<32x144xbf16, #tpu.memory_space<vmem>>, %arg3: memref<32x1xf32, #tpu.memory_space<vmem>>, %arg4: memref<32x256xbf16, #tpu.memory_space<vmem>>) attributes {dimension_semantics = [#tpu.dimension_semantics<parallel>], iteration_bounds = array<i64: 1>, scalar_prefetch = 0 : i64, scratch_operands = 0 : i64, tpu.core_type = #tpu.core_type<tc>, window_params = [{transform_indices = @transform_0, window_bounds = array<i64: 144, 256>}, {pipeline_mode = #tpu.pipeline_mode<synchronous>, transform_indices = @transform_1, window_bounds = array<i64: 32, 144>}, {pipeline_mode = #tpu.pipeline_mode<synchronous>, transform_indices = @transform_2, window_bounds = array<i64: 32, 1>}, {transform_indices = @transform_3, window_bounds = array<i64: 32, 256>}]} {
    %c0 = arith.constant 0 : index
    %c0_0 = arith.constant 0 : index
    %0 = vector.load %arg2[%c0, %c0_0] : memref<32x144xbf16, #tpu.memory_space<vmem>>, vector<32x144xbf16>
    %1 = arith.extf %0 : vector<32x144xbf16> to vector<32x144xf32>
    %c0_1 = arith.constant 0 : index
    %c0_2 = arith.constant 0 : index
    %2 = vector.load %arg1[%c0_1, %c0_2] : memref<144x256xbf16, #tpu.memory_space<vmem>>, vector<144x256xbf16>
    %3 = arith.extf %2 : vector<144x256xbf16> to vector<144x256xf32>
    %cst = arith.constant dense<0.000000e+00> : vector<32x256xf32>
    %4 = tpu.matmul %1, %3, %cst {dimension_numbers = #tpu.dot_dimension_numbers<[1], [0], [0], [1], [0, 0, 1, 1], [], []>} : vector<32x144xf32>, vector<144x256xf32>, vector<32x256xf32> -> vector<32x256xf32>
    %c0_3 = arith.constant 0 : index
    %c0_4 = arith.constant 0 : index
    %5 = vector.load %arg3[%c0_3, %c0_4] : memref<32x1xf32, #tpu.memory_space<vmem>>, vector<32x1xf32>
    %6 = vector.broadcast %5 : vector<32x1xf32> to vector<32x256xf32>
    %7 = arith.addf %4, %6 : vector<32x256xf32>
    %8 = arith.negf %7 : vector<32x256xf32>
    %9 = math.exp %8 : vector<32x256xf32>
    %cst_5 = arith.constant 1.000000e+00 : f32
    %10 = vector.broadcast %cst_5 : f32 to vector<32x256xf32>
    %11 = arith.addf %10, %9 : vector<32x256xf32>
    %12 = arith.divf %10, %11 : vector<32x256xf32>
    %13 = arith.mulf %7, %12 : vector<32x256xf32>
    %14 = arith.truncf %13 : vector<32x256xf32> to vector<32x256xbf16>
    %c0_6 = arith.constant 0 : index
    %c0_7 = arith.constant 0 : index
    %15 = vector.load %arg4[%c0_6, %c0_7] : memref<32x256xbf16, #tpu.memory_space<vmem>>, vector<32x256xbf16>
    tpu.vector_store %arg4[%c0_6, %c0_7], %14 {strides = array<i32>} : memref<32x256xbf16, #tpu.memory_space<vmem>>, vector<32x256xbf16>,
    return
  }
  func.func @transform_0(%arg0: i32) -> (i32, i32) {
    %c0_i32 = arith.constant 0 : i32
    %c0_i32_0 = arith.constant 0 : i32
    return %c0_i32, %arg0 : i32, i32
  }
  func.func @transform_1(%arg0: i32) -> (i32, i32) {
    %c0_i32 = arith.constant 0 : i32
    %c0_i32_0 = arith.constant 0 : i32
    %c0_i32_1 = arith.constant 0 : i32
    return %c0_i32, %c0_i32_0 : i32, i32
  }
  func.func @transform_2(%arg0: i32) -> (i32, i32) {
    %c0_i32 = arith.constant 0 : i32
    %c0_i32_0 = arith.constant 0 : i32
    %c0_i32_1 = arith.constant 0 : i32
    return %c0_i32, %c0_i32_0 : i32, i32
  }
  func.func @transform_3(%arg0: i32) -> (i32, i32) {
    %c0_i32 = arith.constant 0 : i32
    %c0_i32_0 = arith.constant 0 : i32
    return %c0_i32, %arg0 : i32, i32
  }
}

module attributes {stable_mosaic.version = 11 : i64} {
  func.func @_conv_kernel(%arg0: i32, %arg1: memref<288x128xbf16, #tpu.memory_space<vmem>>, %arg2: memref<64x288xbf16, #tpu.memory_space<vmem>>, %arg3: memref<64x1xf32, #tpu.memory_space<vmem>>, %arg4: memref<64x128xbf16, #tpu.memory_space<vmem>>) attributes {dimension_semantics = [#tpu.dimension_semantics<parallel>], iteration_bounds = array<i64: 1>, scalar_prefetch = 0 : i64, scratch_operands = 0 : i64, tpu.core_type = #tpu.core_type<tc>, window_params = [{transform_indices = @transform_0, window_bounds = array<i64: 288, 128>}, {pipeline_mode = #tpu.pipeline_mode<synchronous>, transform_indices = @transform_1, window_bounds = array<i64: 64, 288>}, {pipeline_mode = #tpu.pipeline_mode<synchronous>, transform_indices = @transform_2, window_bounds = array<i64: 64, 1>}, {transform_indices = @transform_3, window_bounds = array<i64: 64, 128>}]} {
    %c0 = arith.constant 0 : index
    %c0_0 = arith.constant 0 : index
    %0 = vector.load %arg2[%c0, %c0_0] : memref<64x288xbf16, #tpu.memory_space<vmem>>, vector<64x288xbf16>
    %1 = arith.extf %0 : vector<64x288xbf16> to vector<64x288xf32>
    %c0_1 = arith.constant 0 : index
    %c0_2 = arith.constant 0 : index
    %2 = vector.load %arg1[%c0_1, %c0_2] : memref<288x128xbf16, #tpu.memory_space<vmem>>, vector<288x128xbf16>
    %3 = arith.extf %2 : vector<288x128xbf16> to vector<288x128xf32>
    %cst = arith.constant dense<0.000000e+00> : vector<64x128xf32>
    %4 = tpu.matmul %1, %3, %cst {dimension_numbers = #tpu.dot_dimension_numbers<[1], [0], [0], [1], [0, 0, 1, 1], [], []>} : vector<64x288xf32>, vector<288x128xf32>, vector<64x128xf32> -> vector<64x128xf32>
    %c0_3 = arith.constant 0 : index
    %c0_4 = arith.constant 0 : index
    %5 = vector.load %arg3[%c0_3, %c0_4] : memref<64x1xf32, #tpu.memory_space<vmem>>, vector<64x1xf32>
    %6 = vector.broadcast %5 : vector<64x1xf32> to vector<64x128xf32>
    %7 = arith.addf %4, %6 : vector<64x128xf32>
    %8 = arith.negf %7 : vector<64x128xf32>
    %9 = math.exp %8 : vector<64x128xf32>
    %cst_5 = arith.constant 1.000000e+00 : f32
    %10 = vector.broadcast %cst_5 : f32 to vector<64x128xf32>
    %11 = arith.addf %10, %9 : vector<64x128xf32>
    %12 = arith.divf %10, %11 : vector<64x128xf32>
    %13 = arith.mulf %7, %12 : vector<64x128xf32>
    %14 = arith.truncf %13 : vector<64x128xf32> to vector<64x128xbf16>
    %c0_6 = arith.constant 0 : index
    %c0_7 = arith.constant 0 : index
    %15 = vector.load %arg4[%c0_6, %c0_7] : memref<64x128xbf16, #tpu.memory_space<vmem>>, vector<64x128xbf16>
    tpu.vector_store %arg4[%c0_6, %c0_7], %14 {strides = array<i32>} : memref<64x128xbf16, #tpu.memory_space<vmem>>, vector<64x128xbf16>,
    return
  }
  func.func @transform_0(%arg0: i32) -> (i32, i32) {
    %c0_i32 = arith.constant 0 : i32
    %c0_i32_0 = arith.constant 0 : i32
    return %c0_i32, %arg0 : i32, i32
  }
  func.func @transform_1(%arg0: i32) -> (i32, i32) {
    %c0_i32 = arith.constant 0 : i32
    %c0_i32_0 = arith.constant 0 : i32
    %c0_i32_1 = arith.constant 0 : i32
    return %c0_i32, %c0_i32_0 : i32, i32
  }
  func.func @transform_2(%arg0: i32) -> (i32, i32) {
    %c0_i32 = arith.constant 0 : i32
    %c0_i32_0 = arith.constant 0 : i32
    %c0_i32_1 = arith.constant 0 : i32
    return %c0_i32, %c0_i32_0 : i32, i32
  }
  func.func @transform_3(%arg0: i32) -> (i32, i32) {
    %c0_i32 = arith.constant 0 : i32
    %c0_i32_0 = arith.constant 0 : i32
    return %c0_i32, %arg0 : i32, i32
  }
}

module attributes {stable_mosaic.version = 11 : i64} {
  func.func @_conv_kernel(%arg0: i32, %arg1: memref<576x128xbf16, #tpu.memory_space<vmem>>, %arg2: memref<64x576xbf16, #tpu.memory_space<vmem>>, %arg3: memref<64x1xf32, #tpu.memory_space<vmem>>, %arg4: memref<64x128xbf16, #tpu.memory_space<vmem>>) attributes {dimension_semantics = [#tpu.dimension_semantics<parallel>], iteration_bounds = array<i64: 1>, scalar_prefetch = 0 : i64, scratch_operands = 0 : i64, tpu.core_type = #tpu.core_type<tc>, window_params = [{transform_indices = @transform_0, window_bounds = array<i64: 576, 128>}, {pipeline_mode = #tpu.pipeline_mode<synchronous>, transform_indices = @transform_1, window_bounds = array<i64: 64, 576>}, {pipeline_mode = #tpu.pipeline_mode<synchronous>, transform_indices = @transform_2, window_bounds = array<i64: 64, 1>}, {transform_indices = @transform_3, window_bounds = array<i64: 64, 128>}]} {
    %c0 = arith.constant 0 : index
    %c0_0 = arith.constant 0 : index
    %0 = vector.load %arg2[%c0, %c0_0] : memref<64x576xbf16, #tpu.memory_space<vmem>>, vector<64x576xbf16>
    %1 = arith.extf %0 : vector<64x576xbf16> to vector<64x576xf32>
    %c0_1 = arith.constant 0 : index
    %c0_2 = arith.constant 0 : index
    %2 = vector.load %arg1[%c0_1, %c0_2] : memref<576x128xbf16, #tpu.memory_space<vmem>>, vector<576x128xbf16>
    %3 = arith.extf %2 : vector<576x128xbf16> to vector<576x128xf32>
    %cst = arith.constant dense<0.000000e+00> : vector<64x128xf32>
    %4 = tpu.matmul %1, %3, %cst {dimension_numbers = #tpu.dot_dimension_numbers<[1], [0], [0], [1], [0, 0, 1, 1], [], []>} : vector<64x576xf32>, vector<576x128xf32>, vector<64x128xf32> -> vector<64x128xf32>
    %c0_3 = arith.constant 0 : index
    %c0_4 = arith.constant 0 : index
    %5 = vector.load %arg3[%c0_3, %c0_4] : memref<64x1xf32, #tpu.memory_space<vmem>>, vector<64x1xf32>
    %6 = vector.broadcast %5 : vector<64x1xf32> to vector<64x128xf32>
    %7 = arith.addf %4, %6 : vector<64x128xf32>
    %8 = arith.negf %7 : vector<64x128xf32>
    %9 = math.exp %8 : vector<64x128xf32>
    %cst_5 = arith.constant 1.000000e+00 : f32
    %10 = vector.broadcast %cst_5 : f32 to vector<64x128xf32>
    %11 = arith.addf %10, %9 : vector<64x128xf32>
    %12 = arith.divf %10, %11 : vector<64x128xf32>
    %13 = arith.mulf %7, %12 : vector<64x128xf32>
    %14 = arith.truncf %13 : vector<64x128xf32> to vector<64x128xbf16>
    %c0_6 = arith.constant 0 : index
    %c0_7 = arith.constant 0 : index
    %15 = vector.load %arg4[%c0_6, %c0_7] : memref<64x128xbf16, #tpu.memory_space<vmem>>, vector<64x128xbf16>
    tpu.vector_store %arg4[%c0_6, %c0_7], %14 {strides = array<i32>} : memref<64x128xbf16, #tpu.memory_space<vmem>>, vector<64x128xbf16>,
    return
  }
  func.func @transform_0(%arg0: i32) -> (i32, i32) {
    %c0_i32 = arith.constant 0 : i32
    %c0_i32_0 = arith.constant 0 : i32
    return %c0_i32, %arg0 : i32, i32
  }
  func.func @transform_1(%arg0: i32) -> (i32, i32) {
    %c0_i32 = arith.constant 0 : i32
    %c0_i32_0 = arith.constant 0 : i32
    %c0_i32_1 = arith.constant 0 : i32
    return %c0_i32, %c0_i32_0 : i32, i32
  }
  func.func @transform_2(%arg0: i32) -> (i32, i32) {
    %c0_i32 = arith.constant 0 : i32
    %c0_i32_0 = arith.constant 0 : i32
    %c0_i32_1 = arith.constant 0 : i32
    return %c0_i32, %c0_i32_0 : i32, i32
  }
  func.func @transform_3(%arg0: i32) -> (i32, i32) {
    %c0_i32 = arith.constant 0 : i32
    %c0_i32_0 = arith.constant 0 : i32
    return %c0_i32, %arg0 : i32, i32
  }
}

module attributes {stable_mosaic.version = 11 : i64} {
  func.func @_head_kernel(%arg0: i32, %arg1: memref<64x256xbf16, #tpu.memory_space<vmem>>, %arg2: memref<9x32x64xbf16, #tpu.memory_space<vmem>>, %arg3: memref<32x1xf32, #tpu.memory_space<vmem>>, %arg4: memref<12x32xbf16, #tpu.memory_space<vmem>>, %arg5: memref<12x1xf32, #tpu.memory_space<vmem>>, %arg6: memref<12x128xf32, #tpu.memory_space<vmem>>) attributes {dimension_semantics = [#tpu.dimension_semantics<arbitrary>], iteration_bounds = array<i64: 1>, scalar_prefetch = 0 : i64, scratch_operands = 0 : i64, tpu.core_type = #tpu.core_type<tc>, window_params = [{pipeline_mode = #tpu.pipeline_mode<synchronous>, transform_indices = @transform_0, window_bounds = array<i64: 64, 256>}, {pipeline_mode = #tpu.pipeline_mode<synchronous>, transform_indices = @transform_1, window_bounds = array<i64: 9, 32, 64>}, {pipeline_mode = #tpu.pipeline_mode<synchronous>, transform_indices = @transform_2, window_bounds = array<i64: 32, 1>}, {pipeline_mode = #tpu.pipeline_mode<synchronous>, transform_indices = @transform_3, window_bounds = array<i64: 12, 32>}, {pipeline_mode = #tpu.pipeline_mode<synchronous>, transform_indices = @transform_4, window_bounds = array<i64: 12, 1>}, {pipeline_mode = #tpu.pipeline_mode<synchronous>, transform_indices = @transform_5, window_bounds = array<i64: 12, 128>}]} {
    %cst = arith.constant 0.000000e+00 : f32
    %0 = vector.broadcast %cst : f32 to vector<32x128xf32>
    %c0 = arith.constant 0 : index
    %c0_0 = arith.constant 0 : index
    %1 = vector.load %arg1[%c0, %c0_0] : memref<64x256xbf16, #tpu.memory_space<vmem>>, vector<64x128xbf16>
    %2 = arith.extf %1 : vector<64x128xbf16> to vector<64x128xf32>
    %c0_1 = arith.constant 0 : index
    %c0_2 = arith.constant 0 : index
    %c0_3 = arith.constant 0 : index
    %3 = vector.load %arg2[%c0_1, %c0_2, %c0_3] : memref<9x32x64xbf16, #tpu.memory_space<vmem>>, vector<1x32x64xbf16>
    %4 = vector.shape_cast %3 : vector<1x32x64xbf16> to vector<32x64xbf16>
    %5 = arith.extf %4 : vector<32x64xbf16> to vector<32x64xf32>
    %cst_4 = arith.constant dense<0.000000e+00> : vector<32x128xf32>
    %6 = tpu.matmul %5, %2, %cst_4 {dimension_numbers = #tpu.dot_dimension_numbers<[1], [0], [0], [1], [0, 0, 1, 1], [], []>} : vector<32x64xf32>, vector<64x128xf32>, vector<32x128xf32> -> vector<32x128xf32>
    %7 = arith.addf %0, %6 : vector<32x128xf32>
    %c0_5 = arith.constant 0 : index
    %c1 = arith.constant 1 : index
    %8 = vector.load %arg1[%c0_5, %c1] : memref<64x256xbf16, #tpu.memory_space<vmem>>, vector<64x128xbf16>
    %9 = arith.extf %8 : vector<64x128xbf16> to vector<64x128xf32>
    %c1_6 = arith.constant 1 : index
    %c0_7 = arith.constant 0 : index
    %c0_8 = arith.constant 0 : index
    %10 = vector.load %arg2[%c1_6, %c0_7, %c0_8] : memref<9x32x64xbf16, #tpu.memory_space<vmem>>, vector<1x32x64xbf16>
    %11 = vector.shape_cast %10 : vector<1x32x64xbf16> to vector<32x64xbf16>
    %12 = arith.extf %11 : vector<32x64xbf16> to vector<32x64xf32>
    %cst_9 = arith.constant dense<0.000000e+00> : vector<32x128xf32>
    %13 = tpu.matmul %12, %9, %cst_9 {dimension_numbers = #tpu.dot_dimension_numbers<[1], [0], [0], [1], [0, 0, 1, 1], [], []>} : vector<32x64xf32>, vector<64x128xf32>, vector<32x128xf32> -> vector<32x128xf32>
    %14 = arith.addf %7, %13 : vector<32x128xf32>
    %c0_10 = arith.constant 0 : index
    %c2 = arith.constant 2 : index
    %15 = vector.load %arg1[%c0_10, %c2] : memref<64x256xbf16, #tpu.memory_space<vmem>>, vector<64x128xbf16>
    %16 = arith.extf %15 : vector<64x128xbf16> to vector<64x128xf32>
    %c2_11 = arith.constant 2 : index
    %c0_12 = arith.constant 0 : index
    %c0_13 = arith.constant 0 : index
    %17 = vector.load %arg2[%c2_11, %c0_12, %c0_13] : memref<9x32x64xbf16, #tpu.memory_space<vmem>>, vector<1x32x64xbf16>
    %18 = vector.shape_cast %17 : vector<1x32x64xbf16> to vector<32x64xbf16>
    %19 = arith.extf %18 : vector<32x64xbf16> to vector<32x64xf32>
    %cst_14 = arith.constant dense<0.000000e+00> : vector<32x128xf32>
    %20 = tpu.matmul %19, %16, %cst_14 {dimension_numbers = #tpu.dot_dimension_numbers<[1], [0], [0], [1], [0, 0, 1, 1], [], []>} : vector<32x64xf32>, vector<64x128xf32>, vector<32x128xf32> -> vector<32x128xf32>
    %21 = arith.addf %14, %20 : vector<32x128xf32>
    %c0_15 = arith.constant 0 : index
    %c4 = arith.constant 4 : index
    %22 = vector.load %arg1[%c0_15, %c4] : memref<64x256xbf16, #tpu.memory_space<vmem>>, vector<64x128xbf16>
    %23 = arith.extf %22 : vector<64x128xbf16> to vector<64x128xf32>
    %c3 = arith.constant 3 : index
    %c0_16 = arith.constant 0 : index
    %c0_17 = arith.constant 0 : index
    %24 = vector.load %arg2[%c3, %c0_16, %c0_17] : memref<9x32x64xbf16, #tpu.memory_space<vmem>>, vector<1x32x64xbf16>
    %25 = vector.shape_cast %24 : vector<1x32x64xbf16> to vector<32x64xbf16>
    %26 = arith.extf %25 : vector<32x64xbf16> to vector<32x64xf32>
    %cst_18 = arith.constant dense<0.000000e+00> : vector<32x128xf32>
    %27 = tpu.matmul %26, %23, %cst_18 {dimension_numbers = #tpu.dot_dimension_numbers<[1], [0], [0], [1], [0, 0, 1, 1], [], []>} : vector<32x64xf32>, vector<64x128xf32>, vector<32x128xf32> -> vector<32x128xf32>
    %28 = arith.addf %21, %27 : vector<32x128xf32>
    %c0_19 = arith.constant 0 : index
    %c5 = arith.constant 5 : index
    %29 = vector.load %arg1[%c0_19, %c5] : memref<64x256xbf16, #tpu.memory_space<vmem>>, vector<64x128xbf16>
    %30 = arith.extf %29 : vector<64x128xbf16> to vector<64x128xf32>
    %c4_20 = arith.constant 4 : index
    %c0_21 = arith.constant 0 : index
    %c0_22 = arith.constant 0 : index
    %31 = vector.load %arg2[%c4_20, %c0_21, %c0_22] : memref<9x32x64xbf16, #tpu.memory_space<vmem>>, vector<1x32x64xbf16>
    %32 = vector.shape_cast %31 : vector<1x32x64xbf16> to vector<32x64xbf16>
    %33 = arith.extf %32 : vector<32x64xbf16> to vector<32x64xf32>
    %cst_23 = arith.constant dense<0.000000e+00> : vector<32x128xf32>
    %34 = tpu.matmul %33, %30, %cst_23 {dimension_numbers = #tpu.dot_dimension_numbers<[1], [0], [0], [1], [0, 0, 1, 1], [], []>} : vector<32x64xf32>, vector<64x128xf32>, vector<32x128xf32> -> vector<32x128xf32>
    %35 = arith.addf %28, %34 : vector<32x128xf32>
    %c0_24 = arith.constant 0 : index
    %c6 = arith.constant 6 : index
    %36 = vector.load %arg1[%c0_24, %c6] : memref<64x256xbf16, #tpu.memory_space<vmem>>, vector<64x128xbf16>
    %37 = arith.extf %36 : vector<64x128xbf16> to vector<64x128xf32>
    %c5_25 = arith.constant 5 : index
    %c0_26 = arith.constant 0 : index
    %c0_27 = arith.constant 0 : index
    %38 = vector.load %arg2[%c5_25, %c0_26, %c0_27] : memref<9x32x64xbf16, #tpu.memory_space<vmem>>, vector<1x32x64xbf16>
    %39 = vector.shape_cast %38 : vector<1x32x64xbf16> to vector<32x64xbf16>
    %40 = arith.extf %39 : vector<32x64xbf16> to vector<32x64xf32>
    %cst_28 = arith.constant dense<0.000000e+00> : vector<32x128xf32>
    %41 = tpu.matmul %40, %37, %cst_28 {dimension_numbers = #tpu.dot_dimension_numbers<[1], [0], [0], [1], [0, 0, 1, 1], [], []>} : vector<32x64xf32>, vector<64x128xf32>, vector<32x128xf32> -> vector<32x128xf32>
    %42 = arith.addf %35, %41 : vector<32x128xf32>
    %c0_29 = arith.constant 0 : index
    %c8 = arith.constant 8 : index
    %43 = vector.load %arg1[%c0_29, %c8] : memref<64x256xbf16, #tpu.memory_space<vmem>>, vector<64x128xbf16>
    %44 = arith.extf %43 : vector<64x128xbf16> to vector<64x128xf32>
    %c6_30 = arith.constant 6 : index
    %c0_31 = arith.constant 0 : index
    %c0_32 = arith.constant 0 : index
    %45 = vector.load %arg2[%c6_30, %c0_31, %c0_32] : memref<9x32x64xbf16, #tpu.memory_space<vmem>>, vector<1x32x64xbf16>
    %46 = vector.shape_cast %45 : vector<1x32x64xbf16> to vector<32x64xbf16>
    %47 = arith.extf %46 : vector<32x64xbf16> to vector<32x64xf32>
    %cst_33 = arith.constant dense<0.000000e+00> : vector<32x128xf32>
    %48 = tpu.matmul %47, %44, %cst_33 {dimension_numbers = #tpu.dot_dimension_numbers<[1], [0], [0], [1], [0, 0, 1, 1], [], []>} : vector<32x64xf32>, vector<64x128xf32>, vector<32x128xf32> -> vector<32x128xf32>
    %49 = arith.addf %42, %48 : vector<32x128xf32>
    %c0_34 = arith.constant 0 : index
    %c9 = arith.constant 9 : index
    %50 = vector.load %arg1[%c0_34, %c9] : memref<64x256xbf16, #tpu.memory_space<vmem>>, vector<64x128xbf16>
    %51 = arith.extf %50 : vector<64x128xbf16> to vector<64x128xf32>
    %c7 = arith.constant 7 : index
    %c0_35 = arith.constant 0 : index
    %c0_36 = arith.constant 0 : index
    %52 = vector.load %arg2[%c7, %c0_35, %c0_36] : memref<9x32x64xbf16, #tpu.memory_space<vmem>>, vector<1x32x64xbf16>
    %53 = vector.shape_cast %52 : vector<1x32x64xbf16> to vector<32x64xbf16>
    %54 = arith.extf %53 : vector<32x64xbf16> to vector<32x64xf32>
    %cst_37 = arith.constant dense<0.000000e+00> : vector<32x128xf32>
    %55 = tpu.matmul %54, %51, %cst_37 {dimension_numbers = #tpu.dot_dimension_numbers<[1], [0], [0], [1], [0, 0, 1, 1], [], []>} : vector<32x64xf32>, vector<64x128xf32>, vector<32x128xf32> -> vector<32x128xf32>
    %56 = arith.addf %49, %55 : vector<32x128xf32>
    %c0_38 = arith.constant 0 : index
    %c10 = arith.constant 10 : index
    %57 = vector.load %arg1[%c0_38, %c10] : memref<64x256xbf16, #tpu.memory_space<vmem>>, vector<64x128xbf16>
    %58 = arith.extf %57 : vector<64x128xbf16> to vector<64x128xf32>
    %c8_39 = arith.constant 8 : index
    %c0_40 = arith.constant 0 : index
    %c0_41 = arith.constant 0 : index
    %59 = vector.load %arg2[%c8_39, %c0_40, %c0_41] : memref<9x32x64xbf16, #tpu.memory_space<vmem>>, vector<1x32x64xbf16>
    %60 = vector.shape_cast %59 : vector<1x32x64xbf16> to vector<32x64xbf16>
    %61 = arith.extf %60 : vector<32x64xbf16> to vector<32x64xf32>
    %cst_42 = arith.constant dense<0.000000e+00> : vector<32x128xf32>
    %62 = tpu.matmul %61, %58, %cst_42 {dimension_numbers = #tpu.dot_dimension_numbers<[1], [0], [0], [1], [0, 0, 1, 1], [], []>} : vector<32x64xf32>, vector<64x128xf32>, vector<32x128xf32> -> vector<32x128xf32>
    %63 = arith.addf %56, %62 : vector<32x128xf32>
    %c0_43 = arith.constant 0 : index
    %c0_44 = arith.constant 0 : index
    %64 = vector.load %arg3[%c0_43, %c0_44] : memref<32x1xf32, #tpu.memory_space<vmem>>, vector<32x1xf32>
    %65 = vector.broadcast %64 : vector<32x1xf32> to vector<32x128xf32>
    %66 = arith.addf %63, %65 : vector<32x128xf32>
    %67 = arith.negf %66 : vector<32x128xf32>
    %68 = math.exp %67 : vector<32x128xf32>
    %cst_45 = arith.constant 1.000000e+00 : f32
    %69 = vector.broadcast %cst_45 : f32 to vector<32x128xf32>
    %70 = arith.addf %69, %68 : vector<32x128xf32>
    %71 = arith.divf %69, %70 : vector<32x128xf32>
    %72 = arith.mulf %66, %71 : vector<32x128xf32>
    %c0_46 = arith.constant 0 : index
    %c0_47 = arith.constant 0 : index
    %73 = vector.load %arg4[%c0_46, %c0_47] : memref<12x32xbf16, #tpu.memory_space<vmem>>, vector<12x32xbf16>
    %74 = arith.extf %73 : vector<12x32xbf16> to vector<12x32xf32>
    %cst_48 = arith.constant dense<0.000000e+00> : vector<12x128xf32>
    %75 = tpu.matmul %74, %72, %cst_48 {dimension_numbers = #tpu.dot_dimension_numbers<[1], [0], [0], [1], [0, 0, 1, 1], [], []>} : vector<12x32xf32>, vector<32x128xf32>, vector<12x128xf32> -> vector<12x128xf32>
    %c0_49 = arith.constant 0 : index
    %c0_50 = arith.constant 0 : index
    %76 = vector.load %arg5[%c0_49, %c0_50] : memref<12x1xf32, #tpu.memory_space<vmem>>, vector<12x1xf32>
    %77 = vector.broadcast %76 : vector<12x1xf32> to vector<12x128xf32>
    %78 = arith.addf %75, %77 : vector<12x128xf32>
    %c0_51 = arith.constant 0 : index
    %c0_52 = arith.constant 0 : index
    %79 = vector.load %arg6[%c0_51, %c0_52] : memref<12x128xf32, #tpu.memory_space<vmem>>, vector<12x128xf32>
    tpu.vector_store %arg6[%c0_51, %c0_52], %78 {strides = array<i32>} : memref<12x128xf32, #tpu.memory_space<vmem>>, vector<12x128xf32>,
    return
  }
  func.func @transform_0(%arg0: i32) -> (i32, i32) {
    %c0_i32 = arith.constant 0 : i32
    %c0_i32_0 = arith.constant 0 : i32
    %c0_i32_1 = arith.constant 0 : i32
    return %c0_i32, %c0_i32_0 : i32, i32
  }
  func.func @transform_1(%arg0: i32) -> (i32, i32, i32) {
    %c0_i32 = arith.constant 0 : i32
    %c0_i32_0 = arith.constant 0 : i32
    %c0_i32_1 = arith.constant 0 : i32
    %c0_i32_2 = arith.constant 0 : i32
    return %c0_i32, %c0_i32_0, %c0_i32_1 : i32, i32, i32
  }
  func.func @transform_2(%arg0: i32) -> (i32, i32) {
    %c0_i32 = arith.constant 0 : i32
    %c0_i32_0 = arith.constant 0 : i32
    %c0_i32_1 = arith.constant 0 : i32
    return %c0_i32, %c0_i32_0 : i32, i32
  }
  func.func @transform_3(%arg0: i32) -> (i32, i32) {
    %c0_i32 = arith.constant 0 : i32
    %c0_i32_0 = arith.constant 0 : i32
    %c0_i32_1 = arith.constant 0 : i32
    return %c0_i32, %c0_i32_0 : i32, i32
  }
  func.func @transform_4(%arg0: i32) -> (i32, i32) {
    %c0_i32 = arith.constant 0 : i32
    %c0_i32_0 = arith.constant 0 : i32
    %c0_i32_1 = arith.constant 0 : i32
    return %c0_i32, %c0_i32_0 : i32, i32
  }
  func.func @transform_5(%arg0: i32) -> (i32, i32) {
    %c0_i32 = arith.constant 0 : i32
    %c0_i32_0 = arith.constant 0 : i32
    %c0_i32_1 = arith.constant 0 : i32
    return %c0_i32, %c0_i32_0 : i32, i32
  }
}

module attributes {stable_mosaic.version = 11 : i64} {
  func.func @_head_kernel(%arg0: i32, %arg1: memref<64x256xbf16, #tpu.memory_space<vmem>>, %arg2: memref<9x32x64xbf16, #tpu.memory_space<vmem>>, %arg3: memref<32x1xf32, #tpu.memory_space<vmem>>, %arg4: memref<12x32xbf16, #tpu.memory_space<vmem>>, %arg5: memref<12x1xf32, #tpu.memory_space<vmem>>, %arg6: memref<12x128xf32, #tpu.memory_space<vmem>>) attributes {dimension_semantics = [#tpu.dimension_semantics<arbitrary>], iteration_bounds = array<i64: 1>, scalar_prefetch = 0 : i64, scratch_operands = 0 : i64, tpu.core_type = #tpu.core_type<tc>, window_params = [{pipeline_mode = #tpu.pipeline_mode<synchronous>, transform_indices = @transform_0, window_bounds = array<i64: 64, 256>}, {pipeline_mode = #tpu.pipeline_mode<synchronous>, transform_indices = @transform_1, window_bounds = array<i64: 9, 32, 64>}, {pipeline_mode = #tpu.pipeline_mode<synchronous>, transform_indices = @transform_2, window_bounds = array<i64: 32, 1>}, {pipeline_mode = #tpu.pipeline_mode<synchronous>, transform_indices = @transform_3, window_bounds = array<i64: 12, 32>}, {pipeline_mode = #tpu.pipeline_mode<synchronous>, transform_indices = @transform_4, window_bounds = array<i64: 12, 1>}, {pipeline_mode = #tpu.pipeline_mode<synchronous>, transform_indices = @transform_5, window_bounds = array<i64: 12, 128>}]} {
    %cst = arith.constant 0.000000e+00 : f32
    %0 = vector.broadcast %cst : f32 to vector<32x128xf32>
    %c0 = arith.constant 0 : index
    %c0_0 = arith.constant 0 : index
    %1 = vector.load %arg1[%c0, %c0_0] : memref<64x256xbf16, #tpu.memory_space<vmem>>, vector<64x128xbf16>
    %2 = arith.extf %1 : vector<64x128xbf16> to vector<64x128xf32>
    %c0_1 = arith.constant 0 : index
    %c0_2 = arith.constant 0 : index
    %c0_3 = arith.constant 0 : index
    %3 = vector.load %arg2[%c0_1, %c0_2, %c0_3] : memref<9x32x64xbf16, #tpu.memory_space<vmem>>, vector<1x32x64xbf16>
    %4 = vector.shape_cast %3 : vector<1x32x64xbf16> to vector<32x64xbf16>
    %5 = arith.extf %4 : vector<32x64xbf16> to vector<32x64xf32>
    %cst_4 = arith.constant dense<0.000000e+00> : vector<32x128xf32>
    %6 = tpu.matmul %5, %2, %cst_4 {dimension_numbers = #tpu.dot_dimension_numbers<[1], [0], [0], [1], [0, 0, 1, 1], [], []>} : vector<32x64xf32>, vector<64x128xf32>, vector<32x128xf32> -> vector<32x128xf32>
    %7 = arith.addf %0, %6 : vector<32x128xf32>
    %c0_5 = arith.constant 0 : index
    %c1 = arith.constant 1 : index
    %8 = vector.load %arg1[%c0_5, %c1] : memref<64x256xbf16, #tpu.memory_space<vmem>>, vector<64x128xbf16>
    %9 = arith.extf %8 : vector<64x128xbf16> to vector<64x128xf32>
    %c1_6 = arith.constant 1 : index
    %c0_7 = arith.constant 0 : index
    %c0_8 = arith.constant 0 : index
    %10 = vector.load %arg2[%c1_6, %c0_7, %c0_8] : memref<9x32x64xbf16, #tpu.memory_space<vmem>>, vector<1x32x64xbf16>
    %11 = vector.shape_cast %10 : vector<1x32x64xbf16> to vector<32x64xbf16>
    %12 = arith.extf %11 : vector<32x64xbf16> to vector<32x64xf32>
    %cst_9 = arith.constant dense<0.000000e+00> : vector<32x128xf32>
    %13 = tpu.matmul %12, %9, %cst_9 {dimension_numbers = #tpu.dot_dimension_numbers<[1], [0], [0], [1], [0, 0, 1, 1], [], []>} : vector<32x64xf32>, vector<64x128xf32>, vector<32x128xf32> -> vector<32x128xf32>
    %14 = arith.addf %7, %13 : vector<32x128xf32>
    %c0_10 = arith.constant 0 : index
    %c2 = arith.constant 2 : index
    %15 = vector.load %arg1[%c0_10, %c2] : memref<64x256xbf16, #tpu.memory_space<vmem>>, vector<64x128xbf16>
    %16 = arith.extf %15 : vector<64x128xbf16> to vector<64x128xf32>
    %c2_11 = arith.constant 2 : index
    %c0_12 = arith.constant 0 : index
    %c0_13 = arith.constant 0 : index
    %17 = vector.load %arg2[%c2_11, %c0_12, %c0_13] : memref<9x32x64xbf16, #tpu.memory_space<vmem>>, vector<1x32x64xbf16>
    %18 = vector.shape_cast %17 : vector<1x32x64xbf16> to vector<32x64xbf16>
    %19 = arith.extf %18 : vector<32x64xbf16> to vector<32x64xf32>
    %cst_14 = arith.constant dense<0.000000e+00> : vector<32x128xf32>
    %20 = tpu.matmul %19, %16, %cst_14 {dimension_numbers = #tpu.dot_dimension_numbers<[1], [0], [0], [1], [0, 0, 1, 1], [], []>} : vector<32x64xf32>, vector<64x128xf32>, vector<32x128xf32> -> vector<32x128xf32>
    %21 = arith.addf %14, %20 : vector<32x128xf32>
    %c0_15 = arith.constant 0 : index
    %c6 = arith.constant 6 : index
    %22 = vector.load %arg1[%c0_15, %c6] : memref<64x256xbf16, #tpu.memory_space<vmem>>, vector<64x128xbf16>
    %23 = arith.extf %22 : vector<64x128xbf16> to vector<64x128xf32>
    %c3 = arith.constant 3 : index
    %c0_16 = arith.constant 0 : index
    %c0_17 = arith.constant 0 : index
    %24 = vector.load %arg2[%c3, %c0_16, %c0_17] : memref<9x32x64xbf16, #tpu.memory_space<vmem>>, vector<1x32x64xbf16>
    %25 = vector.shape_cast %24 : vector<1x32x64xbf16> to vector<32x64xbf16>
    %26 = arith.extf %25 : vector<32x64xbf16> to vector<32x64xf32>
    %cst_18 = arith.constant dense<0.000000e+00> : vector<32x128xf32>
    %27 = tpu.matmul %26, %23, %cst_18 {dimension_numbers = #tpu.dot_dimension_numbers<[1], [0], [0], [1], [0, 0, 1, 1], [], []>} : vector<32x64xf32>, vector<64x128xf32>, vector<32x128xf32> -> vector<32x128xf32>
    %28 = arith.addf %21, %27 : vector<32x128xf32>
    %c0_19 = arith.constant 0 : index
    %c7 = arith.constant 7 : index
    %29 = vector.load %arg1[%c0_19, %c7] : memref<64x256xbf16, #tpu.memory_space<vmem>>, vector<64x128xbf16>
    %30 = arith.extf %29 : vector<64x128xbf16> to vector<64x128xf32>
    %c4 = arith.constant 4 : index
    %c0_20 = arith.constant 0 : index
    %c0_21 = arith.constant 0 : index
    %31 = vector.load %arg2[%c4, %c0_20, %c0_21] : memref<9x32x64xbf16, #tpu.memory_space<vmem>>, vector<1x32x64xbf16>
    %32 = vector.shape_cast %31 : vector<1x32x64xbf16> to vector<32x64xbf16>
    %33 = arith.extf %32 : vector<32x64xbf16> to vector<32x64xf32>
    %cst_22 = arith.constant dense<0.000000e+00> : vector<32x128xf32>
    %34 = tpu.matmul %33, %30, %cst_22 {dimension_numbers = #tpu.dot_dimension_numbers<[1], [0], [0], [1], [0, 0, 1, 1], [], []>} : vector<32x64xf32>, vector<64x128xf32>, vector<32x128xf32> -> vector<32x128xf32>
    %35 = arith.addf %28, %34 : vector<32x128xf32>
    %c0_23 = arith.constant 0 : index
    %c8 = arith.constant 8 : index
    %36 = vector.load %arg1[%c0_23, %c8] : memref<64x256xbf16, #tpu.memory_space<vmem>>, vector<64x128xbf16>
    %37 = arith.extf %36 : vector<64x128xbf16> to vector<64x128xf32>
    %c5 = arith.constant 5 : index
    %c0_24 = arith.constant 0 : index
    %c0_25 = arith.constant 0 : index
    %38 = vector.load %arg2[%c5, %c0_24, %c0_25] : memref<9x32x64xbf16, #tpu.memory_space<vmem>>, vector<1x32x64xbf16>
    %39 = vector.shape_cast %38 : vector<1x32x64xbf16> to vector<32x64xbf16>
    %40 = arith.extf %39 : vector<32x64xbf16> to vector<32x64xf32>
    %cst_26 = arith.constant dense<0.000000e+00> : vector<32x128xf32>
    %41 = tpu.matmul %40, %37, %cst_26 {dimension_numbers = #tpu.dot_dimension_numbers<[1], [0], [0], [1], [0, 0, 1, 1], [], []>} : vector<32x64xf32>, vector<64x128xf32>, vector<32x128xf32> -> vector<32x128xf32>
    %42 = arith.addf %35, %41 : vector<32x128xf32>
    %c0_27 = arith.constant 0 : index
    %c12 = arith.constant 12 : index
    %43 = vector.load %arg1[%c0_27, %c12] : memref<64x256xbf16, #tpu.memory_space<vmem>>, vector<64x128xbf16>
    %44 = arith.extf %43 : vector<64x128xbf16> to vector<64x128xf32>
    %c6_28 = arith.constant 6 : index
    %c0_29 = arith.constant 0 : index
    %c0_30 = arith.constant 0 : index
    %45 = vector.load %arg2[%c6_28, %c0_29, %c0_30] : memref<9x32x64xbf16, #tpu.memory_space<vmem>>, vector<1x32x64xbf16>
    %46 = vector.shape_cast %45 : vector<1x32x64xbf16> to vector<32x64xbf16>
    %47 = arith.extf %46 : vector<32x64xbf16> to vector<32x64xf32>
    %cst_31 = arith.constant dense<0.000000e+00> : vector<32x128xf32>
    %48 = tpu.matmul %47, %44, %cst_31 {dimension_numbers = #tpu.dot_dimension_numbers<[1], [0], [0], [1], [0, 0, 1, 1], [], []>} : vector<32x64xf32>, vector<64x128xf32>, vector<32x128xf32> -> vector<32x128xf32>
    %49 = arith.addf %42, %48 : vector<32x128xf32>
    %c0_32 = arith.constant 0 : index
    %c13 = arith.constant 13 : index
    %50 = vector.load %arg1[%c0_32, %c13] : memref<64x256xbf16, #tpu.memory_space<vmem>>, vector<64x128xbf16>
    %51 = arith.extf %50 : vector<64x128xbf16> to vector<64x128xf32>
    %c7_33 = arith.constant 7 : index
    %c0_34 = arith.constant 0 : index
    %c0_35 = arith.constant 0 : index
    %52 = vector.load %arg2[%c7_33, %c0_34, %c0_35] : memref<9x32x64xbf16, #tpu.memory_space<vmem>>, vector<1x32x64xbf16>
    %53 = vector.shape_cast %52 : vector<1x32x64xbf16> to vector<32x64xbf16>
    %54 = arith.extf %53 : vector<32x64xbf16> to vector<32x64xf32>
    %cst_36 = arith.constant dense<0.000000e+00> : vector<32x128xf32>
    %55 = tpu.matmul %54, %51, %cst_36 {dimension_numbers = #tpu.dot_dimension_numbers<[1], [0], [0], [1], [0, 0, 1, 1], [], []>} : vector<32x64xf32>, vector<64x128xf32>, vector<32x128xf32> -> vector<32x128xf32>
    %56 = arith.addf %49, %55 : vector<32x128xf32>
    %c0_37 = arith.constant 0 : index
    %c14 = arith.constant 14 : index
    %57 = vector.load %arg1[%c0_37, %c14] : memref<64x256xbf16, #tpu.memory_space<vmem>>, vector<64x128xbf16>
    %58 = arith.extf %57 : vector<64x128xbf16> to vector<64x128xf32>
    %c8_38 = arith.constant 8 : index
    %c0_39 = arith.constant 0 : index
    %c0_40 = arith.constant 0 : index
    %59 = vector.load %arg2[%c8_38, %c0_39, %c0_40] : memref<9x32x64xbf16, #tpu.memory_space<vmem>>, vector<1x32x64xbf16>
    %60 = vector.shape_cast %59 : vector<1x32x64xbf16> to vector<32x64xbf16>
    %61 = arith.extf %60 : vector<32x64xbf16> to vector<32x64xf32>
    %cst_41 = arith.constant dense<0.000000e+00> : vector<32x128xf32>
    %62 = tpu.matmul %61, %58, %cst_41 {dimension_numbers = #tpu.dot_dimension_numbers<[1], [0], [0], [1], [0, 0, 1, 1], [], []>} : vector<32x64xf32>, vector<64x128xf32>, vector<32x128xf32> -> vector<32x128xf32>
    %63 = arith.addf %56, %62 : vector<32x128xf32>
    %c0_42 = arith.constant 0 : index
    %c0_43 = arith.constant 0 : index
    %64 = vector.load %arg3[%c0_42, %c0_43] : memref<32x1xf32, #tpu.memory_space<vmem>>, vector<32x1xf32>
    %65 = vector.broadcast %64 : vector<32x1xf32> to vector<32x128xf32>
    %66 = arith.addf %63, %65 : vector<32x128xf32>
    %67 = arith.negf %66 : vector<32x128xf32>
    %68 = math.exp %67 : vector<32x128xf32>
    %cst_44 = arith.constant 1.000000e+00 : f32
    %69 = vector.broadcast %cst_44 : f32 to vector<32x128xf32>
    %70 = arith.addf %69, %68 : vector<32x128xf32>
    %71 = arith.divf %69, %70 : vector<32x128xf32>
    %72 = arith.mulf %66, %71 : vector<32x128xf32>
    %c0_45 = arith.constant 0 : index
    %c0_46 = arith.constant 0 : index
    %73 = vector.load %arg4[%c0_45, %c0_46] : memref<12x32xbf16, #tpu.memory_space<vmem>>, vector<12x32xbf16>
    %74 = arith.extf %73 : vector<12x32xbf16> to vector<12x32xf32>
    %cst_47 = arith.constant dense<0.000000e+00> : vector<12x128xf32>
    %75 = tpu.matmul %74, %72, %cst_47 {dimension_numbers = #tpu.dot_dimension_numbers<[1], [0], [0], [1], [0, 0, 1, 1], [], []>} : vector<12x32xf32>, vector<32x128xf32>, vector<12x128xf32> -> vector<12x128xf32>
    %c0_48 = arith.constant 0 : index
    %c0_49 = arith.constant 0 : index
    %76 = vector.load %arg5[%c0_48, %c0_49] : memref<12x1xf32, #tpu.memory_space<vmem>>, vector<12x1xf32>
    %77 = vector.broadcast %76 : vector<12x1xf32> to vector<12x128xf32>
    %78 = arith.addf %75, %77 : vector<12x128xf32>
    %c0_50 = arith.constant 0 : index
    %c0_51 = arith.constant 0 : index
    %79 = vector.load %arg6[%c0_50, %c0_51] : memref<12x128xf32, #tpu.memory_space<vmem>>, vector<12x128xf32>
    tpu.vector_store %arg6[%c0_50, %c0_51], %78 {strides = array<i32>} : memref<12x128xf32, #tpu.memory_space<vmem>>, vector<12x128xf32>,
    return
  }
  func.func @transform_0(%arg0: i32) -> (i32, i32) {
    %c0_i32 = arith.constant 0 : i32
    %c0_i32_0 = arith.constant 0 : i32
    %c0_i32_1 = arith.constant 0 : i32
    return %c0_i32, %c0_i32_0 : i32, i32
  }
  func.func @transform_1(%arg0: i32) -> (i32, i32, i32) {
    %c0_i32 = arith.constant 0 : i32
    %c0_i32_0 = arith.constant 0 : i32
    %c0_i32_1 = arith.constant 0 : i32
    %c0_i32_2 = arith.constant 0 : i32
    return %c0_i32, %c0_i32_0, %c0_i32_1 : i32, i32, i32
  }
  func.func @transform_2(%arg0: i32) -> (i32, i32) {
    %c0_i32 = arith.constant 0 : i32
    %c0_i32_0 = arith.constant 0 : i32
    %c0_i32_1 = arith.constant 0 : i32
    return %c0_i32, %c0_i32_0 : i32, i32
  }
  func.func @transform_3(%arg0: i32) -> (i32, i32) {
    %c0_i32 = arith.constant 0 : i32
    %c0_i32_0 = arith.constant 0 : i32
    %c0_i32_1 = arith.constant 0 : i32
    return %c0_i32, %c0_i32_0 : i32, i32
  }
  func.func @transform_4(%arg0: i32) -> (i32, i32) {
    %c0_i32 = arith.constant 0 : i32
    %c0_i32_0 = arith.constant 0 : i32
    %c0_i32_1 = arith.constant 0 : i32
    return %c0_i32, %c0_i32_0 : i32, i32
  }
  func.func @transform_5(%arg0: i32) -> (i32, i32) {
    %c0_i32 = arith.constant 0 : i32
    %c0_i32_0 = arith.constant 0 : i32
    %c0_i32_1 = arith.constant 0 : i32
    return %c0_i32, %c0_i32_0 : i32, i32
  }
}

module attributes {stable_mosaic.version = 11 : i64} {
  func.func @_head_kernel(%arg0: i32, %arg1: memref<32x384xbf16, #tpu.memory_space<vmem>>, %arg2: memref<9x32x32xbf16, #tpu.memory_space<vmem>>, %arg3: memref<32x1xf32, #tpu.memory_space<vmem>>, %arg4: memref<12x32xbf16, #tpu.memory_space<vmem>>, %arg5: memref<12x1xf32, #tpu.memory_space<vmem>>, %arg6: memref<12x256xf32, #tpu.memory_space<vmem>>) attributes {dimension_semantics = [#tpu.dimension_semantics<arbitrary>], iteration_bounds = array<i64: 1>, scalar_prefetch = 0 : i64, scratch_operands = 0 : i64, tpu.core_type = #tpu.core_type<tc>, window_params = [{pipeline_mode = #tpu.pipeline_mode<synchronous>, transform_indices = @transform_0, window_bounds = array<i64: 32, 384>}, {pipeline_mode = #tpu.pipeline_mode<synchronous>, transform_indices = @transform_1, window_bounds = array<i64: 9, 32, 32>}, {pipeline_mode = #tpu.pipeline_mode<synchronous>, transform_indices = @transform_2, window_bounds = array<i64: 32, 1>}, {pipeline_mode = #tpu.pipeline_mode<synchronous>, transform_indices = @transform_3, window_bounds = array<i64: 12, 32>}, {pipeline_mode = #tpu.pipeline_mode<synchronous>, transform_indices = @transform_4, window_bounds = array<i64: 12, 1>}, {pipeline_mode = #tpu.pipeline_mode<synchronous>, transform_indices = @transform_5, window_bounds = array<i64: 12, 256>}]} {
    %cst = arith.constant 0.000000e+00 : f32
    %0 = vector.broadcast %cst : f32 to vector<32x256xf32>
    %c0 = arith.constant 0 : index
    %c0_0 = arith.constant 0 : index
    %1 = vector.load %arg1[%c0, %c0_0] : memref<32x384xbf16, #tpu.memory_space<vmem>>, vector<32x256xbf16>
    %2 = arith.extf %1 : vector<32x256xbf16> to vector<32x256xf32>
    %c0_1 = arith.constant 0 : index
    %c0_2 = arith.constant 0 : index
    %c0_3 = arith.constant 0 : index
    %3 = vector.load %arg2[%c0_1, %c0_2, %c0_3] : memref<9x32x32xbf16, #tpu.memory_space<vmem>>, vector<1x32x32xbf16>
    %4 = vector.shape_cast %3 : vector<1x32x32xbf16> to vector<32x32xbf16>
    %5 = arith.extf %4 : vector<32x32xbf16> to vector<32x32xf32>
    %cst_4 = arith.constant dense<0.000000e+00> : vector<32x256xf32>
    %6 = tpu.matmul %5, %2, %cst_4 {dimension_numbers = #tpu.dot_dimension_numbers<[1], [0], [0], [1], [0, 0, 1, 1], [], []>} : vector<32x32xf32>, vector<32x256xf32>, vector<32x256xf32> -> vector<32x256xf32>
    %7 = arith.addf %0, %6 : vector<32x256xf32>
    %c0_5 = arith.constant 0 : index
    %c1 = arith.constant 1 : index
    %8 = vector.load %arg1[%c0_5, %c1] : memref<32x384xbf16, #tpu.memory_space<vmem>>, vector<32x256xbf16>
    %9 = arith.extf %8 : vector<32x256xbf16> to vector<32x256xf32>
    %c1_6 = arith.constant 1 : index
    %c0_7 = arith.constant 0 : index
    %c0_8 = arith.constant 0 : index
    %10 = vector.load %arg2[%c1_6, %c0_7, %c0_8] : memref<9x32x32xbf16, #tpu.memory_space<vmem>>, vector<1x32x32xbf16>
    %11 = vector.shape_cast %10 : vector<1x32x32xbf16> to vector<32x32xbf16>
    %12 = arith.extf %11 : vector<32x32xbf16> to vector<32x32xf32>
    %cst_9 = arith.constant dense<0.000000e+00> : vector<32x256xf32>
    %13 = tpu.matmul %12, %9, %cst_9 {dimension_numbers = #tpu.dot_dimension_numbers<[1], [0], [0], [1], [0, 0, 1, 1], [], []>} : vector<32x32xf32>, vector<32x256xf32>, vector<32x256xf32> -> vector<32x256xf32>
    %14 = arith.addf %7, %13 : vector<32x256xf32>
    %c0_10 = arith.constant 0 : index
    %c2 = arith.constant 2 : index
    %15 = vector.load %arg1[%c0_10, %c2] : memref<32x384xbf16, #tpu.memory_space<vmem>>, vector<32x256xbf16>
    %16 = arith.extf %15 : vector<32x256xbf16> to vector<32x256xf32>
    %c2_11 = arith.constant 2 : index
    %c0_12 = arith.constant 0 : index
    %c0_13 = arith.constant 0 : index
    %17 = vector.load %arg2[%c2_11, %c0_12, %c0_13] : memref<9x32x32xbf16, #tpu.memory_space<vmem>>, vector<1x32x32xbf16>
    %18 = vector.shape_cast %17 : vector<1x32x32xbf16> to vector<32x32xbf16>
    %19 = arith.extf %18 : vector<32x32xbf16> to vector<32x32xf32>
    %cst_14 = arith.constant dense<0.000000e+00> : vector<32x256xf32>
    %20 = tpu.matmul %19, %16, %cst_14 {dimension_numbers = #tpu.dot_dimension_numbers<[1], [0], [0], [1], [0, 0, 1, 1], [], []>} : vector<32x32xf32>, vector<32x256xf32>, vector<32x256xf32> -> vector<32x256xf32>
    %21 = arith.addf %14, %20 : vector<32x256xf32>
    %c0_15 = arith.constant 0 : index
    %c10 = arith.constant 10 : index
    %22 = vector.load %arg1[%c0_15, %c10] : memref<32x384xbf16, #tpu.memory_space<vmem>>, vector<32x256xbf16>
    %23 = arith.extf %22 : vector<32x256xbf16> to vector<32x256xf32>
    %c3 = arith.constant 3 : index
    %c0_16 = arith.constant 0 : index
    %c0_17 = arith.constant 0 : index
    %24 = vector.load %arg2[%c3, %c0_16, %c0_17] : memref<9x32x32xbf16, #tpu.memory_space<vmem>>, vector<1x32x32xbf16>
    %25 = vector.shape_cast %24 : vector<1x32x32xbf16> to vector<32x32xbf16>
    %26 = arith.extf %25 : vector<32x32xbf16> to vector<32x32xf32>
    %cst_18 = arith.constant dense<0.000000e+00> : vector<32x256xf32>
    %27 = tpu.matmul %26, %23, %cst_18 {dimension_numbers = #tpu.dot_dimension_numbers<[1], [0], [0], [1], [0, 0, 1, 1], [], []>} : vector<32x32xf32>, vector<32x256xf32>, vector<32x256xf32> -> vector<32x256xf32>
    %28 = arith.addf %21, %27 : vector<32x256xf32>
    %c0_19 = arith.constant 0 : index
    %c11 = arith.constant 11 : index
    %29 = vector.load %arg1[%c0_19, %c11] : memref<32x384xbf16, #tpu.memory_space<vmem>>, vector<32x256xbf16>
    %30 = arith.extf %29 : vector<32x256xbf16> to vector<32x256xf32>
    %c4 = arith.constant 4 : index
    %c0_20 = arith.constant 0 : index
    %c0_21 = arith.constant 0 : index
    %31 = vector.load %arg2[%c4, %c0_20, %c0_21] : memref<9x32x32xbf16, #tpu.memory_space<vmem>>, vector<1x32x32xbf16>
    %32 = vector.shape_cast %31 : vector<1x32x32xbf16> to vector<32x32xbf16>
    %33 = arith.extf %32 : vector<32x32xbf16> to vector<32x32xf32>
    %cst_22 = arith.constant dense<0.000000e+00> : vector<32x256xf32>
    %34 = tpu.matmul %33, %30, %cst_22 {dimension_numbers = #tpu.dot_dimension_numbers<[1], [0], [0], [1], [0, 0, 1, 1], [], []>} : vector<32x32xf32>, vector<32x256xf32>, vector<32x256xf32> -> vector<32x256xf32>
    %35 = arith.addf %28, %34 : vector<32x256xf32>
    %c0_23 = arith.constant 0 : index
    %c12 = arith.constant 12 : index
    %36 = vector.load %arg1[%c0_23, %c12] : memref<32x384xbf16, #tpu.memory_space<vmem>>, vector<32x256xbf16>
    %37 = arith.extf %36 : vector<32x256xbf16> to vector<32x256xf32>
    %c5 = arith.constant 5 : index
    %c0_24 = arith.constant 0 : index
    %c0_25 = arith.constant 0 : index
    %38 = vector.load %arg2[%c5, %c0_24, %c0_25] : memref<9x32x32xbf16, #tpu.memory_space<vmem>>, vector<1x32x32xbf16>
    %39 = vector.shape_cast %38 : vector<1x32x32xbf16> to vector<32x32xbf16>
    %40 = arith.extf %39 : vector<32x32xbf16> to vector<32x32xf32>
    %cst_26 = arith.constant dense<0.000000e+00> : vector<32x256xf32>
    %41 = tpu.matmul %40, %37, %cst_26 {dimension_numbers = #tpu.dot_dimension_numbers<[1], [0], [0], [1], [0, 0, 1, 1], [], []>} : vector<32x32xf32>, vector<32x256xf32>, vector<32x256xf32> -> vector<32x256xf32>
    %42 = arith.addf %35, %41 : vector<32x256xf32>
    %c0_27 = arith.constant 0 : index
    %c20 = arith.constant 20 : index
    %43 = vector.load %arg1[%c0_27, %c20] : memref<32x384xbf16, #tpu.memory_space<vmem>>, vector<32x256xbf16>
    %44 = arith.extf %43 : vector<32x256xbf16> to vector<32x256xf32>
    %c6 = arith.constant 6 : index
    %c0_28 = arith.constant 0 : index
    %c0_29 = arith.constant 0 : index
    %45 = vector.load %arg2[%c6, %c0_28, %c0_29] : memref<9x32x32xbf16, #tpu.memory_space<vmem>>, vector<1x32x32xbf16>
    %46 = vector.shape_cast %45 : vector<1x32x32xbf16> to vector<32x32xbf16>
    %47 = arith.extf %46 : vector<32x32xbf16> to vector<32x32xf32>
    %cst_30 = arith.constant dense<0.000000e+00> : vector<32x256xf32>
    %48 = tpu.matmul %47, %44, %cst_30 {dimension_numbers = #tpu.dot_dimension_numbers<[1], [0], [0], [1], [0, 0, 1, 1], [], []>} : vector<32x32xf32>, vector<32x256xf32>, vector<32x256xf32> -> vector<32x256xf32>
    %49 = arith.addf %42, %48 : vector<32x256xf32>
    %c0_31 = arith.constant 0 : index
    %c21 = arith.constant 21 : index
    %50 = vector.load %arg1[%c0_31, %c21] : memref<32x384xbf16, #tpu.memory_space<vmem>>, vector<32x256xbf16>
    %51 = arith.extf %50 : vector<32x256xbf16> to vector<32x256xf32>
    %c7 = arith.constant 7 : index
    %c0_32 = arith.constant 0 : index
    %c0_33 = arith.constant 0 : index
    %52 = vector.load %arg2[%c7, %c0_32, %c0_33] : memref<9x32x32xbf16, #tpu.memory_space<vmem>>, vector<1x32x32xbf16>
    %53 = vector.shape_cast %52 : vector<1x32x32xbf16> to vector<32x32xbf16>
    %54 = arith.extf %53 : vector<32x32xbf16> to vector<32x32xf32>
    %cst_34 = arith.constant dense<0.000000e+00> : vector<32x256xf32>
    %55 = tpu.matmul %54, %51, %cst_34 {dimension_numbers = #tpu.dot_dimension_numbers<[1], [0], [0], [1], [0, 0, 1, 1], [], []>} : vector<32x32xf32>, vector<32x256xf32>, vector<32x256xf32> -> vector<32x256xf32>
    %56 = arith.addf %49, %55 : vector<32x256xf32>
    %c0_35 = arith.constant 0 : index
    %c22 = arith.constant 22 : index
    %57 = vector.load %arg1[%c0_35, %c22] : memref<32x384xbf16, #tpu.memory_space<vmem>>, vector<32x256xbf16>
    %58 = arith.extf %57 : vector<32x256xbf16> to vector<32x256xf32>
    %c8 = arith.constant 8 : index
    %c0_36 = arith.constant 0 : index
    %c0_37 = arith.constant 0 : index
    %59 = vector.load %arg2[%c8, %c0_36, %c0_37] : memref<9x32x32xbf16, #tpu.memory_space<vmem>>, vector<1x32x32xbf16>
    %60 = vector.shape_cast %59 : vector<1x32x32xbf16> to vector<32x32xbf16>
    %61 = arith.extf %60 : vector<32x32xbf16> to vector<32x32xf32>
    %cst_38 = arith.constant dense<0.000000e+00> : vector<32x256xf32>
    %62 = tpu.matmul %61, %58, %cst_38 {dimension_numbers = #tpu.dot_dimension_numbers<[1], [0], [0], [1], [0, 0, 1, 1], [], []>} : vector<32x32xf32>, vector<32x256xf32>, vector<32x256xf32> -> vector<32x256xf32>
    %63 = arith.addf %56, %62 : vector<32x256xf32>
    %c0_39 = arith.constant 0 : index
    %c0_40 = arith.constant 0 : index
    %64 = vector.load %arg3[%c0_39, %c0_40] : memref<32x1xf32, #tpu.memory_space<vmem>>, vector<32x1xf32>
    %65 = vector.broadcast %64 : vector<32x1xf32> to vector<32x256xf32>
    %66 = arith.addf %63, %65 : vector<32x256xf32>
    %67 = arith.negf %66 : vector<32x256xf32>
    %68 = math.exp %67 : vector<32x256xf32>
    %cst_41 = arith.constant 1.000000e+00 : f32
    %69 = vector.broadcast %cst_41 : f32 to vector<32x256xf32>
    %70 = arith.addf %69, %68 : vector<32x256xf32>
    %71 = arith.divf %69, %70 : vector<32x256xf32>
    %72 = arith.mulf %66, %71 : vector<32x256xf32>
    %c0_42 = arith.constant 0 : index
    %c0_43 = arith.constant 0 : index
    %73 = vector.load %arg4[%c0_42, %c0_43] : memref<12x32xbf16, #tpu.memory_space<vmem>>, vector<12x32xbf16>
    %74 = arith.extf %73 : vector<12x32xbf16> to vector<12x32xf32>
    %cst_44 = arith.constant dense<0.000000e+00> : vector<12x256xf32>
    %75 = tpu.matmul %74, %72, %cst_44 {dimension_numbers = #tpu.dot_dimension_numbers<[1], [0], [0], [1], [0, 0, 1, 1], [], []>} : vector<12x32xf32>, vector<32x256xf32>, vector<12x256xf32> -> vector<12x256xf32>
    %c0_45 = arith.constant 0 : index
    %c0_46 = arith.constant 0 : index
    %76 = vector.load %arg5[%c0_45, %c0_46] : memref<12x1xf32, #tpu.memory_space<vmem>>, vector<12x1xf32>
    %77 = vector.broadcast %76 : vector<12x1xf32> to vector<12x256xf32>
    %78 = arith.addf %75, %77 : vector<12x256xf32>
    %c0_47 = arith.constant 0 : index
    %c0_48 = arith.constant 0 : index
    %79 = vector.load %arg6[%c0_47, %c0_48] : memref<12x256xf32, #tpu.memory_space<vmem>>, vector<12x256xf32>
    tpu.vector_store %arg6[%c0_47, %c0_48], %78 {strides = array<i32>} : memref<12x256xf32, #tpu.memory_space<vmem>>, vector<12x256xf32>,
    return
  }
  func.func @transform_0(%arg0: i32) -> (i32, i32) {
    %c0_i32 = arith.constant 0 : i32
    %c0_i32_0 = arith.constant 0 : i32
    %c0_i32_1 = arith.constant 0 : i32
    return %c0_i32, %c0_i32_0 : i32, i32
  }
  func.func @transform_1(%arg0: i32) -> (i32, i32, i32) {
    %c0_i32 = arith.constant 0 : i32
    %c0_i32_0 = arith.constant 0 : i32
    %c0_i32_1 = arith.constant 0 : i32
    %c0_i32_2 = arith.constant 0 : i32
    return %c0_i32, %c0_i32_0, %c0_i32_1 : i32, i32, i32
  }
  func.func @transform_2(%arg0: i32) -> (i32, i32) {
    %c0_i32 = arith.constant 0 : i32
    %c0_i32_0 = arith.constant 0 : i32
    %c0_i32_1 = arith.constant 0 : i32
    return %c0_i32, %c0_i32_0 : i32, i32
  }
  func.func @transform_3(%arg0: i32) -> (i32, i32) {
    %c0_i32 = arith.constant 0 : i32
    %c0_i32_0 = arith.constant 0 : i32
    %c0_i32_1 = arith.constant 0 : i32
    return %c0_i32, %c0_i32_0 : i32, i32
  }
  func.func @transform_4(%arg0: i32) -> (i32, i32) {
    %c0_i32 = arith.constant 0 : i32
    %c0_i32_0 = arith.constant 0 : i32
    %c0_i32_1 = arith.constant 0 : i32
    return %c0_i32, %c0_i32_0 : i32, i32
  }
  func.func @transform_5(%arg0: i32) -> (i32, i32) {
    %c0_i32 = arith.constant 0 : i32
    %c0_i32_0 = arith.constant 0 : i32
    %c0_i32_1 = arith.constant 0 : i32
    return %c0_i32, %c0_i32_0 : i32, i32
  }
}

</mosaic_0001>

<bundles_post_ra>
// kernel: refnet_forward.8
= control target key start
LH: loop header
LB: loop body
LE: loop exit
PB: predicated region body
PF: predicated region fallthrough
CT: control target
= control target key end

     0   :  { %s1464_s12 = smov 0   ;;  %s1466_s13 = smov 0   ;;  %s1745_s0 = inlined_call_operand.vmem [shape: bf16[32,4096], index: 0, kind: input, shape index: {}]   ;;  %s1746_s1 = inlined_call_operand.vmem [shape: bf16[8,32], index: 1, kind: input, shape index: {}]   ;;  %s1747_s2 = inlined_call_operand.vmem [shape: f32[8,1], index: 2, kind: input, shape index: {}]   ;;  %s1748_s3 = inlined_call_operand.vmem [shape: bf16[8,4096], index: 3, kind: output, shape index: {}]  }
   0x1   :  { %s1468_s14 = smov 0  }
   0x2 LB: > { %s1177_s15 = sadd.s32 4294967295, %s1440_s14   ;;  %s1481_s16 = sadd.s32 1, %s1440_s14   ;;  %s1440_s14 = sphi %s1468_s14, %s1751_s14   ;;  %s1436_s13 = sphi %s1466_s13, %s1750_s13   ;;  %s1432_s12 = sphi %s1464_s12, %s1749_s12  }
   0x3   : > { %s17_s17 = ssub.s32 %s1440_s14, %s1481_s16  ;;  %s20_s18 = sadd.s32 1, %s1436_s13 }
   0x4   : > { %p18_p0 = scmp.eq.s32.totalorder %s17_s17, 0  ;;  %p27_p1 = scmp.ne.s32.totalorder %s1436_s13, %s1432_s12 }
   0x5   : > { %p28_p2 = scmp.eq.s32.totalorder %s1440_s14, 0  ;;  %p1180_p4 = scmp.ge.s32.totalorder %s1440_s14, 2 }
   0x6   : > { %s1490_s19 = scalar_select %p18_p0, %s1436_s13, %s20_s18  }
   0x7   : > { %p29_p3 = por %p28_p2, %p27_p1  ;;  %127 = sbr.rel (%p1180_p4) target bundleno = 34 (0x22), region = 24 }
   0xe   : > { %130 = sbr.rel (!%p29_p3) target bundleno = 34 (0x22), region = 28  ;;  %s132_s20 = sand.u32 (%p29_p3), 1, %s1436_s13  }
   0xf   : > { %s1222_s21 = sshll.u32 (%p29_p3), %s1440_s14, 6  ;;  %s1181_s22 = sshll.u32 (%p29_p3), %s132_s20, 8 }
  0x10   : > { %s1498_s25 = scalar_lea.vmem (%p29_p3), %s1745_s0, %s1222_s21  ;;  %s1503_s26 = scalar_lea.vmem (%p29_p3), [#allocation2], %s1181_s22 }
  0x11   : > { %v150_v0 = vld [vmem:[%s1498_s25] sm:$0xff] (%p29_p3)  ;;  %v152_v1 = vld [vmem:[%s1498_s25 + $0x8] sm:$0xff] (%p29_p3)  ;;  %v154_v2 = vld [vmem:[%s1498_s25 + $0x10] sm:$0xff] (%p29_p3) }
  0x12   : > { %151 = vst [vmem:[%s1503_s26] sm:$0xff] (%p29_p3), %v150_v0  ;;  %153 = vst [vmem:[%s1503_s26 + $0x8] sm:$0xff] (%p29_p3), %v152_v1  ;;  %v156_v3 = vld [vmem:[%s1498_s25 + $0x18] sm:$0xff] (%p29_p3)  ;;  %v158_v4 = vld [vmem:[%s1498_s25 + $0x20] sm:$0xff] (%p29_p3) }
  0x13   : > { %155 = vst [vmem:[%s1503_s26 + $0x10] sm:$0xff] (%p29_p3), %v154_v2  ;;  %v160_v5 = vld [vmem:[%s1498_s25 + $0x28] sm:$0xff] (%p29_p3)  ;;  %157 = vst [vmem:[%s1503_s26 + $0x18] sm:$0xff] (%p29_p3), %v156_v3  ;;  %v162_v6 = vld [vmem:[%s1498_s25 + $0x30] sm:$0xff] (%p29_p3) }
  0x14   : > { %159 = vst [vmem:[%s1503_s26 + $0x20] sm:$0xff] (%p29_p3), %v158_v4  ;;  %161 = vst [vmem:[%s1503_s26 + $0x28] sm:$0xff] (%p29_p3), %v160_v5  ;;  %v164_v7 = vld [vmem:[%s1498_s25 + $0x38] sm:$0xff] (%p29_p3)  ;;  %v166_v8 = vld [vmem:[%s1498_s25 + $0x80] sm:$0xff] (%p29_p3) }
  0x15   : > { %163 = vst [vmem:[%s1503_s26 + $0x30] sm:$0xff] %v162_v6  ;;  %165 = vst [vmem:[%s1503_s26 + $0x38] sm:$0xff] %v164_v7  ;;  %v168_v9 = vld [vmem:[%s1498_s25 + $0x88] sm:$0xff]  ;;  %v170_v10 = vld [vmem:[%s1498_s25 + $0x90] sm:$0xff] }
  0x16   : > { %167 = vst [vmem:[%s1503_s26 + $0x40] sm:$0xff] %v166_v8  ;;  %v172_v11 = vld [vmem:[%s1498_s25 + $0x98] sm:$0xff]  ;;  %169 = vst [vmem:[%s1503_s26 + $0x48] sm:$0xff] %v168_v9  ;;  %v174_v12 = vld [vmem:[%s1498_s25 + $0xa0] sm:$0xff] }
  0x17   : > { %171 = vst [vmem:[%s1503_s26 + $0x50] sm:$0xff] %v170_v10  ;;  %173 = vst [vmem:[%s1503_s26 + $0x58] sm:$0xff] %v172_v11  ;;  %v176_v13 = vld [vmem:[%s1498_s25 + $0xa8] sm:$0xff]  ;;  %v178_v14 = vld [vmem:[%s1498_s25 + $0xb0] sm:$0xff] }
  0x18   : > { %175 = vst [vmem:[%s1503_s26 + $0x60] sm:$0xff] %v174_v12  ;;  %177 = vst [vmem:[%s1503_s26 + $0x68] sm:$0xff] %v176_v13  ;;  %v180_v15 = vld [vmem:[%s1498_s25 + $0xb8] sm:$0xff]  ;;  %v182_v16 = vld [vmem:[%s1498_s25 + $0x100] sm:$0xff] }
  0x19   : > { %179 = vst [vmem:[%s1503_s26 + $0x70] sm:$0xff] %v178_v14  ;;  %v184_v17 = vld [vmem:[%s1498_s25 + $0x108] sm:$0xff]  ;;  %181 = vst [vmem:[%s1503_s26 + $0x78] sm:$0xff] %v180_v15  ;;  %v186_v18 = vld [vmem:[%s1498_s25 + $0x110] sm:$0xff] }
  0x1a   : > { %183 = vst [vmem:[%s1503_s26 + $0x80] sm:$0xff] %v182_v16  ;;  %185 = vst [vmem:[%s1503_s26 + $0x88] sm:$0xff] %v184_v17  ;;  %v188_v19 = vld [vmem:[%s1498_s25 + $0x118] sm:$0xff]  ;;  %v190_v20 = vld [vmem:[%s1498_s25 + $0x120] sm:$0xff] }
  0x1b   : > { %187 = vst [vmem:[%s1503_s26 + $0x90] sm:$0xff] %v186_v18  ;;  %189 = vst [vmem:[%s1503_s26 + $0x98] sm:$0xff] %v188_v19  ;;  %v192_v21 = vld [vmem:[%s1498_s25 + $0x128] sm:$0xff]  ;;  %v194_v22 = vld [vmem:[%s1498_s25 + $0x130] sm:$0xff] }
  0x1c   : > { %191 = vst [vmem:[%s1503_s26 + $0xa0] sm:$0xff] %v190_v20  ;;  %v196_v23 = vld [vmem:[%s1498_s25 + $0x138] sm:$0xff]  ;;  %193 = vst [vmem:[%s1503_s26 + $0xa8] sm:$0xff] %v192_v21  ;;  %v198_v24 = vld [vmem:[%s1498_s25 + $0x180] sm:$0xff] }
  0x1d   : > { %195 = vst [vmem:[%s1503_s26 + $0xb0] sm:$0xff] %v194_v22  ;;  %197 = vst [vmem:[%s1503_s26 + $0xb8] sm:$0xff] %v196_v23  ;;  %v200_v25 = vld [vmem:[%s1498_s25 + $0x188] sm:$0xff]  ;;  %v202_v26 = vld [vmem:[%s1498_s25 + $0x190] sm:$0xff] }
  0x1e   : > { %199 = vst [vmem:[%s1503_s26 + $0xc0] sm:$0xff] %v198_v24  ;;  %201 = vst [vmem:[%s1503_s26 + $0xc8] sm:$0xff] %v200_v25  ;;  %v204_v27 = vld [vmem:[%s1498_s25 + $0x198] sm:$0xff]  ;;  %v206_v28 = vld [vmem:[%s1498_s25 + $0x1a0] sm:$0xff] }
  0x1f   : > { %203 = vst [vmem:[%s1503_s26 + $0xd0] sm:$0xff] %v202_v26  ;;  %v208_v29 = vld [vmem:[%s1498_s25 + $0x1a8] sm:$0xff]  ;;  %205 = vst [vmem:[%s1503_s26 + $0xd8] sm:$0xff] %v204_v27  ;;  %v210_v30 = vld [vmem:[%s1498_s25 + $0x1b0] sm:$0xff] }
  0x20   : > { %207 = vst [vmem:[%s1503_s26 + $0xe0] sm:$0xff] %v206_v28  ;;  %209 = vst [vmem:[%s1503_s26 + $0xe8] sm:$0xff] %v208_v29  ;;  %v212_v31 = vld [vmem:[%s1498_s25 + $0x1b8] sm:$0xff] }
  0x21   : > { %211 = vst [vmem:[%s1503_s26 + $0xf0] sm:$0xff] %v210_v30  ;;  %213 = vst [vmem:[%s1503_s26 + $0xf8] sm:$0xff] %v212_v31 }
  0x22 PF: > { %p1184_p5 = scmp.ge.s32.totalorder %s1440_s14, 1  ;;  %p218_p6 = scmp.lt.s32.totalorder %s1440_s14, 3 }
  0x24   : > { %p219_p7 = pnand %p1184_p5, %p218_p6 }
  0x25   : > { %s225_s27 = sand.u32 (!%p219_p7), 1, %s1432_s12   ;;  %v1442_v32 = vmov (!%p219_p7), 0.0   ;;  %v353_v33 = vld [vmem:[%s1747_s2] sm:$0xff] (!%p219_p7)  ;;  %v1443_v34 = vmov (!%p219_p7), 0   ;;  %vm359_vm0 = vcmask (!%p219_p7), 261120   ;;  %s1186_s7 = sshll.u32 (!%p219_p7), %s1177_s15, 4 }
  0x26   : > { %222 = sbr.rel (%p219_p7) target bundleno = 325 (0x145), region = 51  ;;  %s1185_s28 = sshll.u32 (!%p219_p7), %s225_s27, 8  ;;  %427 = vmatprep.mubr.f32.mxu0 (!%p219_p7), %v1442_v32  ;;  %498 = vmatprep.mubr.f32.mxu1 (!%p219_p7), %v1442_v32  ;;  %v255_v54 = vld [vmem:[%s1746_s1] sm:$0xf] (!%p219_p7) }
  0x27   : > { %1353 = vset.pattern.permute.xlu0 (!%p219_p7), %v1443_v34  ;;  %s1574_s4 = scalar_lea.vmem (!%p219_p7), [#allocation2], %s1185_s28  ;;  %v1593_v60 = vunpack.c.l.bf16 (!%p219_p7), %v255_v54  ;;  %p250_p8 = scmp.lt.s32.totalorder (!%p219_p7), %s1186_s7, 31 }
  0x28   : > { %v257_v35 = vld [vmem:[%s1574_s4] sm:$0xff] (!%p219_p7)  ;;  %v258_v37 = vld [vmem:[%s1574_s4 + $0x8] sm:$0xff] (!%p219_p7)  ;;  %356 = vperm.xlu0 (!%p219_p7), %1353, %v353_v33   ;;  %v259_v48 = vld [vmem:[%s1574_s4 + $0x10] sm:$0xff] (!%p219_p7) }
  0x29   : > { %v265_v36 = vld [vmem:[%s1574_s4 + $0x40] sm:$0xff] (!%p219_p7)  ;;  %v266_v39 = vld [vmem:[%s1574_s4 + $0x48] sm:$0xff] (!%p219_p7)  ;;  %v267_v50 = vld [vmem:[%s1574_s4 + $0x50] sm:$0xff] (!%p219_p7) }
  0x2a   : > { %v1295_v38 = vcombine.high (!%p219_p7), %v257_v35, %v265_v36  ;;  %v1296_v40 = vcombine.low (!%p219_p7), %v257_v35, %v265_v36  ;;  %v273_v41 = vld [vmem:[%s1574_s4 + $0x80] sm:$0xff] (!%p219_p7)  ;;  %v1299_v43 = vcombine.high (!%p219_p7), %v258_v37, %v266_v39  ;;  %v1300_v44 = vcombine.low (!%p219_p7), %v258_v37, %v266_v39  ;;  %v274_v46 = vld [vmem:[%s1574_s4 + $0x88] sm:$0xff] (!%p219_p7)  ;;  %v260_v51 = vld [vmem:[%s1574_s4 + $0x18] sm:$0xff] (!%p219_p7) }
  0x2b   : > { %v281_v42 = vld [vmem:[%s1574_s4 + $0xc0] sm:$0xff] (!%p219_p7)  ;;  %v282_v47 = vld [vmem:[%s1574_s4 + $0xc8] sm:$0xff] (!%p219_p7)  ;;  %v268_v52 = vld [vmem:[%s1574_s4 + $0x58] sm:$0xff] (!%p219_p7)  ;;  %v1303_v56 = vcombine.high (!%p219_p7), %v259_v48, %v267_v50  ;;  %v1304_v63 = vcombine.low (!%p219_p7), %v259_v48, %v267_v50 }
  0x2c   : > { %v1297_v45 = vcombine.high (!%p219_p7), %v273_v41, %v281_v42  ;;  %1232 = vmatprep.subr.bf16.mxu0 (!%p219_p7), %v1295_v38  ;;  %v1301_v49 = vcombine.high (!%p219_p7), %v274_v46, %v282_v47  ;;  %1240 = vmatprep.subr.bf16.mxu1 (!%p219_p7), %v1299_v43  ;;  %v1298_v53 = vcombine.low (!%p219_p7), %v273_v41, %v281_v42  ;;  %v275_v58 = vld [vmem:[%s1574_s4 + $0x90] sm:$0xff] (!%p219_p7)  ;;  %v276_v61 = vld [vmem:[%s1574_s4 + $0x98] sm:$0xff] (!%p219_p7)  ;;  %v261_v3 = vld [vmem:[%s1574_s4 + $0x20] sm:$0xff] (!%p219_p7) }
  0x2d   : > { %1234 = vmatpush1.bf16.msra.mxu0 %v1296_v40  ;;  %1242 = vmatpush1.bf16.msra.mxu1 %v1300_v44  ;;  %v1302_v55 = vcombine.low %v274_v46, %v282_v47  ;;  %v1307_v57 = vcombine.high %v260_v51, %v268_v52  ;;  %v283_v59 = vld [vmem:[%s1574_s4 + $0xd0] sm:$0xff]  ;;  %v284_v62 = vld [vmem:[%s1574_s4 + $0xd8] sm:$0xff]  ;;  %v1308_v0 = vcombine.low %v260_v51, %v268_v52  ;;  %v269_v4 = vld [vmem:[%s1574_s4 + $0x60] sm:$0xff]  ;;  %s1753_s7 = smov (!%p250_p8, %s1186_s7), 31 }
  0x2e   : > { %1236 = vmatprep.subr.bf16.mxu0 %v1297_v45  ;;  %1244 = vmatprep.subr.bf16.mxu1 %v1301_v49  ;;  %v1305_v1 = vcombine.high %v275_v58, %v283_v59  ;;  %v1309_v2 = vcombine.high %v276_v61, %v284_v62  ;;  %v262_v5 = vld [vmem:[%s1574_s4 + $0x28] sm:$0xff]  ;;  %v1306_v7 = vcombine.low %v275_v58, %v283_v59  ;;  %v277_v11 = vld [vmem:[%s1574_s4 + $0xa0] sm:$0xff]  ;;  %v263_v19 = vld [vmem:[%s1574_s4 + $0x30] sm:$0xff]  ;;  %s1187_s8 = sshll.u32 %s1753_s7, 2 }
  0x2f   : > { %v270_v6 = vld [vmem:[%s1574_s4 + $0x68] sm:$0xff]  ;;  %v1310_v8 = vcombine.low %v276_v61, %v284_v62  ;;  %v1311_v9 = vcombine.high %v261_v3, %v269_v4  ;;  %v285_v12 = vld [vmem:[%s1574_s4 + $0xe0] sm:$0xff]  ;;  %v1312_v15 = vcombine.low %v261_v3, %v269_v4  ;;  %v271_v20 = vld [vmem:[%s1574_s4 + $0x70] sm:$0xff]  ;;  %s1712_s11 = scalar_lea.vmem %s1748_s3, %s1187_s8 }
  0x30   : > { %v1315_v10 = vcombine.high %v262_v5, %v270_v6  ;;  %v278_v13 = vld [vmem:[%s1574_s4 + $0xa8] sm:$0xff]  ;;  %v1316_v16 = vcombine.low %v262_v5, %v270_v6  ;;  %v1313_v17 = vcombine.high %v277_v11, %v285_v12  ;;  %v264_v21 = vld [vmem:[%s1574_s4 + $0x38] sm:$0xff]  ;;  %v1314_v23 = vcombine.low %v277_v11, %v285_v12  ;;  %v279_v27 = vld [vmem:[%s1574_s4 + $0xb0] sm:$0xff] }
  0x31   : > { %1238 = vmatpush1.bf16.msra.mxu0 %v1298_v53  ;;  %1246 = vmatpush1.bf16.msra.mxu1 %v1302_v55  ;;  %v286_v14 = vld [vmem:[%s1574_s4 + $0xe8] sm:$0xff]  ;;  %v272_v22 = vld [vmem:[%s1574_s4 + $0x78] sm:$0xff]  ;;  %v1319_v25 = vcombine.high %v263_v19, %v271_v20  ;;  %v287_v28 = vld [vmem:[%s1574_s4 + $0xf0] sm:$0xff]  ;;  %v1320_v31 = vcombine.low %v263_v19, %v271_v20 }
  0x32   : > { %1248 = vmatprep.subr.bf16.mxu0 %v1303_v56  ;;  %1256 = vmatprep.subr.bf16.mxu1 %v1307_v57  ;;  %v1317_v18 = vcombine.high %v278_v13, %v286_v14  ;;  %v1318_v24 = vcombine.low %v278_v13, %v286_v14  ;;  %v1323_v26 = vcombine.high %v264_v21, %v272_v22  ;;  %v280_v29 = vld [vmem:[%s1574_s4 + $0xb8] sm:$0xff] }
  0x33   : > { %v288_v30 = vld [vmem:[%s1574_s4 + $0xf8] sm:$0xff]  ;;  %v1324_v33 = vcombine.low %v264_v21, %v272_v22  ;;  %v1321_v34 = vcombine.high %v279_v27, %v287_v28  ;;  %v1322_v36 = vcombine.low %v279_v27, %v287_v28 }
  0x34   : > { %1188 = vmatmul.mubr.msk.f32.vlgmr.msra.gmra.mrb[0].mxu0 %vm359_vm0, %v1593_v60  ;;  %1189 = vmatmul.mubr.msk.f32.vlgmr.msra.gmra.mrb[0].mxu1 %vm359_vm0, %v1593_v60  ;;  %v1325_v35 = vcombine.high %v280_v29, %v288_v30  ;;  %v1326_v37 = vcombine.low %v280_v29, %v288_v30 }
  0x35   : > { %1250 = vmatpush1.bf16.msra.mxu0 %v1304_v63  ;;  %1258 = vmatpush1.bf16.msra.mxu1 %v1308_v0 }
  0x36   : > { %1252 = vmatprep.subr.bf16.mxu0 %v1305_v1  ;;  %1260 = vmatprep.subr.bf16.mxu1 %v1309_v2 }
  0x37   : > { %569 = vmatprep.mubr.f32.mxu0 %v1442_v32  ;;  %640 = vmatprep.mubr.f32.mxu1 %v1442_v32 }
  0x39   : > { %1254 = vmatpush1.bf16.msra.mxu0 %v1306_v7  ;;  %1262 = vmatpush1.bf16.msra.mxu1 %v1310_v8 }
  0x3a   : > { %1264 = vmatprep.subr.bf16.mxu0 %v1311_v9  ;;  %1272 = vmatprep.subr.bf16.mxu1 %v1315_v10 }
  0x3c   : > { %1190 = vmatmul.mubr.msk.f32.vlgmr.msra.gmra.mrb[2].mxu0 %vm359_vm0, %v1593_v60  ;;  %1191 = vmatmul.mubr.msk.f32.vlgmr.msra.gmra.mrb[2].mxu1 %vm359_vm0, %v1593_v60 }
  0x3d   : > { %1266 = vmatpush1.bf16.msra.mxu0 %v1312_v15  ;;  %1274 = vmatpush1.bf16.msra.mxu1 %v1316_v16 }
  0x3e   : > { %1268 = vmatprep.subr.bf16.mxu0 %v1313_v17  ;;  %1276 = vmatprep.subr.bf16.mxu1 %v1317_v18 }
  0x3f   : > { %711 = vmatprep.mubr.f32.mxu0 %v1442_v32  ;;  %782 = vmatprep.mubr.f32.mxu1 %v1442_v32 }
  0x41   : > { %1270 = vmatpush1.bf16.msra.mxu0 %v1314_v23  ;;  %1278 = vmatpush1.bf16.msra.mxu1 %v1318_v24 }
  0x42   : > { %1280 = vmatprep.subr.bf16.mxu0 %v1319_v25  ;;  %1288 = vmatprep.subr.bf16.mxu1 %v1323_v26 }
  0x44   : > { %1192 = vmatmul.mubr.msk.f32.vlgmr.msra.gmra.mrb[4].mxu0 %vm359_vm0, %v1593_v60  ;;  %1193 = vmatmul.mubr.msk.f32.vlgmr.msra.gmra.mrb[4].mxu1 %vm359_vm0, %v1593_v60 }
  0x45   : > { %1282 = vmatpush1.bf16.msra.mxu0 %v1320_v31  ;;  %1290 = vmatpush1.bf16.msra.mxu1 %v1324_v33 }
  0x46   : > { %1284 = vmatprep.subr.bf16.mxu0 %v1321_v34  ;;  %1292 = vmatprep.subr.bf16.mxu1 %v1325_v35 }
  0x47   : > { %853 = vmatprep.mubr.f32.mxu0 %v1442_v32  ;;  %924 = vmatprep.mubr.f32.mxu1 %v1442_v32 }
  0x49   : > { %1286 = vmatpush1.bf16.msra.mxu0 %v1322_v36  ;;  %1294 = vmatpush1.bf16.msra.mxu1 %v1326_v37 }
  0x4c   : > { %1194 = vmatmul.mubr.msk.f32.vlgmr.msra.gmra.mrb[6].mxu0 %vm359_vm0, %v1593_v60  ;;  %1195 = vmatmul.mubr.msk.f32.vlgmr.msra.gmra.mrb[6].mxu1 %vm359_vm0, %v1593_v60 }
  0xa7   : > { %v1635_v38 = vpop.permute.xlu0 %356 }
 0x107   : > { %v429_v39 = vpop.f32.mrb[0].mxu0  ;;  %v500_v41 = vpop.f32.mrb[0].mxu1 }
 0x108   : > { %v1638_v40 = vadd.f32 %v429_v39, %v1635_v38  ;;  %v431_v42 = vpop.f32.mrb[1].mxu0  ;;  %v1641_v43 = vadd.f32 %v500_v41, %v1635_v38  ;;  %v502_v44 = vpop.f32.mrb[1].mxu1 }
 0x109   : > { %v1644_v32 = vadd.f32 %v431_v42, %v1635_v38  ;;  %v1648_v46 = vadd.f32 %v502_v44, %v1635_v38 }
 0x10a   : > { %v1196_v45 = vmul.f32 -1.442695, %v1638_v40  ;;  %v1198_v47 = vmul.f32 -1.442695, %v1641_v43 }
 0x10b   : > { %v1197_v48 = vmul.f32 -1.442695, %v1644_v32  ;;  %v1199_v49 = vmul.f32 -1.442695, %v1648_v46 }
 0x10c   : > { %1354 = vpow2.f32 %v1196_v45 }
 0x10d   : > { %1356 = vpow2.f32 %v1198_v47 }
 0x10e   : > { %1358 = vpow2.f32 %v1197_v48 }
 0x10f   : > { %1360 = vpow2.f32 %v1199_v49  ;;  %v571_v50 = vpop.f32.mrb[2].mxu0  ;;  %v642_v52 = vpop.f32.mrb[2].mxu1 }
 0x110   : > { %v1654_v51 = vadd.f32 %v571_v50, %v1635_v38  ;;  %v573_v53 = vpop.f32.mrb[3].mxu0  ;;  %v1657_v54 = vadd.f32 %v642_v52, %v1635_v38  ;;  %v644_v56 = vpop.f32.mrb[3].mxu1 }
 0x111   : > { %v1660_v55 = vadd.f32 %v573_v53, %v1635_v38  ;;  %v1664_v58 = vadd.f32 %v644_v56, %v1635_v38 }
 0x112   : > { %v1200_v57 = vmul.f32 -1.442695, %v1654_v51  ;;  %v1202_v59 = vmul.f32 -1.442695, %v1657_v54 }
 0x113   : > { %v1201_v60 = vmul.f32 -1.442695, %v1660_v55  ;;  %v1203_v61 = vmul.f32 -1.442695, %v1664_v58 }
 0x114   : > { %1362 = vpow2.f32 %v1200_v57 }
 0x115   : > { %1364 = vpow2.f32 %v1202_v59 }
 0x116   : > { %v1355_v62 = vpop.eup %1354  ;;  %1366 = vpow2.f32 %v1201_v60 }
 0x117   : > { %v1357_v63 = vpop.eup %1356  ;;  %v979_v0 = vadd.f32 1.0, %v1355_v62  ;;  %1368 = vpow2.f32 %v1203_v61  ;;  %v713_v1 = vpop.f32.mrb[4].mxu0 }
 0x118   : > { %v1359_v2 = vpop.eup %1358  ;;  %v981_v3 = vadd.f32 1.0, %v1357_v63  ;;  %v1670_v4 = vadd.f32 %v713_v1, %v1635_v38  ;;  %v784_v5 = vpop.f32.mrb[4].mxu1 }
 0x119   : > { %v715_v6 = vpop.f32.mrb[5].mxu0  ;;  %v1361_v7 = vpop.eup %1360  ;;  %1370 = vrcp.f32 %v979_v0  ;;  %v980_v8 = vadd.f32 1.0, %v1359_v2  ;;  %v1675_v9 = vadd.f32 %v784_v5, %v1635_v38 }
 0x11a   : > { %v1678_v10 = vadd.f32 %v715_v6, %v1635_v38  ;;  %v786_v11 = vpop.f32.mrb[5].mxu1  ;;  %1372 = vrcp.f32 %v981_v3  ;;  %v982_v12 = vadd.f32 1.0, %v1361_v7  ;;  %v1204_v13 = vmul.f32 -1.442695, %v1670_v4 }
 0x11b   : > { %v1682_v14 = vadd.f32 %v786_v11, %v1635_v38  ;;  %1374 = vrcp.f32 %v980_v8  ;;  %v1206_v15 = vmul.f32 -1.442695, %v1675_v9 }
 0x11c   : > { %v1205_v16 = vmul.f32 -1.442695, %v1678_v10  ;;  %1376 = vrcp.f32 %v982_v12 }
 0x11d   : > { %v1207_v17 = vmul.f32 -1.442695, %v1682_v14  ;;  %1378 = vpow2.f32 %v1204_v13 }
 0x11e   : > { %v1363_v18 = vpop.eup %1362  ;;  %1380 = vpow2.f32 %v1206_v15 }
 0x11f   : > { %v1365_v19 = vpop.eup %1364  ;;  %v983_v20 = vadd.f32 1.0, %v1363_v18  ;;  %1382 = vpow2.f32 %v1205_v16  ;;  %v855_v21 = vpop.f32.mrb[6].mxu0 }
 0x120   : > { %v1367_v22 = vpop.eup %1366  ;;  %v985_v23 = vadd.f32 1.0, %v1365_v19  ;;  %1384 = vpow2.f32 %v1207_v17  ;;  %v1690_v24 = vadd.f32 %v855_v21, %v1635_v38  ;;  %v926_v25 = vpop.f32.mrb[6].mxu1 }
 0x121   : > { %v857_v26 = vpop.f32.mrb[7].mxu0  ;;  %v1369_v27 = vpop.eup %1368  ;;  %1386 = vrcp.f32 %v983_v20  ;;  %v984_v28 = vadd.f32 1.0, %v1367_v22  ;;  %v1693_v29 = vadd.f32 %v926_v25, %v1635_v38 }
 0x122   : > { %v1696_v30 = vadd.f32 %v857_v26, %v1635_v38  ;;  %v928_v31 = vpop.f32.mrb[7].mxu1  ;;  %1388 = vrcp.f32 %v985_v23  ;;  %v986_v33 = vadd.f32 1.0, %v1369_v27  ;;  %v1208_v34 = vmul.f32 -1.442695, %v1690_v24 }
 0x123   : > { %v1700_v35 = vadd.f32 %v928_v31, %v1635_v38  ;;  %v1371_v36 = vpop.eup %1370  ;;  %1390 = vrcp.f32 %v984_v28  ;;  %v1210_v37 = vmul.f32 -1.442695, %v1693_v29 }
 0x124   : > { %v1209_v39 = vmul.f32 -1.442695, %v1696_v30  ;;  %v1373_v41 = vpop.eup %1372  ;;  %v1027_v42 = vmul.f32 %v1371_v36, %v1638_v40  ;;  %1392 = vrcp.f32 %v986_v33 }
 0x125   : > { %v1211_v44 = vmul.f32 -1.442695, %v1700_v35  ;;  %v1375_v45 = vpop.eup %1374  ;;  %v1029_v47 = vmul.f32 %v1373_v41, %v1641_v43  ;;  %1394 = vpow2.f32 %v1208_v34 }
 0x126   : > { %v1377_v48 = vpop.eup %1376  ;;  %v1028_v38 = vmul.f32 %v1375_v45, %v1644_v32  ;;  %1396 = vpow2.f32 %v1210_v37 }
 0x127   : > { %v1379_v49 = vpop.eup %1378  ;;  %v1030_v40 = vmul.f32 %v1377_v48, %v1648_v46  ;;  %1398 = vpow2.f32 %v1209_v39 }
 0x128   : > { %v1381_v50 = vpop.eup %1380  ;;  %v1223_v52 = vpack.c.bf16 %v1028_v38, %v1027_v42  ;;  %v987_v53 = vadd.f32 1.0, %v1379_v49  ;;  %1400 = vpow2.f32 %v1211_v44 }
 0x129   : > { %v1383_v43 = vpop.eup %1382  ;;  %v1224_v56 = vpack.c.bf16 %v1030_v40, %v1029_v47  ;;  %v989_v57 = vadd.f32 1.0, %v1381_v50 }
 0x12a   : > { %v1385_v32 = vpop.eup %1384  ;;  %1107 = vst [vmem:[%s1712_s11] sm:$0xff] %v1223_v52  ;;  %1402 = vrcp.f32 %v987_v53  ;;  %v988_v59 = vadd.f32 1.0, %v1383_v43 }
 0x12b   : > { %v1387_v60 = vpop.eup %1386  ;;  %1108 = vst [vmem:[%s1712_s11 + $0x8] sm:$0xff] %v1224_v56  ;;  %1404 = vrcp.f32 %v989_v57  ;;  %v990_v61 = vadd.f32 1.0, %v1385_v32 }
 0x12c   : > { %v1389_v62 = vpop.eup %1388  ;;  %v1031_v63 = vmul.f32 %v1387_v60, %v1654_v51  ;;  %1406 = vrcp.f32 %v988_v59 }
 0x12d   : > { %v1391_v46 = vpop.eup %1390  ;;  %v1033_v0 = vmul.f32 %v1389_v62, %v1657_v54  ;;  %1408 = vrcp.f32 %v990_v61 }
 0x12e   : > { %v1393_v1 = vpop.eup %1392  ;;  %v1032_v2 = vmul.f32 %v1391_v46, %v1660_v55 }
 0x12f   : > { %v1395_v3 = vpop.eup %1394  ;;  %v1034_v5 = vmul.f32 %v1393_v1, %v1664_v58 }
 0x130   : > { %v1397_v6 = vpop.eup %1396  ;;  %v1225_v7 = vpack.c.bf16 %v1032_v2, %v1031_v63  ;;  %v991_v8 = vadd.f32 1.0, %v1395_v3 }
 0x131   : > { %v1399_v11 = vpop.eup %1398  ;;  %v1226_v12 = vpack.c.bf16 %v1034_v5, %v1033_v0  ;;  %v993_v13 = vadd.f32 1.0, %v1397_v6 }
 0x132   : > { %v1401_v51 = vpop.eup %1400  ;;  %1109 = vst [vmem:[%s1712_s11 + $0x10] sm:$0xff] %v1225_v7  ;;  %1410 = vrcp.f32 %v991_v8  ;;  %v992_v15 = vadd.f32 1.0, %v1399_v11 }
 0x133   : > { %1110 = vst [vmem:[%s1712_s11 + $0x18] sm:$0xff] %v1226_v12  ;;  %1412 = vrcp.f32 %v993_v13  ;;  %v994_v54 = vadd.f32 1.0, %v1401_v51 }
 0x134   : > { %v1403_v16 = vpop.eup %1402  ;;  %1414 = vrcp.f32 %v992_v15 }
 0x135   : > { %v1405_v55 = vpop.eup %1404  ;;  %v1035_v58 = vmul.f32 %v1403_v16, %v1670_v4  ;;  %1416 = vrcp.f32 %v994_v54 }
 0x136   : > { %v1407_v17 = vpop.eup %1406  ;;  %v1037_v18 = vmul.f32 %v1405_v55, %v1675_v9 }
 0x137   : > { %v1409_v19 = vpop.eup %1408  ;;  %v1036_v20 = vmul.f32 %v1407_v17, %v1678_v10 }
 0x138   : > { %v1038_v21 = vmul.f32 %v1409_v19, %v1682_v14 }
 0x139   : > { %v1227_v22 = vpack.c.bf16 %v1036_v20, %v1035_v58 }
 0x13a   : > { %v1228_v23 = vpack.c.bf16 %v1038_v21, %v1037_v18 }
 0x13b   : > { %1111 = vst [vmem:[%s1712_s11 + $0x20] sm:$0xff] %v1227_v22 }
 0x13c   : > { %v1411_v25 = vpop.eup %1410  ;;  %1112 = vst [vmem:[%s1712_s11 + $0x28] sm:$0xff] %v1228_v23 }
 0x13d   : > { %v1413_v26 = vpop.eup %1412  ;;  %v1039_v27 = vmul.f32 %v1411_v25, %v1690_v24 }
 0x13e   : > { %v1415_v4 = vpop.eup %1414  ;;  %v1041_v28 = vmul.f32 %v1413_v26, %v1693_v29 }
 0x13f   : > { %v1417_v31 = vpop.eup %1416  ;;  %v1040_v9 = vmul.f32 %v1415_v4, %v1696_v30 }
 0x140   : > { %v1042_v10 = vmul.f32 %v1417_v31, %v1700_v35 }
 0x141   : > { %v1229_v33 = vpack.c.bf16 %v1040_v9, %v1039_v27 }
 0x142   : > { %v1230_v34 = vpack.c.bf16 %v1042_v10, %v1041_v28 }
 0x143   : > { %1113 = vst [vmem:[%s1712_s11 + $0x30] sm:$0xff] %v1229_v33 }
 0x144   : > { %1114 = vst [vmem:[%s1712_s11 + $0x38] sm:$0xff] %v1230_v34 }
 0x145 PF: > { %p10_p9 = scmp.ge.s32.totalorder %s1481_s16, 4   ;;  %s1749_s12 = smov %s1436_s13 }
 0x146   : > { %s1750_s13 = smov %s1490_s19  ;;  %s1751_s14 = smov %s1481_s16 }
 0x147   :  { %12 = sbr.rel (!%p10_p9) target bundleno = 2 (0x2), region = 90 }

// kernel: refnet_forward.9
= control target key start
LH: loop header
LB: loop body
LE: loop exit
PB: predicated region body
PF: predicated region fallthrough
CT: control target
= control target key end

     0   :  { %s871_s12 = smov 0   ;;  %s873_s13 = smov 0   ;;  %s1010_s0 = inlined_call_operand.vmem [shape: bf16[80,1024], index: 0, kind: input, shape index: {}]   ;;  %s1011_s1 = inlined_call_operand.vmem [shape: bf16[16,80], index: 1, kind: input, shape index: {}]   ;;  %s1012_s2 = inlined_call_operand.vmem [shape: f32[16,1], index: 2, kind: input, shape index: {}]   ;;  %s1013_s3 = inlined_call_operand.vmem [shape: bf16[16,1024], index: 3, kind: output, shape index: {}]  }
   0x1   :  { %s875_s14 = smov 0  }
   0x2 LB: > { %s635_s15 = sadd.s32 4294967295, %s847_s14   ;;  %s888_s16 = sadd.s32 1, %s847_s14   ;;  %s847_s14 = sphi %s875_s14, %s1017_s14   ;;  %s843_s13 = sphi %s873_s13, %s1016_s13   ;;  %s839_s12 = sphi %s871_s12, %s1015_s12  }
   0x3   : > { %s17_s17 = ssub.s32 %s847_s14, %s888_s16  ;;  %s20_s18 = sadd.s32 1, %s843_s13 }
   0x4   : > { %p18_p0 = scmp.eq.s32.totalorder %s17_s17, 0  ;;  %p27_p1 = scmp.ne.s32.totalorder %s843_s13, %s839_s12 }
   0x5   : > { %p28_p2 = scmp.eq.s32.totalorder %s847_s14, 0  ;;  %p99_p3 = scmp.eq.s32.totalorder %s635_s15, 1 }
   0x6   : > { %s899_s19 = scalar_select %p18_p0, %s843_s13, %s20_s18  }
   0x7   : > { %p29_p4 = por %p28_p2, %p27_p1  ;;  %p901_p5 = por %p99_p3, %p27_p1 }
   0x8   : > { %p638_p6 = scmp.ge.s32.totalorder %s847_s14, 2 }
   0xa   : > { %127 = sbr.rel (%p638_p6) target bundleno = 31 (0x1f), region = 24 }
  0x11   : > { %130 = sbr.rel (!%p29_p4) target bundleno = 31 (0x1f), region = 28  ;;  %s132_s21 = sand.u32 (%p29_p4), 1, %s843_s13  }
  0x12   : > { %s664_s22 = sshll.u32 (%p29_p4), %s847_s14, 4  ;;  %s734_s23 = smul.u32 (%p29_p4), 160, %s132_s21 }
  0x13   : > { %s911_s26 = scalar_lea.vmem (%p29_p4), %s1010_s0, %s664_s22 }
  0x14   : > { %v150_v0 = vld [vmem:[%s911_s26] sm:$0xff] (%p29_p4)  ;;  %v152_v1 = vld [vmem:[%s911_s26 + $0x8] sm:$0xff] (%p29_p4)  ;;  %s919_s27 = scalar_lea.vmem (%p29_p4), [#allocation2], %s734_s23 }
  0x15   : > { %v154_v2 = vld [vmem:[%s911_s26 + $0x20] sm:$0xff] (%p29_p4)  ;;  %v156_v3 = vld [vmem:[%s911_s26 + $0x28] sm:$0xff] (%p29_p4)  ;;  %151 = vst [vmem:[%s919_s27] sm:$0xff] (%p29_p4), %v150_v0  ;;  %153 = vst [vmem:[%s919_s27 + $0x8] sm:$0xff] (%p29_p4), %v152_v1 }
  0x16   : > { %v158_v4 = vld [vmem:[%s911_s26 + $0x40] sm:$0xff] (%p29_p4)  ;;  %v160_v5 = vld [vmem:[%s911_s26 + $0x48] sm:$0xff] (%p29_p4)  ;;  %155 = vst [vmem:[%s919_s27 + $0x10] sm:$0xff] (%p29_p4), %v154_v2  ;;  %157 = vst [vmem:[%s919_s27 + $0x18] sm:$0xff] (%p29_p4), %v156_v3 }
  0x17   : > { %159 = vst [vmem:[%s919_s27 + $0x20] sm:$0xff] (%p29_p4), %v158_v4  ;;  %161 = vst [vmem:[%s919_s27 + $0x28] sm:$0xff] (%p29_p4), %v160_v5  ;;  %v162_v6 = vld [vmem:[%s911_s26 + $0x60] sm:$0xff] (%p29_p4)  ;;  %v164_v7 = vld [vmem:[%s911_s26 + $0x68] sm:$0xff] (%p29_p4) }
  0x18   : > { %v166_v8 = vld [vmem:[%s911_s26 + $0x80] sm:$0xff]  ;;  %163 = vst [vmem:[%s919_s27 + $0x30] sm:$0xff] %v162_v6  ;;  %165 = vst [vmem:[%s919_s27 + $0x38] sm:$0xff] %v164_v7  ;;  %v168_v9 = vld [vmem:[%s911_s26 + $0x88] sm:$0xff] }
  0x19   : > { %167 = vst [vmem:[%s919_s27 + $0x40] sm:$0xff] %v166_v8  ;;  %v170_v10 = vld [vmem:[%s911_s26 + $0xa0] sm:$0xff]  ;;  %v172_v11 = vld [vmem:[%s911_s26 + $0xa8] sm:$0xff]  ;;  %169 = vst [vmem:[%s919_s27 + $0x48] sm:$0xff] %v168_v9 }
  0x1a   : > { %171 = vst [vmem:[%s919_s27 + $0x50] sm:$0xff] %v170_v10  ;;  %173 = vst [vmem:[%s919_s27 + $0x58] sm:$0xff] %v172_v11  ;;  %v174_v12 = vld [vmem:[%s911_s26 + $0xc0] sm:$0xff]  ;;  %v176_v13 = vld [vmem:[%s911_s26 + $0xc8] sm:$0xff] }
  0x1b   : > { %v178_v14 = vld [vmem:[%s911_s26 + $0xe0] sm:$0xff]  ;;  %175 = vst [vmem:[%s919_s27 + $0x60] sm:$0xff] %v174_v12  ;;  %177 = vst [vmem:[%s919_s27 + $0x68] sm:$0xff] %v176_v13  ;;  %v180_v15 = vld [vmem:[%s911_s26 + $0xe8] sm:$0xff] }
  0x1c   : > { %179 = vst [vmem:[%s919_s27 + $0x70] sm:$0xff] %v178_v14  ;;  %v182_v16 = vld [vmem:[%s911_s26 + $0x100] sm:$0xff]  ;;  %v184_v17 = vld [vmem:[%s911_s26 + $0x108] sm:$0xff]  ;;  %181 = vst [vmem:[%s919_s27 + $0x78] sm:$0xff] %v180_v15 }
  0x1d   : > { %183 = vst [vmem:[%s919_s27 + $0x80] sm:$0xff] %v182_v16  ;;  %185 = vst [vmem:[%s919_s27 + $0x88] sm:$0xff] %v184_v17  ;;  %v186_v18 = vld [vmem:[%s911_s26 + $0x120] sm:$0xff]  ;;  %v188_v19 = vld [vmem:[%s911_s26 + $0x128] sm:$0xff] }
  0x1e   : > { %187 = vst [vmem:[%s919_s27 + $0x90] sm:$0xff] %v186_v18  ;;  %189 = vst [vmem:[%s919_s27 + $0x98] sm:$0xff] %v188_v19 }
  0x1f PF: > { %p641_p7 = scmp.ge.s32.totalorder %s847_s14, 1  ;;  %p194_p8 = scmp.lt.s32.totalorder %s847_s14, 3 }
  0x21   : > { %p195_p9 = pnand %p641_p7, %p194_p8 }
  0x22   : > { %s201_s28 = sand.u32 (!%p195_p9), 1, %s839_s12   ;;  %v289_v20 = vld [vmem:[%s1012_s2] sm:$0xff] (!%p195_p9)  ;;  %v849_v21 = vmov (!%p195_p9), 0.0   ;;  %v850_v22 = vmov (!%p195_p9), 0   ;;  %v290_v23 = vld [vmem:[%s1012_s2 + $0x8] sm:$0xff] (!%p195_p9)  ;;  %vm301_vm0 = vcmask (!%p195_p9), 654336  }
  0x23   : > { %198 = sbr.rel (%p195_p9) target bundleno = 320 (0x140), region = 51  ;;  %372 = vmatprep.mubr.f32.mxu0 (!%p195_p9), %v849_v21  ;;  %449 = vmatprep.mubr.f32.mxu1 (!%p195_p9), %v849_v21  ;;  %v671_v44 = vld [vmem:[%s1011_s1] sm:$0xff] (!%p195_p9)   ;;  %s642_s10 = sshll.u32 (!%p195_p9), %s201_s28, 5 }
  0x24   : > { %s735_s4 = smul.u32 (!%p195_p9), 160, %s201_s28  ;;  %762 = vset.pattern.permute.xlu0 (!%p195_p9), %v850_v22  ;;  %v672_v45 = vunpack.c.l.bf16 (!%p195_p9), %v671_v44  ;;  %v673_v46 = vunpack.c.h.bf16 (!%p195_p9), %v671_v44  ;;  %s222_s11 = scalar_lea.vmem (!%p195_p9), [#allocation3], %s642_s10 }
  0x25   : > { %293 = vperm.xlu0 (!%p195_p9), %762, %v289_v20  }
  0x26   : > { %s966_s7 = scalar_lea.vmem (!%p195_p9), [#allocation2], %s735_s4 }
  0x27   : > { %v763_v24 = vld [vmem:[%s966_s7 + $0x4] ss:$16 sps:$4 sm:$0xff] (!%p195_p9)   ;;  %v765_v25 = vld [vmem:[%s966_s7 + $0xc] ss:$16 sps:$4 sm:$0xff] (!%p195_p9)   ;;  %v767_v26 = vld [vmem:[%s966_s7] ss:$16 sps:$4 sm:$0xff] (!%p195_p9)  }
  0x28   : > { %675 = vmatprep.subr.bf16.mxu0 (!%p195_p9), %v763_v24  ;;  %v768_v27 = vld [vmem:[%s966_s7 + $0x8] ss:$16 sps:$4 sm:$0xff] (!%p195_p9)   ;;  %695 = vmatprep.subr.bf16.mxu1 (!%p195_p9), %v765_v25  ;;  %v769_v28 = vld [vmem:[%s966_s7 + $0x24] ss:$16 sps:$4 sm:$0xff] (!%p195_p9)   ;;  %v771_v29 = vld [vmem:[%s966_s7 + $0x2c] ss:$16 sps:$4 sm:$0xff] (!%p195_p9)  }
  0x29   : > { %298 = vperm.xlu0 (!%p195_p9), %762, %v290_v23   ;;  %677 = vmatpush1.bf16.msra.mxu0 (!%p195_p9), %v767_v26  ;;  %v773_v30 = vld [vmem:[%s966_s7 + $0x20] ss:$16 sps:$4 sm:$0xff] (!%p195_p9)   ;;  %v774_v31 = vld [vmem:[%s966_s7 + $0x28] ss:$16 sps:$4 sm:$0xff] (!%p195_p9)   ;;  %v775_v32 = vld [vmem:[%s966_s7 + $0x44] ss:$16 sps:$4 sm:$0xff] (!%p195_p9)  }
  0x2a   : > { %697 = vmatpush1.bf16.msra.mxu1 %v768_v27  ;;  %679 = vmatprep.subr.bf16.mxu0 %v769_v28  ;;  %v777_v33 = vld [vmem:[%s966_s7 + $0x4c] ss:$16 sps:$4 sm:$0xff]   ;;  %v779_v34 = vld [vmem:[%s966_s7 + $0x40] ss:$16 sps:$4 sm:$0xff]   ;;  %v780_v35 = vld [vmem:[%s966_s7 + $0x48] ss:$16 sps:$4 sm:$0xff]  }
  0x2b   : > { %699 = vmatprep.subr.bf16.mxu1 %v771_v29  ;;  %v781_v36 = vld [vmem:[%s966_s7 + $0x64] ss:$16 sps:$4 sm:$0xff]   ;;  %v783_v37 = vld [vmem:[%s966_s7 + $0x6c] ss:$16 sps:$4 sm:$0xff]   ;;  %v785_v38 = vld [vmem:[%s966_s7 + $0x60] ss:$16 sps:$4 sm:$0xff]  }
  0x2c   : > { %v786_v39 = vld [vmem:[%s966_s7 + $0x68] ss:$16 sps:$4 sm:$0xff]   ;;  %v787_v40 = vld [vmem:[%s966_s7 + $0x84] ss:$16 sps:$4 sm:$0xff]   ;;  %v789_v41 = vld [vmem:[%s966_s7 + $0x8c] ss:$16 sps:$4 sm:$0xff]  }
  0x2d   : > { %681 = vmatpush1.bf16.msra.mxu0 %v773_v30  ;;  %v791_v42 = vld [vmem:[%s966_s7 + $0x80] ss:$16 sps:$4 sm:$0xff]   ;;  %v792_v43 = vld [vmem:[%s966_s7 + $0x88] ss:$16 sps:$4 sm:$0xff]   ;;  %s669_s12 = sshll.u32 (%p901_p5), %s635_s15, 4 }
  0x2e   : > { %701 = vmatpush1.bf16.msra.mxu1 %v774_v31  ;;  %683 = vmatprep.subr.bf16.mxu0 %v775_v32  ;;  %s555_s21 = scalar_lea.vmem (%p901_p5), %s1013_s3, %s669_s12 }
  0x2f   : > { %703 = vmatprep.subr.bf16.mxu1 %v777_v33 }
  0x31   : > { %685 = vmatpush1.bf16.msra.mxu0 %v779_v34 }
  0x32   : > { %705 = vmatpush1.bf16.msra.mxu1 %v780_v35  ;;  %687 = vmatprep.subr.bf16.mxu0 %v781_v36 }
  0x33   : > { %707 = vmatprep.subr.bf16.mxu1 %v783_v37 }
  0x35   : > { %689 = vmatpush1.bf16.msra.mxu0 %v785_v38 }
  0x36   : > { %709 = vmatpush1.bf16.msra.mxu1 %v786_v39  ;;  %691 = vmatprep.subr.bf16.mxu0 %v787_v40 }
  0x37   : > { %711 = vmatprep.subr.bf16.mxu1 %v789_v41 }
  0x39   : > { %693 = vmatpush1.bf16.msra.mxu0 %v791_v42 }
  0x3a   : > { %713 = vmatpush1.bf16.msra.mxu1 %v792_v43 }
  0x3c   : > { %643 = vmatmul.mubr.msk.f32.vlgmr.msra.gmra.mrb[0].mxu0 %vm301_vm0, %v672_v45 }
  0x3d   : > { %645 = vmatmul.mubr.msk.f32.vlgmr.msra.gmra.mrb[0].mxu1 %vm301_vm0, %v672_v45  ;;  %378 = vmatprep.mubr.f32.mxu0 %v849_v21 }
  0x3e   : > { %455 = vmatprep.mubr.f32.mxu1 %v849_v21 }
  0x40   : > { %644 = vmatmul.mubr.msk.f32.gmra.mrb[2].mxu0 %vm301_vm0, %v673_v46 }
  0x41   : > { %646 = vmatmul.mubr.msk.f32.gmra.mrb[2].mxu1 %vm301_vm0, %v673_v46 }
  0xa4   : > { %v294_v47 = vpop.permute.xlu0 %293 }
  0xa8   : > { %v299_v58 = vpop.permute.xlu0 %298 }
 0x10f   : > { %v374_v48 = vpop.f32.mrb[0].mxu0 }
 0x110   : > { %v451_v49 = vpop.f32.mrb[0].mxu1  ;;  %v375_v50 = vadd.f32 %v374_v48, %v294_v47  ;;  %v376_v52 = vpop.f32.mrb[1].mxu0 }
 0x111   : > { %v452_v51 = vadd.f32 %v451_v49, %v294_v47  ;;  %v453_v53 = vpop.f32.mrb[1].mxu1  ;;  %v377_v54 = vadd.f32 %v376_v52, %v294_v47 }
 0x112   : > { %v454_v55 = vadd.f32 %v453_v53, %v294_v47  ;;  %v647_v56 = vmul.f32 -1.442695, %v375_v50 }
 0x113   : > { %v649_v57 = vmul.f32 -1.442695, %v452_v51  ;;  %v648_v59 = vmul.f32 -1.442695, %v377_v54  ;;  %v380_v61 = vpop.f32.mrb[2].mxu0 }
 0x114   : > { %v650_v60 = vmul.f32 -1.442695, %v454_v55  ;;  %v457_v62 = vpop.f32.mrb[2].mxu1  ;;  %793 = vpow2.f32 %v647_v56  ;;  %v381_v63 = vadd.f32 %v380_v61, %v299_v58  ;;  %v382_v1 = vpop.f32.mrb[3].mxu0 }
 0x115   : > { %v458_v0 = vadd.f32 %v457_v62, %v299_v58  ;;  %v459_v2 = vpop.f32.mrb[3].mxu1  ;;  %795 = vpow2.f32 %v649_v57  ;;  %v383_v3 = vadd.f32 %v382_v1, %v299_v58 }
 0x116   : > { %v460_v4 = vadd.f32 %v459_v2, %v299_v58  ;;  %797 = vpow2.f32 %v648_v59  ;;  %v651_v5 = vmul.f32 -1.442695, %v381_v63 }
 0x117   : > { %v653_v6 = vmul.f32 -1.442695, %v458_v0  ;;  %799 = vpow2.f32 %v650_v60  ;;  %v652_v7 = vmul.f32 -1.442695, %v383_v3 }
 0x118   : > { %v654_v8 = vmul.f32 -1.442695, %v460_v4  ;;  %801 = vpow2.f32 %v651_v5 }
 0x119   : > { %803 = vpow2.f32 %v653_v6 }
 0x11a   : > { %805 = vpow2.f32 %v652_v7 }
 0x11b   : > { %807 = vpow2.f32 %v654_v8 }
 0x11e   : > { %v794_v9 = vpop.eup %793 }
 0x11f   : > { %v796_v10 = vpop.eup %795  ;;  %v486_v11 = vadd.f32 1.0, %v794_v9 }
 0x120   : > { %v798_v12 = vpop.eup %797  ;;  %v488_v13 = vadd.f32 1.0, %v796_v10 }
 0x121   : > { %v800_v14 = vpop.eup %799  ;;  %809 = vrcp.f32 %v486_v11  ;;  %v487_v15 = vadd.f32 1.0, %v798_v12 }
 0x122   : > { %v802_v16 = vpop.eup %801  ;;  %811 = vrcp.f32 %v488_v13  ;;  %v489_v17 = vadd.f32 1.0, %v800_v14 }
 0x123   : > { %v804_v18 = vpop.eup %803  ;;  %813 = vrcp.f32 %v487_v15  ;;  %v490_v19 = vadd.f32 1.0, %v802_v16 }
 0x124   : > { %v806_v20 = vpop.eup %805  ;;  %815 = vrcp.f32 %v489_v17  ;;  %v492_v21 = vadd.f32 1.0, %v804_v18 }
 0x125   : > { %v808_v22 = vpop.eup %807  ;;  %817 = vrcp.f32 %v490_v19  ;;  %v491_v23 = vadd.f32 1.0, %v806_v20 }
 0x126   : > { %819 = vrcp.f32 %v492_v21  ;;  %v493_v24 = vadd.f32 1.0, %v808_v22 }
 0x127   : > { %821 = vrcp.f32 %v491_v23 }
 0x128   : > { %823 = vrcp.f32 %v493_v24 }
 0x12b   : > { %v810_v25 = vpop.eup %809 }
 0x12c   : > { %v812_v26 = vpop.eup %811  ;;  %v510_v27 = vmul.f32 %v810_v25, %v375_v50 }
 0x12d   : > { %v814_v28 = vpop.eup %813  ;;  %v512_v29 = vmul.f32 %v812_v26, %v452_v51 }
 0x12e   : > { %v816_v30 = vpop.eup %815  ;;  %v511_v31 = vmul.f32 %v814_v28, %v377_v54 }
 0x12f   : > { %v818_v32 = vpop.eup %817  ;;  %v513_v33 = vmul.f32 %v816_v30, %v454_v55 }
 0x130   : > { %v820_v34 = vpop.eup %819  ;;  %v665_v35 = vpack.c.bf16 %v511_v31, %v510_v27  ;;  %v514_v36 = vmul.f32 %v818_v32, %v381_v63 }
 0x131   : > { %v822_v37 = vpop.eup %821  ;;  %v666_v38 = vpack.c.bf16 %v513_v33, %v512_v29  ;;  %v516_v39 = vmul.f32 %v820_v34, %v458_v0  ;;  %552 = sbr.rel (!%p901_p5) target bundleno = 320 (0x140), region = 59 }
 0x132   : > { %v824_v40 = vpop.eup %823  ;;  %542 = vst [vmem:[%s222_s11] sm:$0xff] %v665_v35  ;;  %v515_v41 = vmul.f32 %v822_v37, %v383_v3 }
 0x133   : > { %543 = vst [vmem:[%s222_s11 + $0x8] sm:$0xff] %v666_v38  ;;  %v517_v42 = vmul.f32 %v824_v40, %v460_v4 }
 0x134   : > { %v667_v43 = vpack.c.bf16 %v515_v41, %v514_v36 }
 0x135   : > { %v668_v44 = vpack.c.bf16 %v517_v42, %v516_v39 }
 0x136   : > { %544 = vst [vmem:[%s222_s11 + $0x10] sm:$0xff] %v667_v43 }
 0x137   : > { %545 = vst [vmem:[%s222_s11 + $0x18] sm:$0xff] %v668_v44 }
 0x139   : > { %v568_v45 = vld [vmem:[%s222_s11] sm:$0xff] }
 0x13a   : > { %v570_v46 = vld [vmem:[%s222_s11 + $0x8] sm:$0xff]  ;;  %569 = vst [vmem:[%s555_s21] sm:$0xff] %v568_v45 }
 0x13b   : > { %571 = vst [vmem:[%s555_s21 + $0x8] sm:$0xff] %v570_v46 }
 0x13d   : > { %v572_v47 = vld [vmem:[%s222_s11 + $0x10] sm:$0xff] }
 0x13e   : > { %v574_v48 = vld [vmem:[%s222_s11 + $0x18] sm:$0xff]  ;;  %573 = vst [vmem:[%s555_s21 + $0x20] sm:$0xff] %v572_v47 }
 0x13f   : > { %575 = vst [vmem:[%s555_s21 + $0x28] sm:$0xff] %v574_v48 }
 0x140 PF: > { %p10_p10 = scmp.ge.s32.totalorder %s888_s16, 4   ;;  %s1015_s12 = smov %s843_s13 }
 0x141   : > { %s1016_s13 = smov %s899_s19  ;;  %s1017_s14 = smov %s888_s16 }
 0x142   :  { %12 = sbr.rel (!%p10_p10) target bundleno = 2 (0x2), region = 113 }

// kernel: refnet_forward.10
= control target key start
LH: loop header
LB: loop body
LE: loop exit
PB: predicated region body
PF: predicated region fallthrough
CT: control target
= control target key end

     0   :  { %v448_v1 = vmov 0   ;;  %vm104_vm0 = vcmask 130048   ;;  %s563_s0 = inlined_call_operand.vmem [shape: bf16[144,256], index: 0, kind: input, shape index: {}]   ;;  %s564_s1 = inlined_call_operand.vmem [shape: bf16[32,144], index: 1, kind: input, shape index: {}]   ;;  %s565_s2 = inlined_call_operand.vmem [shape: f32[32,1], index: 2, kind: input, shape index: {}]   ;;  %s566_s3 = inlined_call_operand.vmem [shape: bf16[32,256], index: 3, kind: output, shape index: {}]  }
   0x1   :  { %v389_v0 = vld [vmem:[%s563_s0 + $0x4] ss:$8 sps:$4 sm:$0xff]   ;;  %388 = vset.pattern.permute.xlu1 %v448_v1  ;;  %387 = vset.pattern.permute.xlu0 %v448_v1  ;;  %v391_v2 = vld [vmem:[%s563_s0] ss:$8 sps:$4 sm:$0xff]   ;;  %v392_v3 = vld [vmem:[%s563_s0 + $0x14] ss:$8 sps:$4 sm:$0xff]  }
   0x2   :  { %315 = vmatprep.subr.bf16.mxu0 %v389_v0  ;;  %350 = vmatprep.subr.bf16.mxu1 %v389_v0  ;;  %v394_v4 = vld [vmem:[%s563_s0 + $0x10] ss:$8 sps:$4 sm:$0xff]   ;;  %v395_v5 = vld [vmem:[%s563_s0 + $0x24] ss:$8 sps:$4 sm:$0xff]   ;;  %v397_v6 = vld [vmem:[%s563_s0 + $0x20] ss:$8 sps:$4 sm:$0xff]  }
   0x3   :  { %317 = vmatpush1.bf16.msra.mxu0 %v391_v2  ;;  %359 = vmatpush1.bf16.msra.mxu1 %v391_v2  ;;  %v398_v7 = vld [vmem:[%s563_s0 + $0x34] ss:$8 sps:$4 sm:$0xff]   ;;  %v400_v8 = vld [vmem:[%s563_s0 + $0x30] ss:$8 sps:$4 sm:$0xff]   ;;  %v401_v9 = vld [vmem:[%s563_s0 + $0x44] ss:$8 sps:$4 sm:$0xff]  }
   0x4   :  { %319 = vmatprep.subr.bf16.mxu0 %v392_v3  ;;  %351 = vmatprep.subr.bf16.mxu1 %v392_v3  ;;  %v14_v10 = vld [vmem:[%s564_s1] sm:$0xff]  ;;  %v16_v11 = vld [vmem:[%s564_s1 + $0x10] sm:$0xff]  ;;  %v83_v17 = vld [vmem:[%s565_s2 + $0x18] sm:$0xff] }
   0x5   :  { %v19_v12 = vunpack.c.h.bf16 %v14_v10  ;;  %v23_v13 = vunpack.c.h.bf16 %v16_v11  ;;  %v82_v14 = vld [vmem:[%s565_s2 + $0x10] sm:$0xff]  ;;  %v80_v15 = vld [vmem:[%s565_s2] sm:$0xff]  ;;  %v81_v18 = vld [vmem:[%s565_s2 + $0x8] sm:$0xff]  ;;  %v18_v29 = vunpack.c.l.bf16 %v14_v10  ;;  %v22_v30 = vunpack.c.l.bf16 %v16_v11 }
   0x6   :  { %96 = vperm.xlu1 %388, %v82_v14   ;;  %86 = vperm.xlu0 %387, %v80_v15   ;;  %v403_v16 = vld [vmem:[%s563_s0 + $0x40] ss:$8 sps:$4 sm:$0xff]   ;;  %v404_v19 = vld [vmem:[%s563_s0 + $0x54] ss:$8 sps:$4 sm:$0xff]   ;;  %v406_v20 = vld [vmem:[%s563_s0 + $0x50] ss:$8 sps:$4 sm:$0xff]  }
   0x7   :  { %321 = vmatpush1.bf16.msra.mxu0 %v394_v4  ;;  %360 = vmatpush1.bf16.msra.mxu1 %v394_v4  ;;  %v407_v21 = vld [vmem:[%s563_s0 + $0x64] ss:$8 sps:$4 sm:$0xff]   ;;  %v409_v22 = vld [vmem:[%s563_s0 + $0x60] ss:$8 sps:$4 sm:$0xff]   ;;  %v410_v23 = vld [vmem:[%s563_s0 + $0x74] ss:$8 sps:$4 sm:$0xff]  }
   0x8   :  { %323 = vmatprep.subr.bf16.mxu0 %v395_v5  ;;  %352 = vmatprep.subr.bf16.mxu1 %v395_v5  ;;  %v412_v24 = vld [vmem:[%s563_s0 + $0x70] ss:$8 sps:$4 sm:$0xff]   ;;  %v413_v25 = vld [vmem:[%s563_s0 + $0x84] ss:$8 sps:$4 sm:$0xff]   ;;  %v415_v26 = vld [vmem:[%s563_s0 + $0x80] ss:$8 sps:$4 sm:$0xff]  }
   0x9   :  { %294 = vmatprep.mubr.msk.f32.mxu0 %vm104_vm0, %v19_v12  ;;  %296 = vmatprep.mubr.msk.f32.mxu1 %vm104_vm0, %v23_v13  ;;  %v15_v27 = vld [vmem:[%s564_s1 + $0x8] sm:$0xff]  ;;  %v17_v28 = vld [vmem:[%s564_s1 + $0x18] sm:$0xff] }
   0xa   :  { %101 = vperm.xlu1 %388, %v83_v17   ;;  %91 = vperm.xlu0 %387, %v81_v18   ;;  %v21_v31 = vunpack.c.h.bf16 %v15_v27  ;;  %v25_v32 = vunpack.c.h.bf16 %v17_v28  ;;  %v20_v33 = vunpack.c.l.bf16 %v15_v27  ;;  %v24_v34 = vunpack.c.l.bf16 %v17_v28 }
   0xb   :  { %325 = vmatpush1.bf16.msra.mxu0 %v397_v6  ;;  %361 = vmatpush1.bf16.msra.mxu1 %v397_v6 }
   0xc   :  { %327 = vmatprep.subr.bf16.mxu0 %v398_v7  ;;  %353 = vmatprep.subr.bf16.mxu1 %v398_v7 }
   0xf   :  { %329 = vmatpush1.bf16.msra.mxu0 %v400_v8  ;;  %362 = vmatpush1.bf16.msra.mxu1 %v400_v8 }
  0x10   :  { %331 = vmatprep.subr.bf16.mxu0 %v401_v9  ;;  %354 = vmatprep.subr.bf16.mxu1 %v401_v9 }
  0x13   :  { %333 = vmatpush1.bf16.msra.mxu0 %v403_v16  ;;  %363 = vmatpush1.bf16.msra.mxu1 %v403_v16 }
  0x14   :  { %335 = vmatprep.subr.bf16.mxu0 %v404_v19  ;;  %355 = vmatprep.subr.bf16.mxu1 %v404_v19 }
  0x17   :  { %337 = vmatpush1.bf16.msra.mxu0 %v406_v20  ;;  %364 = vmatpush1.bf16.msra.mxu1 %v406_v20 }
  0x18   :  { %339 = vmatprep.subr.bf16.mxu0 %v407_v21  ;;  %356 = vmatprep.subr.bf16.mxu1 %v407_v21 }
  0x1b   :  { %341 = vmatpush1.bf16.msra.mxu0 %v409_v22  ;;  %365 = vmatpush1.bf16.msra.mxu1 %v409_v22 }
  0x1c   :  { %343 = vmatprep.subr.bf16.mxu0 %v410_v23  ;;  %357 = vmatprep.subr.bf16.mxu1 %v410_v23 }
  0x1f   :  { %345 = vmatpush1.bf16.msra.mxu0 %v412_v24  ;;  %366 = vmatpush1.bf16.msra.mxu1 %v412_v24 }
  0x20   :  { %347 = vmatprep.subr.bf16.mxu0 %v413_v25  ;;  %358 = vmatprep.subr.bf16.mxu1 %v413_v25 }
  0x23   :  { %349 = vmatpush1.bf16.msra.mxu0 %v415_v26  ;;  %367 = vmatpush1.bf16.msra.mxu1 %v415_v26 }
  0x26   :  { %182 = vmatmul.mubr.f32.vlgmr.msra.gmra.mrb[0].mxu0 %v18_v29  ;;  %194 = vmatmul.mubr.f32.vlgmr.msra.gmra.mrb[0].mxu1 %v22_v30 }
  0x27   :  { %295 = vmatprep.mubr.msk.f32.mxu0 %vm104_vm0, %v21_v31  ;;  %297 = vmatprep.mubr.msk.f32.mxu1 %vm104_vm0, %v25_v32 }
  0x2a   :  { %188 = vmatmul.mubr.f32.gmra.mrb[2].mxu0 %v20_v33  ;;  %200 = vmatmul.mubr.f32.gmra.mrb[2].mxu1 %v24_v34 }
  0x85   :  { %v97_v35 = vpop.permute.xlu1 %96  ;;  %v87_v36 = vpop.permute.xlu0 %86 }
  0x89   :  { %v102_v47 = vpop.permute.xlu1 %101  ;;  %v92_v48 = vpop.permute.xlu0 %91 }
  0xf9   :  { %v183_v37 = vpop.f32.mrb[0].mxu0  ;;  %v195_v38 = vpop.f32.mrb[0].mxu1 }
  0xfa   :  { %v184_v39 = vadd.f32 %v183_v37, %v87_v36  ;;  %v196_v40 = vadd.f32 %v195_v38, %v97_v35  ;;  %v185_v41 = vpop.f32.mrb[1].mxu0  ;;  %v197_v42 = vpop.f32.mrb[1].mxu1 }
  0xfb   :  { %v186_v43 = vadd.f32 %v185_v41, %v87_v36  ;;  %v198_v44 = vadd.f32 %v197_v42, %v97_v35 }
  0xfc   :  { %v298_v45 = vmul.f32 -1.442695, %v184_v39  ;;  %v302_v46 = vmul.f32 -1.442695, %v196_v40 }
  0xfd   :  { %v299_v49 = vmul.f32 -1.442695, %v186_v43  ;;  %v303_v50 = vmul.f32 -1.442695, %v198_v44  ;;  %v189_v51 = vpop.f32.mrb[2].mxu0  ;;  %v201_v52 = vpop.f32.mrb[2].mxu1 }
  0xfe   :  { %416 = vpow2.f32 %v298_v45  ;;  %v190_v53 = vadd.f32 %v189_v51, %v92_v48  ;;  %v202_v54 = vadd.f32 %v201_v52, %v102_v47  ;;  %v191_v55 = vpop.f32.mrb[3].mxu0  ;;  %v203_v56 = vpop.f32.mrb[3].mxu1 }
  0xff   :  { %418 = vpow2.f32 %v302_v46  ;;  %v192_v57 = vadd.f32 %v191_v55, %v92_v48  ;;  %v204_v58 = vadd.f32 %v203_v56, %v102_v47 }
 0x100   :  { %420 = vpow2.f32 %v299_v49  ;;  %v300_v59 = vmul.f32 -1.442695, %v190_v53  ;;  %v304_v60 = vmul.f32 -1.442695, %v202_v54 }
 0x101   :  { %422 = vpow2.f32 %v303_v50  ;;  %v301_v61 = vmul.f32 -1.442695, %v192_v57  ;;  %v305_v62 = vmul.f32 -1.442695, %v204_v58 }
 0x102   :  { %424 = vpow2.f32 %v300_v59 }
 0x103   :  { %426 = vpow2.f32 %v304_v60 }
 0x104   :  { %428 = vpow2.f32 %v301_v61 }
 0x105   :  { %430 = vpow2.f32 %v305_v62 }
 0x108   :  { %v417_v63 = vpop.eup %416 }
 0x109   :  { %v419_v0 = vpop.eup %418  ;;  %v230_v1 = vadd.f32 1.0, %v417_v63 }
 0x10a   :  { %v421_v2 = vpop.eup %420  ;;  %v234_v3 = vadd.f32 1.0, %v419_v0 }
 0x10b   :  { %v423_v4 = vpop.eup %422  ;;  %432 = vrcp.f32 %v230_v1  ;;  %v231_v5 = vadd.f32 1.0, %v421_v2 }
 0x10c   :  { %v425_v6 = vpop.eup %424  ;;  %434 = vrcp.f32 %v234_v3  ;;  %v235_v7 = vadd.f32 1.0, %v423_v4 }
 0x10d   :  { %v427_v8 = vpop.eup %426  ;;  %436 = vrcp.f32 %v231_v5  ;;  %v232_v9 = vadd.f32 1.0, %v425_v6 }
 0x10e   :  { %v429_v10 = vpop.eup %428  ;;  %438 = vrcp.f32 %v235_v7  ;;  %v236_v11 = vadd.f32 1.0, %v427_v8 }
 0x10f   :  { %v431_v12 = vpop.eup %430  ;;  %440 = vrcp.f32 %v232_v9  ;;  %v233_v13 = vadd.f32 1.0, %v429_v10 }
 0x110   :  { %442 = vrcp.f32 %v236_v11  ;;  %v237_v14 = vadd.f32 1.0, %v431_v12 }
 0x111   :  { %444 = vrcp.f32 %v233_v13 }
 0x112   :  { %446 = vrcp.f32 %v237_v14 }
 0x115   :  { %v433_v15 = vpop.eup %432 }
 0x116   :  { %v435_v16 = vpop.eup %434  ;;  %v254_v17 = vmul.f32 %v433_v15, %v184_v39 }
 0x117   :  { %v437_v18 = vpop.eup %436  ;;  %v258_v19 = vmul.f32 %v435_v16, %v196_v40 }
 0x118   :  { %v439_v20 = vpop.eup %438  ;;  %v255_v21 = vmul.f32 %v437_v18, %v186_v43 }
 0x119   :  { %v441_v22 = vpop.eup %440  ;;  %v259_v23 = vmul.f32 %v439_v20, %v198_v44 }
 0x11a   :  { %v443_v24 = vpop.eup %442  ;;  %v310_v25 = vpack.c.bf16 %v255_v21, %v254_v17  ;;  %v256_v26 = vmul.f32 %v441_v22, %v190_v53 }
 0x11b   :  { %v445_v27 = vpop.eup %444  ;;  %v312_v28 = vpack.c.bf16 %v259_v23, %v258_v19  ;;  %v260_v29 = vmul.f32 %v443_v24, %v202_v54 }
 0x11c   :  { %v447_v30 = vpop.eup %446  ;;  %286 = vst [vmem:[%s566_s3] sm:$0xff] %v310_v25  ;;  %v257_v31 = vmul.f32 %v445_v27, %v192_v57 }
 0x11d   :  { %288 = vst [vmem:[%s566_s3 + $0x10] sm:$0xff] %v312_v28  ;;  %v261_v32 = vmul.f32 %v447_v30, %v204_v58 }
 0x11e   :  { %v311_v33 = vpack.c.bf16 %v257_v31, %v256_v26 }
 0x11f   :  { %v313_v34 = vpack.c.bf16 %v261_v32, %v260_v29 }
 0x120   :  { %287 = vst [vmem:[%s566_s3 + $0x8] sm:$0xff] %v311_v33 }
 0x121   :  { %289 = vst [vmem:[%s566_s3 + $0x18] sm:$0xff] %v313_v34 }

// kernel: refnet_forward.11
= control target key start
LH: loop header
LB: loop body
LE: loop exit
PB: predicated region body
PF: predicated region fallthrough
CT: control target
= control target key end

     0   :  { %v832_v3 = vmov 0   ;;  %vm174_vm0 = vcmask 261120   ;;  %s1007_s0 = inlined_call_operand.vmem [shape: bf16[288,128], index: 0, kind: input, shape index: {}]   ;;  %s1008_s1 = inlined_call_operand.vmem [shape: bf16[64,288], index: 1, kind: input, shape index: {}]   ;;  %s1009_s2 = inlined_call_operand.vmem [shape: f32[64,1], index: 2, kind: input, shape index: {}]   ;;  %s1010_s3 = inlined_call_operand.vmem [shape: bf16[64,128], index: 3, kind: output, shape index: {}]  }
   0x1   :  { %v640_v0 = vld [vmem:[%s1007_s0 + $0x40] sm:$0xff]   ;;  %v641_v2 = vld [vmem:[%s1007_s0 + $0x48] sm:$0xff]   ;;  %798 = vset.pattern.permute.xlu0 %v832_v3  ;;  %799 = vset.pattern.permute.xlu1 %v832_v3  ;;  %v642_v5 = vld [vmem:[%s1007_s0 + $0x50] sm:$0xff]  }
   0x2   :  { %v542_v1 = vld [vmem:[%s1007_s0] sm:$0xff]   ;;  %742 = vmatprep.subr.bf16.mxu0 %v640_v0  ;;  %781 = vmatprep.subr.bf16.mxu1 %v640_v0  ;;  %v633_v4 = vld [vmem:[%s1007_s0 + $0x8] sm:$0xff]   ;;  %v634_v10 = vld [vmem:[%s1007_s0 + $0x10] sm:$0xff]  }
   0x3   :  { %744 = vmatpush3.bf16.msra.mxu0 %v542_v1  ;;  %789 = vmatpush3.bf16.msra.mxu1 %v542_v1  ;;  %v871_v6 = vld [vmem:[%s1008_s1] sm:$0xff]  ;;  %v876_v7 = vld [vmem:[%s1008_s1 + $0x48] sm:$0xff]  ;;  %v643_v11 = vld [vmem:[%s1007_s0 + $0x58] sm:$0xff]  }
   0x4   :  { %746 = vmatprep.subr.bf16.mxu0 %v641_v2  ;;  %782 = vmatprep.subr.bf16.mxu1 %v641_v2  ;;  %v31_v8 = vunpack.c.h.bf16 %v871_v6  ;;  %v49_v9 = vunpack.c.h.bf16 %v876_v7  ;;  %v126_v12 = vld [vmem:[%s1009_s2] sm:$0xff]  ;;  %v128_v13 = vld [vmem:[%s1009_s2 + $0x10] sm:$0xff]  ;;  %v635_v14 = vld [vmem:[%s1007_s0 + $0x18] sm:$0xff]   ;;  %v30_v32 = vunpack.c.l.bf16 %v871_v6  ;;  %v48_v33 = vunpack.c.l.bf16 %v876_v7 }
   0x5   :  { %v644_v15 = vld [vmem:[%s1007_s0 + $0x60] sm:$0xff]   ;;  %136 = vperm.xlu0 %798, %v126_v12   ;;  %146 = vperm.xlu1 %799, %v128_v13   ;;  %v127_v16 = vld [vmem:[%s1009_s2 + $0x8] sm:$0xff]  ;;  %v129_v17 = vld [vmem:[%s1009_s2 + $0x18] sm:$0xff] }
   0x6   :  { %263 = vmatprep.mubr.f32.mxu0 %v31_v8  ;;  %293 = vmatprep.mubr.f32.mxu1 %v49_v9  ;;  %v636_v18 = vld [vmem:[%s1007_s0 + $0x20] sm:$0xff]   ;;  %v645_v19 = vld [vmem:[%s1007_s0 + $0x68] sm:$0xff]   ;;  %v646_v23 = vld [vmem:[%s1007_s0 + $0x70] sm:$0xff]  }
   0x7   :  { %748 = vmatpush3.bf16.msra.mxu0 %v633_v4  ;;  %790 = vmatpush3.bf16.msra.mxu1 %v633_v4  ;;  %v130_v20 = vld [vmem:[%s1009_s2 + $0x20] sm:$0xff]  ;;  %v131_v21 = vld [vmem:[%s1009_s2 + $0x28] sm:$0xff]  ;;  %v132_v24 = vld [vmem:[%s1009_s2 + $0x30] sm:$0xff] }
   0x8   :  { %750 = vmatprep.subr.bf16.mxu0 %v642_v5  ;;  %783 = vmatprep.subr.bf16.mxu1 %v642_v5  ;;  %v637_v22 = vld [vmem:[%s1007_s0 + $0x28] sm:$0xff]   ;;  %v133_v25 = vld [vmem:[%s1009_s2 + $0x38] sm:$0xff]  ;;  %v638_v26 = vld [vmem:[%s1007_s0 + $0x30] sm:$0xff]  }
   0x9   :  { %141 = vperm.xlu0 %798, %v127_v16   ;;  %151 = vperm.xlu1 %799, %v129_v17   ;;  %v647_v27 = vld [vmem:[%s1007_s0 + $0x78] sm:$0xff]   ;;  %v16_v29 = vld [vmem:[%s1008_s1 + $0xc] sm:$0xff]  ;;  %v648_v30 = vld [vmem:[%s1007_s0 + $0x80] sm:$0xff]  }
   0xa   :  { %v639_v28 = vld [vmem:[%s1007_s0 + $0x38] sm:$0xff]   ;;  %v34_v34 = vunpack.c.h.bf16 %v16_v29  ;;  %v649_v37 = vld [vmem:[%s1007_s0 + $0x88] sm:$0xff]   ;;  %v33_v39 = vunpack.c.l.bf16 %v16_v29  ;;  %v22_v49 = vld [vmem:[%s1008_s1 + $0x30] sm:$0xff] }
   0xb   :  { %752 = vmatpush3.bf16.msra.mxu0 %v634_v10  ;;  %791 = vmatpush3.bf16.msra.mxu1 %v634_v10  ;;  %v28_v31 = vld [vmem:[%s1008_s1 + $0x54] sm:$0xff]  ;;  %v20_v43 = vld [vmem:[%s1008_s1 + $0x24] sm:$0xff]  ;;  %v19_v44 = vld [vmem:[%s1008_s1 + $0x20] ss:$12 sps:$4 sm:$0xff]   ;;  %v43_v53 = vunpack.c.h.bf16 %v22_v49  ;;  %v42_v57 = vunpack.c.l.bf16 %v22_v49 }
   0xc   :  { %754 = vmatprep.subr.bf16.mxu0 %v643_v11  ;;  %784 = vmatprep.subr.bf16.mxu1 %v643_v11  ;;  %v52_v35 = vunpack.c.h.bf16 %v28_v31  ;;  %v18_v36 = vld [vmem:[%s1008_s1 + $0x18] sm:$0xff]  ;;  %v15_v38 = vld [vmem:[%s1008_s1 + $0x8] ss:$12 sps:$4 sm:$0xff]   ;;  %v51_v40 = vunpack.c.l.bf16 %v28_v31  ;;  %v40_v47 = vunpack.c.h.bf16 %v20_v43  ;;  %v38_v48 = vunpack.c.l.bf16 %v19_v44 }
   0xd   :  { %156 = vperm.xlu0 %798, %v130_v20   ;;  %161 = vperm.xlu1 %799, %v131_v21   ;;  %v37_v41 = vunpack.c.h.bf16 %v18_v36  ;;  %v32_v42 = vunpack.c.l.bf16 %v15_v38  ;;  %v36_v45 = vunpack.c.l.bf16 %v18_v36  ;;  %v35_v46 = vunpack.c.h.bf16 %v15_v38  ;;  %v23_v50 = vld [vmem:[%s1008_s1 + $0x38] ss:$12 sps:$4 sm:$0xff]   ;;  %v24_v55 = vld [vmem:[%s1008_s1 + $0x3c] sm:$0xff] }
   0xe   :  { %v39_v51 = vunpack.c.l.bf16 %v20_v43  ;;  %v41_v52 = vunpack.c.h.bf16 %v19_v44  ;;  %v44_v54 = vunpack.c.l.bf16 %v23_v50  ;;  %v27_v56 = vld [vmem:[%s1008_s1 + $0x50] ss:$12 sps:$4 sm:$0xff]   ;;  %v47_v58 = vunpack.c.h.bf16 %v23_v50 }
   0xf   :  { %756 = vmatpush3.bf16.msra.mxu0 %v635_v14  ;;  %792 = vmatpush3.bf16.msra.mxu1 %v635_v14  ;;  %v46_v59 = vunpack.c.h.bf16 %v24_v55  ;;  %v50_v60 = vunpack.c.l.bf16 %v27_v56  ;;  %v45_v61 = vunpack.c.l.bf16 %v24_v55  ;;  %v53_v62 = vunpack.c.h.bf16 %v27_v56 }
  0x10   :  { %758 = vmatprep.subr.bf16.mxu0 %v644_v15  ;;  %785 = vmatprep.subr.bf16.mxu1 %v644_v15 }
  0x11   :  { %166 = vperm.xlu0 %798, %v132_v24   ;;  %171 = vperm.xlu1 %799, %v133_v25  }
  0x13   :  { %760 = vmatpush3.bf16.msra.mxu0 %v636_v18  ;;  %793 = vmatpush3.bf16.msra.mxu1 %v636_v18 }
  0x14   :  { %762 = vmatprep.subr.bf16.mxu0 %v645_v19  ;;  %786 = vmatprep.subr.bf16.mxu1 %v645_v19 }
  0x17   :  { %764 = vmatpush3.bf16.msra.mxu0 %v637_v22  ;;  %794 = vmatpush3.bf16.msra.mxu1 %v637_v22 }
  0x18   :  { %766 = vmatprep.subr.bf16.mxu0 %v646_v23  ;;  %787 = vmatprep.subr.bf16.mxu1 %v646_v23 }
  0x1b   :  { %768 = vmatpush3.bf16.msra.mxu0 %v638_v26  ;;  %795 = vmatpush3.bf16.msra.mxu1 %v638_v26 }
  0x1c   :  { %770 = vmatprep.subr.bf16.mxu0 %v647_v27  ;;  %788 = vmatprep.subr.bf16.mxu1 %v647_v27 }
  0x1f   :  { %772 = vmatpush3.bf16.msra.mxu0 %v639_v28  ;;  %796 = vmatpush3.bf16.msra.mxu1 %v639_v28 }
  0x20   :  { %774 = vmatprep.subr.bf16.mxu1 %v648_v30 }
  0x22   :  { %264 = vmatmul.mubr.f32.vlgmr.msra.gmra.mrb[0].mxu0 %v30_v32  ;;  %294 = vmatmul.mubr.f32.vlgmr.msra.gmra.mrb[0].mxu1 %v48_v33 }
  0x23   :  { %776 = vmatpush3.bf16.msra.mxu1 %v648_v30  ;;  %268 = vmatprep.mubr.f32.mxu0 %v34_v34 }
  0x24   :  { %298 = vmatprep.mubr.f32.mxu1 %v52_v35  ;;  %778 = vmatprep.subr.bf16.mxu1 %v649_v37 }
  0x26   :  { %269 = vmatmul.mubr.f32.gmra.mrb[2].mxu0 %v33_v39  ;;  %299 = vmatmul.mubr.f32.gmra.mrb[2].mxu1 %v51_v40 }
  0x27   :  { %780 = vmatpush3.bf16.msra.mxu1 %v649_v37  ;;  %273 = vmatprep.mubr.f32.mxu0 %v37_v41 }
  0x28   :  { %729 = vmatprep.mubr.msk.f32.mxu1 %vm174_vm0, %v32_v42 }
  0x2a   :  { %274 = vmatmul.mubr.f32.gmra.mrb[4].mxu0 %v36_v45  ;;  %730 = vmatmul.mubr.msk.f32.vlgmr.msra.gmra.mrb[4].mxu1 %vm174_vm0, %v35_v46 }
  0x2b   :  { %278 = vmatprep.mubr.f32.mxu0 %v40_v47  ;;  %732 = vmatprep.mubr.msk.f32.mxu1 %vm174_vm0, %v38_v48 }
  0x2e   :  { %279 = vmatmul.mubr.f32.gmra.mrb[6].mxu0 %v39_v51  ;;  %733 = vmatmul.mubr.msk.f32.gmra.mrb[6].mxu1 %vm174_vm0, %v41_v52 }
  0x2f   :  { %283 = vmatprep.mubr.f32.mxu0 %v43_v53  ;;  %735 = vmatprep.mubr.msk.f32.mxu1 %vm174_vm0, %v44_v54 }
  0x32   :  { %284 = vmatmul.mubr.f32.gmra.mrb[8].mxu0 %v42_v57  ;;  %736 = vmatmul.mubr.msk.f32.gmra.mrb[8].mxu1 %vm174_vm0, %v47_v58 }
  0x33   :  { %288 = vmatprep.mubr.f32.mxu0 %v46_v59  ;;  %738 = vmatprep.mubr.msk.f32.mxu1 %vm174_vm0, %v50_v60 }
  0x36   :  { %289 = vmatmul.mubr.f32.gmra.mrb[10].mxu0 %v45_v61  ;;  %739 = vmatmul.mubr.msk.f32.gmra.mrb[10].mxu1 %vm174_vm0, %v53_v62 }
  0x84   :  { %v137_v63 = vpop.permute.xlu0 %136  ;;  %v147_v0 = vpop.permute.xlu1 %146 }
  0x88   :  { %v142_v1 = vpop.permute.xlu0 %141  ;;  %v152_v2 = vpop.permute.xlu1 %151 }
  0x8c   :  { %v157_v15 = vpop.permute.xlu0 %156  ;;  %v162_v16 = vpop.permute.xlu1 %161 }
  0x90   :  { %v167_v35 = vpop.permute.xlu0 %166  ;;  %v172_v36 = vpop.permute.xlu1 %171 }
  0xf5   :  { %v685_v3 = vpop.f32.mrb[0].mxu0  ;;  %v703_v4 = vpop.f32.mrb[0].mxu1 }
  0xf6   :  { %v686_v5 = vpop.f32.mrb[1].mxu0  ;;  %v704_v6 = vpop.f32.mrb[1].mxu1 }
  0xf7   :  { %v687_v7 = vadd.f32 %v686_v5, %v685_v3  ;;  %v705_v8 = vadd.f32 %v704_v6, %v703_v4 }
  0xf9   :  { %v688_v9 = vpop.f32.mrb[2].mxu0  ;;  %v706_v10 = vpop.f32.mrb[2].mxu1  ;;  %v266_v20 = vadd.f32 %v687_v7, %v137_v63  ;;  %v296_v46 = vadd.f32 %v705_v8, %v167_v35 }
  0xfa   :  { %v689_v11 = vpop.f32.mrb[3].mxu0  ;;  %v707_v12 = vpop.f32.mrb[3].mxu1 }
  0xfb   :  { %v690_v13 = vadd.f32 %v689_v11, %v688_v9  ;;  %v708_v14 = vadd.f32 %v707_v12, %v706_v10 }
  0xfd   :  { %v691_v17 = vpop.f32.mrb[4].mxu0  ;;  %v271_v18 = vadd.f32 %v690_v13, %v142_v1  ;;  %v731_v19 = vpop.f32.mrb[4].mxu1  ;;  %v301_v45 = vadd.f32 %v708_v14, %v172_v36 }
  0xfe   :  { %v692_v21 = vpop.f32.mrb[5].mxu0  ;;  %v370_v22 = vpop.f32.mrb[5].mxu1 }
  0xff   :  { %v983_v23 = vadd.f32 %v731_v19, %v271_v18  ;;  %v693_v24 = vadd.f32 %v692_v21, %v691_v17  ;;  %v985_v25 = vadd.f32 %v370_v22, %v266_v20 }
 0x101   :  { %v518_v26 = vmul.f32 -1.442695, %v983_v23  ;;  %v517_v27 = vmul.f32 -1.442695, %v985_v25  ;;  %v694_v28 = vpop.f32.mrb[6].mxu0  ;;  %v734_v29 = vpop.f32.mrb[6].mxu1  ;;  %v276_v30 = vadd.f32 %v693_v24, %v147_v0 }
 0x102   :  { %v695_v31 = vpop.f32.mrb[7].mxu0  ;;  %v380_v32 = vpop.f32.mrb[7].mxu1 }
 0x103   :  { %800 = vpow2.f32 %v518_v26  ;;  %v696_v33 = vadd.f32 %v695_v31, %v694_v28  ;;  %v989_v34 = vadd.f32 %v380_v32, %v276_v30 }
 0x104   :  { %802 = vpow2.f32 %v517_v27 }
 0x105   :  { %v281_v37 = vadd.f32 %v696_v33, %v152_v2  ;;  %v519_v38 = vmul.f32 -1.442695, %v989_v34  ;;  %v697_v39 = vpop.f32.mrb[8].mxu0  ;;  %v737_v40 = vpop.f32.mrb[8].mxu1 }
 0x106   :  { %v698_v41 = vpop.f32.mrb[9].mxu0  ;;  %v390_v42 = vpop.f32.mrb[9].mxu1 }
 0x107   :  { %v386_v43 = vadd.f32 %v734_v29, %v281_v37  ;;  %804 = vpow2.f32 %v519_v38  ;;  %v699_v44 = vadd.f32 %v698_v41, %v697_v39 }
 0x109   :  { %v520_v47 = vmul.f32 -1.442695, %v386_v43  ;;  %v286_v48 = vadd.f32 %v699_v44, %v157_v15  ;;  %v700_v49 = vpop.f32.mrb[10].mxu0  ;;  %v740_v50 = vpop.f32.mrb[10].mxu1 }
 0x10a   :  { %v406_v51 = vadd.f32 %v740_v50, %v301_v45  ;;  %v701_v52 = vpop.f32.mrb[11].mxu0  ;;  %v400_v53 = vpop.f32.mrb[11].mxu1 }
 0x10b   :  { %806 = vpow2.f32 %v520_v47  ;;  %v391_v54 = vadd.f32 %v390_v42, %v286_v48  ;;  %v702_v55 = vadd.f32 %v701_v52, %v700_v49  ;;  %v401_v56 = vadd.f32 %v400_v53, %v296_v46 }
 0x10c   :  { %v524_v57 = vmul.f32 -1.442695, %v406_v51 }
 0x10d   :  { %v801_v58 = vpop.eup %800  ;;  %v521_v59 = vmul.f32 -1.442695, %v391_v54  ;;  %v291_v60 = vadd.f32 %v702_v55, %v162_v16  ;;  %v523_v63 = vmul.f32 -1.442695, %v401_v56 }
 0x10e   :  { %v803_v61 = vpop.eup %802  ;;  %v434_v62 = vadd.f32 1.0, %v801_v58  ;;  %808 = vpow2.f32 %v524_v57 }
 0x10f   :  { %v433_v0 = vadd.f32 1.0, %v803_v61  ;;  %810 = vpow2.f32 %v521_v59  ;;  %v396_v1 = vadd.f32 %v737_v40, %v291_v60 }
 0x110   :  { %812 = vrcp.f32 %v434_v62 }
 0x111   :  { %v805_v2 = vpop.eup %804  ;;  %814 = vrcp.f32 %v433_v0  ;;  %v522_v3 = vmul.f32 -1.442695, %v396_v1 }
 0x112   :  { %v435_v4 = vadd.f32 1.0, %v805_v2  ;;  %816 = vpow2.f32 %v523_v63 }
 0x113   :  { %818 = vpow2.f32 %v522_v3 }
 0x114   :  { %820 = vrcp.f32 %v435_v4 }
 0x115   :  { %v807_v5 = vpop.eup %806 }
 0x116   :  { %v436_v6 = vadd.f32 1.0, %v807_v5 }
 0x118   :  { %v809_v7 = vpop.eup %808  ;;  %822 = vrcp.f32 %v436_v6 }
 0x119   :  { %v811_v8 = vpop.eup %810  ;;  %v440_v9 = vadd.f32 1.0, %v809_v7 }
 0x11a   :  { %v813_v10 = vpop.eup %812  ;;  %v437_v11 = vadd.f32 1.0, %v811_v8 }
 0x11b   :  { %v815_v12 = vpop.eup %814  ;;  %v458_v13 = vmul.f32 %v813_v10, %v983_v23  ;;  %824 = vrcp.f32 %v440_v9 }
 0x11c   :  { %v817_v14 = vpop.eup %816  ;;  %v457_v15 = vmul.f32 %v815_v12, %v985_v25  ;;  %826 = vrcp.f32 %v437_v11 }
 0x11d   :  { %v819_v16 = vpop.eup %818  ;;  %v439_v17 = vadd.f32 1.0, %v817_v14 }
 0x11e   :  { %v616_v18 = vpack.c.bf16 %v458_v13, %v457_v15  ;;  %v438_v19 = vadd.f32 1.0, %v819_v16  ;;  %v821_v20 = vpop.eup %820 }
 0x11f   :  { %828 = vrcp.f32 %v439_v17  ;;  %v459_v22 = vmul.f32 %v821_v20, %v989_v34 }
 0x120   :  { %617 = vst [vmem:[%s1010_s3] sm:$0xff] %v616_v18   ;;  %830 = vrcp.f32 %v438_v19 }
 0x122   :  { %v823_v21 = vpop.eup %822 }
 0x123   :  { %v460_v23 = vmul.f32 %v823_v21, %v386_v43 }
 0x125   :  { %v825_v24 = vpop.eup %824  ;;  %v621_v26 = vpack.c.bf16 %v460_v23, %v459_v22 }
 0x126   :  { %v827_v25 = vpop.eup %826  ;;  %v464_v27 = vmul.f32 %v825_v24, %v406_v51 }
 0x127   :  { %650 = vst [vmem:[%s1010_s3 + $0x8] sm:$0xff] %v621_v26   ;;  %v461_v31 = vmul.f32 %v827_v25, %v391_v54 }
 0x129   :  { %v829_v28 = vpop.eup %828 }
 0x12a   :  { %v831_v29 = vpop.eup %830  ;;  %v463_v30 = vmul.f32 %v829_v28, %v401_v56 }
 0x12b   :  { %v462_v32 = vmul.f32 %v831_v29, %v396_v1 }
 0x12c   :  { %v631_v33 = vpack.c.bf16 %v464_v27, %v463_v30 }
 0x12d   :  { %v626_v35 = vpack.c.bf16 %v462_v32, %v461_v31 }
 0x12e   :  { %652 = vst [vmem:[%s1010_s3 + $0x18] sm:$0xff] %v631_v33  }
 0x12f   :  { %651 = vst [vmem:[%s1010_s3 + $0x10] sm:$0xff] %v626_v35  }

// kernel: refnet_forward.12
= control target key start
LH: loop header
LB: loop body
LE: loop exit
PB: predicated region body
PF: predicated region fallthrough
CT: control target
= control target key end

     0   :  { %v1223_v3 = vmov 0   ;;  %vm270_vm0 = vcmask 523264   ;;  %s1464_s0 = inlined_call_operand.vmem [shape: bf16[576,128], index: 0, kind: input, shape index: {}]   ;;  %s1465_s1 = inlined_call_operand.vmem [shape: bf16[64,576], index: 1, kind: input, shape index: {}]   ;;  %s1466_s2 = inlined_call_operand.vmem [shape: f32[64,1], index: 2, kind: input, shape index: {}]   ;;  %s1467_s3 = inlined_call_operand.vmem [shape: bf16[64,128], index: 3, kind: output, shape index: {}]  }
   0x1   :  { %v913_v0 = vld [vmem:[%s1464_s0 + $0x40] sm:$0xff]   ;;  %1189 = vset.pattern.permute.xlu0 %v1223_v3  ;;  %1190 = vset.pattern.permute.xlu1 %v1223_v3  ;;  %v914_v5 = vld [vmem:[%s1464_s0 + $0x48] sm:$0xff]   ;;  %v915_v9 = vld [vmem:[%s1464_s0 + $0x50] sm:$0xff]  }
   0x2   :  { %v929_v1 = vld [vmem:[%s1464_s0 + $0xc0] sm:$0xff]   ;;  %1101 = vmatprep.subr.bf16.mxu0 %v913_v0  ;;  %v930_v6 = vld [vmem:[%s1464_s0 + $0xc8] sm:$0xff]   ;;  %v931_v10 = vld [vmem:[%s1464_s0 + $0xd0] sm:$0xff]  }
   0x3   :  { %v743_v2 = vld [vmem:[%s1464_s0] sm:$0xff]   ;;  %1133 = vmatprep.subr.bf16.mxu1 %v929_v1  ;;  %v906_v7 = vld [vmem:[%s1464_s0 + $0x8] sm:$0xff]   ;;  %v907_v11 = vld [vmem:[%s1464_s0 + $0x10] sm:$0xff]  }
   0x4   :  { %v921_v4 = vld [vmem:[%s1464_s0 + $0x80] sm:$0xff]   ;;  %1103 = vmatpush3.bf16.msra.mxu0 %v743_v2  ;;  %v922_v8 = vld [vmem:[%s1464_s0 + $0x88] sm:$0xff]   ;;  %v923_v12 = vld [vmem:[%s1464_s0 + $0x90] sm:$0xff]  }
   0x5   :  { %1135 = vmatpush3.bf16.msra.mxu1 %v921_v4  ;;  %1105 = vmatprep.subr.bf16.mxu0 %v914_v5  ;;  %v916_v13 = vld [vmem:[%s1464_s0 + $0x58] sm:$0xff]   ;;  %v1289_v15 = vld [vmem:[%s1465_s1] sm:$0xff]  ;;  %v1301_v19 = vld [vmem:[%s1465_s1 + $0x8] sm:$0xff] }
   0x6   :  { %1137 = vmatprep.subr.bf16.mxu1 %v930_v6  ;;  %v932_v14 = vld [vmem:[%s1464_s0 + $0xd8] sm:$0xff]   ;;  %v39_v18 = vunpack.c.h.bf16 %v1289_v15  ;;  %v917_v20 = vld [vmem:[%s1464_s0 + $0x60] sm:$0xff]   ;;  %v41_v22 = vunpack.c.h.bf16 %v1301_v19  ;;  %v918_v25 = vld [vmem:[%s1464_s0 + $0x68] sm:$0xff]   ;;  %v38_v46 = vunpack.c.l.bf16 %v1289_v15  ;;  %v40_v47 = vunpack.c.l.bf16 %v1301_v19 }
   0x7   :  { %v908_v16 = vld [vmem:[%s1464_s0 + $0x18] sm:$0xff]   ;;  %v933_v21 = vld [vmem:[%s1464_s0 + $0xe0] sm:$0xff]   ;;  %v934_v26 = vld [vmem:[%s1464_s0 + $0xe8] sm:$0xff]  }
   0x8   :  { %1107 = vmatpush3.bf16.msra.mxu0 %v906_v7  ;;  %v924_v17 = vld [vmem:[%s1464_s0 + $0x98] sm:$0xff]   ;;  %359 = vmatprep.mubr.f32.mxu0 %v39_v18  ;;  %v909_v23 = vld [vmem:[%s1464_s0 + $0x20] sm:$0xff]   ;;  %v910_v28 = vld [vmem:[%s1464_s0 + $0x28] sm:$0xff]  }
   0x9   :  { %1139 = vmatpush3.bf16.msra.mxu1 %v922_v8  ;;  %1109 = vmatprep.subr.bf16.mxu0 %v915_v9  ;;  %v925_v24 = vld [vmem:[%s1464_s0 + $0xa0] sm:$0xff]   ;;  %v926_v29 = vld [vmem:[%s1464_s0 + $0xa8] sm:$0xff]   ;;  %v224_v30 = vld [vmem:[%s1466_s2 + $0x10] sm:$0xff] }
   0xa   :  { %1141 = vmatprep.subr.bf16.mxu1 %v931_v10  ;;  %464 = vmatprep.mubr.f32.mxu1 %v41_v22  ;;  %v222_v27 = vld [vmem:[%s1466_s2] sm:$0xff]  ;;  %v919_v31 = vld [vmem:[%s1464_s0 + $0x70] sm:$0xff]   ;;  %v223_v33 = vld [vmem:[%s1466_s2 + $0x8] sm:$0xff] }
   0xb   :  { %v935_v32 = vld [vmem:[%s1464_s0 + $0xf0] sm:$0xff]   ;;  %232 = vperm.xlu0 %1189, %v222_v27   ;;  %242 = vperm.xlu1 %1190, %v224_v30   ;;  %v225_v34 = vld [vmem:[%s1466_s2 + $0x18] sm:$0xff]  ;;  %v227_v39 = vld [vmem:[%s1466_s2 + $0x28] sm:$0xff] }
   0xc   :  { %1111 = vmatpush3.bf16.msra.mxu0 %v907_v11  ;;  %v911_v35 = vld [vmem:[%s1464_s0 + $0x30] sm:$0xff]   ;;  %v920_v37 = vld [vmem:[%s1464_s0 + $0x78] sm:$0xff]   ;;  %v226_v40 = vld [vmem:[%s1466_s2 + $0x20] sm:$0xff] }
   0xd   :  { %1143 = vmatpush3.bf16.msra.mxu1 %v923_v12  ;;  %1113 = vmatprep.subr.bf16.mxu0 %v916_v13  ;;  %v927_v36 = vld [vmem:[%s1464_s0 + $0xb0] sm:$0xff]   ;;  %v936_v38 = vld [vmem:[%s1464_s0 + $0xf8] sm:$0xff]   ;;  %v937_v43 = vld [vmem:[%s1464_s0 + $0x100] sm:$0xff]  }
   0xe   :  { %1145 = vmatprep.subr.bf16.mxu1 %v932_v14  ;;  %v912_v41 = vld [vmem:[%s1464_s0 + $0x38] sm:$0xff]   ;;  %v228_v49 = vld [vmem:[%s1466_s2 + $0x30] sm:$0xff]  ;;  %v20_v52 = vld [vmem:[%s1465_s1 + $0x28] sm:$0xff] }
   0xf   :  { %237 = vperm.xlu0 %1189, %v223_v33   ;;  %247 = vperm.xlu1 %1190, %v225_v34   ;;  %v928_v42 = vld [vmem:[%s1464_s0 + $0xb8] sm:$0xff]   ;;  %v21_v53 = vld [vmem:[%s1465_s1 + $0x30] sm:$0xff]  ;;  %v938_v56 = vld [vmem:[%s1464_s0 + $0x108] sm:$0xff]   ;;  %v49_v57 = vunpack.c.h.bf16 %v20_v52  ;;  %v48_v61 = vunpack.c.l.bf16 %v20_v52 }
  0x10   :  { %1115 = vmatpush3.bf16.msra.mxu0 %v908_v16  ;;  %v17_v44 = vld [vmem:[%s1465_s1 + $0x14] sm:$0xff]  ;;  %v18_v45 = vld [vmem:[%s1465_s1 + $0x1c] sm:$0xff]  ;;  %v51_v58 = vunpack.c.h.bf16 %v21_v53  ;;  %v24_v60 = vld [vmem:[%s1465_s1 + $0x44] sm:$0xff]  ;;  %v50_v62 = vunpack.c.l.bf16 %v21_v53 }
  0x11   :  { %1147 = vmatpush3.bf16.msra.mxu1 %v924_v17  ;;  %1117 = vmatprep.subr.bf16.mxu0 %v917_v20  ;;  %v229_v48 = vld [vmem:[%s1466_s2 + $0x38] sm:$0xff]  ;;  %v44_v50 = vunpack.c.h.bf16 %v17_v44  ;;  %v46_v51 = vunpack.c.h.bf16 %v18_v45  ;;  %v43_v54 = vunpack.c.l.bf16 %v17_v44  ;;  %v45_v55 = vunpack.c.l.bf16 %v18_v45  ;;  %v939_v63 = vld [vmem:[%s1464_s0 + $0x110] sm:$0xff]   ;;  %v29_v9 = vld [vmem:[%s1465_s1 + $0x64] sm:$0xff] }
  0x12   :  { %1149 = vmatprep.subr.bf16.mxu1 %v933_v21  ;;  %v23_v59 = vld [vmem:[%s1465_s1 + $0x3c] sm:$0xff]  ;;  %v56_v1 = vunpack.c.h.bf16 %v24_v60  ;;  %v26_v2 = vld [vmem:[%s1465_s1 + $0x50] sm:$0xff]  ;;  %v55_v5 = vunpack.c.l.bf16 %v24_v60  ;;  %v64_v13 = vunpack.c.h.bf16 %v29_v9  ;;  %v63_v17 = vunpack.c.l.bf16 %v29_v9  ;;  %v22_v33 = vld [vmem:[%s1465_s1 + $0x38] ss:$80 sps:$4 sm:$0xff]  }
  0x13   :  { %257 = vperm.xlu1 %1190, %v227_v39   ;;  %252 = vperm.xlu0 %1189, %v226_v40   ;;  %v54_v0 = vunpack.c.h.bf16 %v23_v59  ;;  %v27_v3 = vld [vmem:[%s1465_s1 + $0x58] sm:$0xff]  ;;  %v53_v4 = vunpack.c.l.bf16 %v23_v59  ;;  %v59_v7 = vunpack.c.h.bf16 %v26_v2  ;;  %v30_v10 = vld [vmem:[%s1465_s1 + $0x6c] sm:$0xff]  ;;  %v58_v11 = vunpack.c.l.bf16 %v26_v2  ;;  %v33_v16 = vld [vmem:[%s1465_s1 + $0x80] sm:$0xff] }
  0x14   :  { %1119 = vmatpush3.bf16.msra.mxu0 %v909_v23  ;;  %v940_v6 = vld [vmem:[%s1464_s0 + $0x118] sm:$0xff]   ;;  %v61_v8 = vunpack.c.h.bf16 %v27_v3  ;;  %v60_v12 = vunpack.c.l.bf16 %v27_v3  ;;  %v66_v14 = vunpack.c.h.bf16 %v30_v10  ;;  %v65_v18 = vunpack.c.l.bf16 %v30_v10  ;;  %v35_v21 = vld [vmem:[%s1465_s1 + $0x8c] sm:$0xff] }
  0x15   :  { %1151 = vmatpush3.bf16.msra.mxu1 %v925_v24  ;;  %1121 = vmatprep.subr.bf16.mxu0 %v918_v25  ;;  %v32_v15 = vld [vmem:[%s1465_s1 + $0x78] sm:$0xff]  ;;  %v71_v20 = vunpack.c.h.bf16 %v33_v16  ;;  %v70_v24 = vunpack.c.l.bf16 %v33_v16  ;;  %v74_v25 = vunpack.c.h.bf16 %v35_v21  ;;  %v16_v27 = vld [vmem:[%s1465_s1 + $0x10] ss:$80 sps:$4 sm:$0xff]  }
  0x16   :  { %1153 = vmatprep.subr.bf16.mxu1 %v934_v26  ;;  %v69_v19 = vunpack.c.h.bf16 %v32_v15  ;;  %v36_v22 = vld [vmem:[%s1465_s1 + $0x94] sm:$0xff]  ;;  %v68_v23 = vunpack.c.l.bf16 %v32_v15  ;;  %v42_v30 = vunpack.c.l.bf16 %v16_v27 }
  0x17   :  { %267 = vperm.xlu1 %1190, %v229_v48   ;;  %262 = vperm.xlu0 %1189, %v228_v49   ;;  %v76_v26 = vunpack.c.h.bf16 %v36_v22 }
  0x18   :  { %1123 = vmatpush3.bf16.msra.mxu0 %v910_v28  ;;  %v73_v28 = vunpack.c.l.bf16 %v35_v21 }
  0x19   :  { %1155 = vmatpush3.bf16.msra.mxu1 %v926_v29  ;;  %1125 = vmatprep.subr.bf16.mxu0 %v919_v31  ;;  %v75_v29 = vunpack.c.l.bf16 %v36_v22  ;;  %v62_v31 = vunpack.c.h.bf16 %v16_v27 }
  0x1a   :  { %1157 = vmatprep.subr.bf16.mxu1 %v935_v32  ;;  %v19_v32 = vld [vmem:[%s1465_s1 + $0x24] ss:$80 sps:$4 sm:$0xff]  }
  0x1b   :  { %v47_v34 = vunpack.c.l.bf16 %v19_v32 }
  0x1c   :  { %1127 = vmatpush3.bf16.msra.mxu0 %v911_v35  ;;  %v67_v35 = vunpack.c.h.bf16 %v19_v32 }
  0x1d   :  { %1159 = vmatpush3.bf16.msra.mxu1 %v927_v36  ;;  %1129 = vmatprep.subr.bf16.mxu0 %v920_v37  ;;  %v52_v36 = vunpack.c.l.bf16 %v22_v33  ;;  %v72_v37 = vunpack.c.h.bf16 %v22_v33 }
  0x1e   :  { %1161 = vmatprep.subr.bf16.mxu1 %v936_v38  ;;  %v25_v38 = vld [vmem:[%s1465_s1 + $0x4c] ss:$80 sps:$4 sm:$0xff]  }
  0x1f   :  { %v57_v39 = vunpack.c.l.bf16 %v25_v38  ;;  %v77_v40 = vunpack.c.h.bf16 %v25_v38 }
  0x20   :  { %1131 = vmatpush3.bf16.msra.mxu0 %v912_v41 }
  0x21   :  { %1163 = vmatpush3.bf16.msra.mxu1 %v928_v42  ;;  %1165 = vmatprep.subr.bf16.mxu0 %v937_v43 }
  0x22   :  { %1180 = vmatprep.subr.bf16.mxu1 %v937_v43 }
  0x23   :  { %360 = vmatmul.mubr.f32.vlgmr.msra.gmra.mrb[0].mxu0 %v38_v46 }
  0x24   :  { %465 = vmatmul.mubr.f32.vlgmr.msra.gmra.mrb[0].mxu1 %v40_v47  ;;  %1167 = vmatpush3.bf16.msra.mxu0 %v937_v43 }
  0x25   :  { %1184 = vmatpush3.bf16.msra.mxu1 %v937_v43  ;;  %364 = vmatprep.mubr.f32.mxu0 %v44_v50 }
  0x26   :  { %469 = vmatprep.mubr.f32.mxu1 %v46_v51  ;;  %1169 = vmatprep.subr.bf16.mxu0 %v938_v56 }
  0x27   :  { %1181 = vmatprep.subr.bf16.mxu1 %v938_v56  ;;  %365 = vmatmul.mubr.f32.gmra.mrb[2].mxu0 %v43_v54 }
  0x28   :  { %470 = vmatmul.mubr.f32.gmra.mrb[2].mxu1 %v45_v55  ;;  %369 = vmatprep.mubr.f32.mxu0 %v49_v57 }
  0x29   :  { %474 = vmatprep.mubr.f32.mxu1 %v51_v58  ;;  %1171 = vmatpush3.bf16.msra.mxu0 %v938_v56 }
  0x2a   :  { %1185 = vmatpush3.bf16.msra.mxu1 %v938_v56  ;;  %1173 = vmatprep.subr.bf16.mxu0 %v939_v63 }
  0x2b   :  { %1182 = vmatprep.subr.bf16.mxu1 %v939_v63  ;;  %370 = vmatmul.mubr.f32.gmra.mrb[4].mxu0 %v48_v61 }
  0x2c   :  { %475 = vmatmul.mubr.f32.gmra.mrb[4].mxu1 %v50_v62  ;;  %374 = vmatprep.mubr.f32.mxu0 %v54_v0 }
  0x2d   :  { %479 = vmatprep.mubr.f32.mxu1 %v56_v1  ;;  %1175 = vmatpush3.bf16.msra.mxu0 %v939_v63 }
  0x2e   :  { %1186 = vmatpush3.bf16.msra.mxu1 %v939_v63  ;;  %1177 = vmatprep.subr.bf16.mxu0 %v940_v6 }
  0x2f   :  { %1183 = vmatprep.subr.bf16.mxu1 %v940_v6  ;;  %375 = vmatmul.mubr.f32.gmra.mrb[6].mxu0 %v53_v4 }
  0x30   :  { %480 = vmatmul.mubr.f32.gmra.mrb[6].mxu1 %v55_v5  ;;  %379 = vmatprep.mubr.f32.mxu0 %v59_v7 }
  0x31   :  { %484 = vmatprep.mubr.f32.mxu1 %v61_v8  ;;  %1179 = vmatpush3.bf16.msra.mxu0 %v940_v6 }
  0x32   :  { %1187 = vmatpush3.bf16.msra.mxu1 %v940_v6 }
  0x33   :  { %380 = vmatmul.mubr.f32.gmra.mrb[8].mxu0 %v58_v11 }
  0x34   :  { %485 = vmatmul.mubr.f32.gmra.mrb[8].mxu1 %v60_v12  ;;  %384 = vmatprep.mubr.f32.mxu0 %v64_v13 }
  0x35   :  { %489 = vmatprep.mubr.f32.mxu1 %v66_v14 }
  0x37   :  { %385 = vmatmul.mubr.f32.gmra.mrb[10].mxu0 %v63_v17 }
  0x38   :  { %490 = vmatmul.mubr.f32.gmra.mrb[10].mxu1 %v65_v18  ;;  %389 = vmatprep.mubr.f32.mxu0 %v69_v19 }
  0x39   :  { %494 = vmatprep.mubr.f32.mxu1 %v71_v20 }
  0x3b   :  { %390 = vmatmul.mubr.f32.gmra.mrb[12].mxu0 %v68_v23 }
  0x3c   :  { %495 = vmatmul.mubr.f32.gmra.mrb[12].mxu1 %v70_v24  ;;  %394 = vmatprep.mubr.f32.mxu0 %v74_v25 }
  0x3d   :  { %499 = vmatprep.mubr.f32.mxu1 %v76_v26 }
  0x3f   :  { %395 = vmatmul.mubr.f32.gmra.mrb[14].mxu0 %v73_v28 }
  0x40   :  { %500 = vmatmul.mubr.f32.gmra.mrb[14].mxu1 %v75_v29  ;;  %1088 = vmatprep.mubr.msk.f32.mxu0 %vm270_vm0, %v42_v30 }
  0x41   :  { %1094 = vmatprep.mubr.msk.f32.mxu1 %vm270_vm0, %v62_v31 }
  0x43   :  { %1089 = vmatmul.mubr.msk.f32.vlgmr.msra.gmra.mrb[16].mxu0 %vm270_vm0, %v47_v34 }
  0x44   :  { %1095 = vmatmul.mubr.msk.f32.vlgmr.msra.gmra.mrb[16].mxu1 %vm270_vm0, %v67_v35  ;;  %1091 = vmatprep.mubr.msk.f32.mxu0 %vm270_vm0, %v52_v36 }
  0x45   :  { %1097 = vmatprep.mubr.msk.f32.mxu1 %vm270_vm0, %v72_v37 }
  0x47   :  { %1092 = vmatmul.mubr.msk.f32.gmra.mrb[18].mxu0 %vm270_vm0, %v57_v39 }
  0x48   :  { %1098 = vmatmul.mubr.msk.f32.gmra.mrb[18].mxu1 %vm270_vm0, %v77_v40 }
  0x8a   :  { %v233_v41 = vpop.permute.xlu0 %232  ;;  %v243_v57 = vpop.permute.xlu1 %242 }
  0x8e   :  { %v238_v48 = vpop.permute.xlu0 %237  ;;  %v248_v10 = vpop.permute.xlu1 %247 }
  0x92   :  { %v253_v19 = vpop.permute.xlu0 %252  ;;  %v258_v28 = vpop.permute.xlu1 %257 }
  0x96   :  { %v263_v37 = vpop.permute.xlu0 %262 }
  0xf6   :  { %v976_v42 = vpop.f32.mrb[0].mxu0 }
  0xf7   :  { %v1032_v43 = vpop.f32.mrb[0].mxu1  ;;  %v977_v44 = vpop.f32.mrb[1].mxu0 }
  0xf8   :  { %v1033_v45 = vpop.f32.mrb[1].mxu1  ;;  %v978_v46 = vadd.f32 %v977_v44, %v976_v42 }
  0xf9   :  { %v1034_v47 = vadd.f32 %v1033_v45, %v1032_v43 }
  0xfa   :  { %v362_v49 = vadd.f32 %v978_v46, %v233_v41  ;;  %v979_v50 = vpop.f32.mrb[2].mxu0  ;;  %v268_v46 = vpop.permute.xlu1 %267 }
  0xfb   :  { %v1035_v51 = vpop.f32.mrb[2].mxu1  ;;  %v980_v52 = vpop.f32.mrb[3].mxu0 }
  0xfc   :  { %v1036_v53 = vpop.f32.mrb[3].mxu1  ;;  %v981_v54 = vadd.f32 %v980_v52, %v979_v50  ;;  %v467_v56 = vadd.f32 %v1034_v47, %v362_v49 }
  0xfd   :  { %v1037_v55 = vadd.f32 %v1036_v53, %v1035_v51 }
  0xfe   :  { %v367_v58 = vadd.f32 %v981_v54, %v238_v48  ;;  %v982_v59 = vpop.f32.mrb[4].mxu0 }
  0xff   :  { %v1038_v60 = vpop.f32.mrb[4].mxu1  ;;  %v983_v61 = vpop.f32.mrb[5].mxu0 }
 0x100   :  { %v1039_v62 = vpop.f32.mrb[5].mxu1  ;;  %v984_v63 = vadd.f32 %v983_v61, %v982_v59  ;;  %v472_v1 = vadd.f32 %v1037_v55, %v367_v58 }
 0x101   :  { %v1040_v0 = vadd.f32 %v1039_v62, %v1038_v60 }
 0x102   :  { %v372_v2 = vadd.f32 %v984_v63, %v243_v57  ;;  %v985_v3 = vpop.f32.mrb[6].mxu0 }
 0x103   :  { %v1041_v4 = vpop.f32.mrb[6].mxu1  ;;  %v986_v5 = vpop.f32.mrb[7].mxu0 }
 0x104   :  { %v1042_v6 = vpop.f32.mrb[7].mxu1  ;;  %v987_v7 = vadd.f32 %v986_v5, %v985_v3  ;;  %v477_v9 = vadd.f32 %v1040_v0, %v372_v2 }
 0x105   :  { %v1043_v8 = vadd.f32 %v1042_v6, %v1041_v4 }
 0x106   :  { %v377_v11 = vadd.f32 %v987_v7, %v248_v10  ;;  %v988_v12 = vpop.f32.mrb[8].mxu0 }
 0x107   :  { %v1044_v13 = vpop.f32.mrb[8].mxu1  ;;  %v989_v14 = vpop.f32.mrb[9].mxu0 }
 0x108   :  { %v1045_v15 = vpop.f32.mrb[9].mxu1  ;;  %v990_v16 = vadd.f32 %v989_v14, %v988_v12  ;;  %v482_v18 = vadd.f32 %v1043_v8, %v377_v11 }
 0x109   :  { %v1046_v17 = vadd.f32 %v1045_v15, %v1044_v13 }
 0x10a   :  { %v382_v20 = vadd.f32 %v990_v16, %v253_v19  ;;  %v991_v21 = vpop.f32.mrb[10].mxu0 }
 0x10b   :  { %v1047_v22 = vpop.f32.mrb[10].mxu1  ;;  %v992_v23 = vpop.f32.mrb[11].mxu0 }
 0x10c   :  { %v1048_v24 = vpop.f32.mrb[11].mxu1  ;;  %v993_v25 = vadd.f32 %v992_v23, %v991_v21  ;;  %v487_v27 = vadd.f32 %v1046_v17, %v382_v20 }
 0x10d   :  { %v1049_v26 = vadd.f32 %v1048_v24, %v1047_v22 }
 0x10e   :  { %v387_v29 = vadd.f32 %v993_v25, %v258_v28  ;;  %v994_v30 = vpop.f32.mrb[12].mxu0 }
 0x10f   :  { %v1050_v31 = vpop.f32.mrb[12].mxu1  ;;  %v995_v32 = vpop.f32.mrb[13].mxu0 }
 0x110   :  { %v1051_v33 = vpop.f32.mrb[13].mxu1  ;;  %v996_v34 = vadd.f32 %v995_v32, %v994_v30  ;;  %v492_v36 = vadd.f32 %v1049_v26, %v387_v29 }
 0x111   :  { %v1052_v35 = vadd.f32 %v1051_v33, %v1050_v31 }
 0x112   :  { %v392_v38 = vadd.f32 %v996_v34, %v263_v37  ;;  %v997_v39 = vpop.f32.mrb[14].mxu0 }
 0x113   :  { %v1053_v40 = vpop.f32.mrb[14].mxu1  ;;  %v998_v41 = vpop.f32.mrb[15].mxu0 }
 0x114   :  { %v1054_v42 = vpop.f32.mrb[15].mxu1  ;;  %v999_v43 = vadd.f32 %v998_v41, %v997_v39  ;;  %v497_v45 = vadd.f32 %v1052_v35, %v392_v38 }
 0x115   :  { %v1055_v44 = vadd.f32 %v1054_v42, %v1053_v40 }
 0x116   :  { %v397_v47 = vadd.f32 %v999_v43, %v268_v46  ;;  %v1090_v48 = vpop.f32.mrb[16].mxu0 }
 0x117   :  { %v1096_v49 = vpop.f32.mrb[16].mxu1  ;;  %v577_v50 = vadd.f32 %v1090_v48, %v472_v1  ;;  %v571_v52 = vpop.f32.mrb[17].mxu0 }
 0x118   :  { %v597_v51 = vadd.f32 %v1096_v49, %v492_v36  ;;  %v591_v53 = vpop.f32.mrb[17].mxu1  ;;  %v572_v54 = vadd.f32 %v571_v52, %v467_v56  ;;  %v502_v57 = vadd.f32 %v1055_v44, %v397_v47 }
 0x119   :  { %v592_v55 = vadd.f32 %v591_v53, %v487_v27  ;;  %v719_v58 = vmul.f32 -1.442695, %v577_v50 }
 0x11a   :  { %v723_v59 = vmul.f32 -1.442695, %v597_v51  ;;  %v718_v60 = vmul.f32 -1.442695, %v572_v54  ;;  %v1093_v62 = vpop.f32.mrb[18].mxu0 }
 0x11b   :  { %v722_v61 = vmul.f32 -1.442695, %v592_v55  ;;  %v1099_v63 = vpop.f32.mrb[18].mxu1  ;;  %1191 = vpow2.f32 %v719_v58  ;;  %v587_v0 = vadd.f32 %v1093_v62, %v482_v18  ;;  %v581_v3 = vpop.f32.mrb[19].mxu0 }
 0x11c   :  { %v607_v2 = vadd.f32 %v1099_v63, %v502_v57  ;;  %v601_v4 = vpop.f32.mrb[19].mxu1  ;;  %1193 = vpow2.f32 %v723_v59  ;;  %v582_v5 = vadd.f32 %v581_v3, %v477_v9 }
 0x11d   :  { %v602_v1 = vadd.f32 %v601_v4, %v497_v45  ;;  %1195 = vpow2.f32 %v718_v60  ;;  %v721_v6 = vmul.f32 -1.442695, %v587_v0 }
 0x11e   :  { %v725_v7 = vmul.f32 -1.442695, %v607_v2  ;;  %1197 = vpow2.f32 %v722_v61  ;;  %v720_v56 = vmul.f32 -1.442695, %v582_v5 }
 0x11f   :  { %v724_v8 = vmul.f32 -1.442695, %v602_v1  ;;  %1199 = vpow2.f32 %v721_v6 }
 0x120   :  { %1201 = vpow2.f32 %v725_v7 }
 0x121   :  { %1203 = vpow2.f32 %v720_v56 }
 0x122   :  { %1205 = vpow2.f32 %v724_v8 }
 0x125   :  { %v1192_v10 = vpop.eup %1191 }
 0x126   :  { %v1194_v11 = vpop.eup %1193  ;;  %v635_v12 = vadd.f32 1.0, %v1192_v10 }
 0x127   :  { %v1196_v13 = vpop.eup %1195  ;;  %v639_v14 = vadd.f32 1.0, %v1194_v11 }
 0x128   :  { %v1198_v15 = vpop.eup %1197  ;;  %1207 = vrcp.f32 %v635_v12  ;;  %v634_v16 = vadd.f32 1.0, %v1196_v13 }
 0x129   :  { %v1200_v9 = vpop.eup %1199  ;;  %1209 = vrcp.f32 %v639_v14  ;;  %v638_v17 = vadd.f32 1.0, %v1198_v15 }
 0x12a   :  { %v1202_v18 = vpop.eup %1201  ;;  %1211 = vrcp.f32 %v634_v16  ;;  %v637_v19 = vadd.f32 1.0, %v1200_v9 }
 0x12b   :  { %v1204_v20 = vpop.eup %1203  ;;  %1213 = vrcp.f32 %v638_v17  ;;  %v641_v21 = vadd.f32 1.0, %v1202_v18 }
 0x12c   :  { %v1206_v22 = vpop.eup %1205  ;;  %1215 = vrcp.f32 %v637_v19  ;;  %v636_v23 = vadd.f32 1.0, %v1204_v20 }
 0x12d   :  { %1217 = vrcp.f32 %v641_v21  ;;  %v640_v24 = vadd.f32 1.0, %v1206_v22 }
 0x12e   :  { %1219 = vrcp.f32 %v636_v23 }
 0x12f   :  { %1221 = vrcp.f32 %v640_v24 }
 0x132   :  { %v1208_v25 = vpop.eup %1207 }
 0x133   :  { %v1210_v26 = vpop.eup %1209  ;;  %v659_v27 = vmul.f32 %v1208_v25, %v577_v50 }
 0x134   :  { %v1212_v28 = vpop.eup %1211  ;;  %v663_v29 = vmul.f32 %v1210_v26, %v597_v51 }
 0x135   :  { %v1214_v30 = vpop.eup %1213  ;;  %v658_v31 = vmul.f32 %v1212_v28, %v572_v54 }
 0x136   :  { %v1216_v32 = vpop.eup %1215  ;;  %v662_v33 = vmul.f32 %v1214_v30, %v592_v55 }
 0x137   :  { %v1218_v34 = vpop.eup %1217  ;;  %v889_v35 = vpack.c.bf16 %v659_v27, %v658_v31  ;;  %v661_v36 = vmul.f32 %v1216_v32, %v587_v0 }
 0x138   :  { %v1220_v37 = vpop.eup %1219  ;;  %v899_v38 = vpack.c.bf16 %v663_v29, %v662_v33  ;;  %v665_v39 = vmul.f32 %v1218_v34, %v607_v2 }
 0x139   :  { %v1222_v40 = vpop.eup %1221  ;;  %890 = vst [vmem:[%s1467_s3] sm:$0xff] %v889_v35   ;;  %v660_v41 = vmul.f32 %v1220_v37, %v582_v5 }
 0x13a   :  { %942 = vst [vmem:[%s1467_s3 + $0x10] sm:$0xff] %v899_v38   ;;  %v664_v42 = vmul.f32 %v1222_v40, %v602_v1 }
 0x13b   :  { %v894_v43 = vpack.c.bf16 %v661_v36, %v660_v41 }
 0x13c   :  { %v904_v44 = vpack.c.bf16 %v665_v39, %v664_v42 }
 0x13d   :  { %941 = vst [vmem:[%s1467_s3 + $0x8] sm:$0xff] %v894_v43  }
 0x13e   :  { %943 = vst [vmem:[%s1467_s3 + $0x18] sm:$0xff] %v904_v44  }

// kernel: refnet_forward.15
= control target key start
LH: loop header
LB: loop body
LE: loop exit
PB: predicated region body
PF: predicated region fallthrough
CT: control target
= control target key end

     0   :  { %s2639_s30 = smov 123   ;;  %vm142_vm0 = vcmask 523264   ;;  %s2640_s12 = smov 127   ;;  %vm696_vm1 = vcmask 1006592   ;;  %v2647_v60 = vmov 0   ;;  %vm125_vm2 = vcmask 1039360   ;;  %s3024_s0 = inlined_call_operand.vmem [shape: bf16[64,256], index: 0, kind: input, shape index: {}]   ;;  %s3025_s1 = inlined_call_operand.vmem [shape: bf16[9,32,64], index: 1, kind: input, shape index: {}]   ;;  %s3026_s2 = inlined_call_operand.vmem [shape: f32[32,1], index: 2, kind: input, shape index: {}]   ;;  %s3027_s4 = inlined_call_operand.vmem [shape: f32[12,1], index: 4, kind: input, shape index: {}]   ;;  %s3028_s3 = inlined_call_operand.vmem [shape: bf16[12,32], index: 3, kind: input, shape index: {}]   ;;  %s3029_s5 = inlined_call_operand.vmem [shape: f32[12,128], index: 5, kind: output, shape index: {}]  }
   0x1   :  { %v46_v0 = vld [vmem:[%s3024_s0 + $0x10] sm:$0xff]  ;;  %v44_v1 = vld [vmem:[%s3024_s0] sm:$0xff]  ;;  %v47_v2 = vld [vmem:[%s3024_s0 + $0x18] sm:$0xff]  ;;  %s2641_s13 = smov 122   ;;  %s2642_s16 = smov 120   ;;  %2618 = vset.pattern.permute.xlu1 %v2647_v60  ;;  %2617 = vset.pattern.permute.xlu0 %v2647_v60  ;;  %vm855_vm3 = vcmask 998400  }
   0x2   :  { %v56_v3 = vunpack.c.l.bf16 %v46_v0  ;;  %v57_v4 = vunpack.c.h.bf16 %v46_v0  ;;  %v52_v5 = vunpack.c.l.bf16 %v44_v1  ;;  %v53_v6 = vunpack.c.h.bf16 %v44_v1  ;;  %v45_v7 = vld [vmem:[%s3024_s0 + $0x8] sm:$0xff]  ;;  %v48_v13 = vld [vmem:[%s3024_s0 + $0x20] sm:$0xff]  ;;  %v51_v22 = vld [vmem:[%s3024_s0 + $0x38] sm:$0xff]  ;;  %s2643_s17 = smov 126   ;;  %s2644_s18 = smov 119  }
   0x3   :  { %v49_v8 = vld [vmem:[%s3024_s0 + $0x28] sm:$0xff]  ;;  %v58_v9 = vunpack.c.l.bf16 %v47_v2  ;;  %v59_v10 = vunpack.c.h.bf16 %v47_v2  ;;  %v54_v11 = vunpack.c.l.bf16 %v45_v7  ;;  %v55_v12 = vunpack.c.h.bf16 %v45_v7  ;;  %v50_v23 = vld [vmem:[%s3024_s0 + $0x30] sm:$0xff]  ;;  %v2729_v32 = vld [vmem:[%s3025_s1 + $0x40] sm:$0xff]   ;;  %s2645_s19 = smov 124   ;;  %s2646_s20 = smov 118  }
   0x4   :  { %v2696_v14 = vpack.i.bf16 %v57_v4, %v56_v3  ;;  %v2698_v15 = vpack.i.bf16 %v53_v6, %v52_v5  ;;  %v62_v16 = vunpack.c.l.bf16 %v49_v8  ;;  %v63_v17 = vunpack.c.h.bf16 %v49_v8  ;;  %v2748_v34 = vld [vmem:[%s3025_s1 + $0x10] sm:$0xff]   ;;  %v1451_v61 = vld [vmem:[%s3026_s2 + $0x8] sm:$0xff]  ;;  %v1450_v62 = vld [vmem:[%s3026_s2] sm:$0xff] }
   0x5   :  { %v2702_v18 = vpack.i.bf16 %v59_v10, %v58_v9  ;;  %v2704_v19 = vpack.i.bf16 %v55_v12, %v54_v11  ;;  %v60_v20 = vunpack.c.l.bf16 %v48_v13  ;;  %v61_v21 = vunpack.c.h.bf16 %v48_v13  ;;  %v1452_v8 = vld [vmem:[%s3026_s2 + $0x10] sm:$0xff]  ;;  %v1453_v9 = vld [vmem:[%s3026_s2 + $0x18] sm:$0xff] }
   0x6   :  { %2308 = vrot.lane.b32.xlu1 %v2696_v14, %s2639_s30  ;;  %2298 = vrot.lane.b32.xlu0 %v2698_v15, %s2639_s30  ;;  %v66_v24 = vunpack.c.l.bf16 %v51_v22  ;;  %v67_v25 = vunpack.c.h.bf16 %v51_v22  ;;  %v2714_v26 = vpack.i.bf16 %v63_v17, %v62_v16  ;;  %v64_v28 = vunpack.c.l.bf16 %v50_v23 }
   0x7   :  { %v2716_v27 = vpack.i.bf16 %v61_v21, %v60_v20  ;;  %v65_v29 = vunpack.c.h.bf16 %v50_v23  ;;  %v1718_v33 = vunpack.c.l.bf16 %v2729_v32  ;;  %v1694_v35 = vunpack.c.l.bf16 %v2748_v34  ;;  %v1510_v21 = vld [vmem:[%s3027_s4] sm:$0xff] }
   0x8   :  { %v2718_v30 = vpack.i.bf16 %v67_v25, %v66_v24  ;;  %v1511_v25 = vld [vmem:[%s3027_s4 + $0x8] sm:$0xf]  ;;  %vm1014_vm4 = vcmask 982016   ;;  %vm378_vm5 = vcmask 1031168   ;;  %vm1173_vm6 = vcmask 973824  }
   0x9   :  { %v2722_v31 = vpack.i.bf16 %v65_v29, %v64_v28  ;;  %1991 = vmatprep.mubr.msk.f32.mxu0 %vm142_vm0, %v1718_v33  ;;  %1903 = vmatprep.mubr.msk.f32.mxu1 %vm142_vm0, %v1694_v35  ;;  %vm537_vm7 = vcmask 1014784   ;;  %vm1332_vm8 = vcmask 965632   ;;  %vm1522_vm9 = vcmask 261120  }
   0xa   :  { %2313 = vrot.lane.b32.xlu1 %v2702_v18, %s2639_s30  ;;  %2303 = vrot.lane.b32.xlu0 %v2704_v19, %s2639_s30 }
   0xe   :  { %2323 = vrot.lane.b32.xlu1 %v2714_v26, %s2639_s30  ;;  %2318 = vrot.lane.b32.xlu0 %v2716_v27, %s2639_s30 }
  0x12   :  { %2333 = vrot.lane.b32.xlu1 %v2718_v30, %s2639_s30  ;;  %2328 = vrot.lane.b32.xlu0 %v2722_v31, %s2639_s30 }
  0x16   :  { %2343 = vrot.lane.b32.xlu1 %v2704_v19, %s2640_s12  ;;  %2338 = vrot.lane.b32.xlu0 %v2698_v15, %s2640_s12 }
  0x1a   :  { %2353 = vrot.lane.b32.xlu1 %v2704_v19, %s2641_s13  ;;  %2348 = vrot.lane.b32.xlu0 %v2698_v15, %s2641_s13 }
  0x1e   :  { %2363 = vrot.lane.b32.xlu1 %v2702_v18, %s2640_s12  ;;  %2358 = vrot.lane.b32.xlu0 %v2696_v14, %s2640_s12 }
  0x22   :  { %2373 = vrot.lane.b32.xlu1 %v2702_v18, %s2641_s13  ;;  %2368 = vrot.lane.b32.xlu0 %v2696_v14, %s2641_s13 }
  0x26   :  { %2383 = vrot.lane.b32.xlu1 %v2714_v26, %s2640_s12  ;;  %2378 = vrot.lane.b32.xlu0 %v2716_v27, %s2640_s12 }
  0x2a   :  { %2393 = vrot.lane.b32.xlu1 %v2714_v26, %s2641_s13  ;;  %2388 = vrot.lane.b32.xlu0 %v2716_v27, %s2641_s13 }
  0x2e   :  { %2403 = vrot.lane.b32.xlu1 %v2718_v30, %s2640_s12  ;;  %2398 = vrot.lane.b32.xlu0 %v2722_v31, %s2640_s12 }
  0x32   :  { %2413 = vrot.lane.b32.xlu1 %v2718_v30, %s2641_s13  ;;  %2408 = vrot.lane.b32.xlu0 %v2722_v31, %s2641_s13 }
  0x36   :  { %2423 = vrot.lane.b32.xlu1 %v2704_v19, %s2642_s16  ;;  %2418 = vrot.lane.b32.xlu0 %v2698_v15, %s2642_s16 }
  0x3a   :  { %2433 = vrot.lane.b32.xlu1 %v2702_v18, %s2642_s16  ;;  %2428 = vrot.lane.b32.xlu0 %v2696_v14, %s2642_s16 }
  0x3e   :  { %2443 = vrot.lane.b32.xlu1 %v2714_v26, %s2642_s16  ;;  %2438 = vrot.lane.b32.xlu0 %v2716_v27, %s2642_s16 }
  0x42   :  { %2453 = vrot.lane.b32.xlu1 %v2718_v30, %s2642_s16  ;;  %2448 = vrot.lane.b32.xlu0 %v2722_v31, %s2642_s16 }
  0x46   :  { %2463 = vrot.lane.b32.xlu1 %v2704_v19, %s2643_s17  ;;  %2458 = vrot.lane.b32.xlu0 %v2698_v15, %s2643_s17 }
  0x4a   :  { %2473 = vrot.lane.b32.xlu1 %v2704_v19, %s2644_s18  ;;  %2468 = vrot.lane.b32.xlu0 %v2698_v15, %s2644_s18 }
  0x4e   :  { %2483 = vrot.lane.b32.xlu1 %v2702_v18, %s2643_s17  ;;  %2478 = vrot.lane.b32.xlu0 %v2696_v14, %s2643_s17 }
  0x52   :  { %2493 = vrot.lane.b32.xlu1 %v2702_v18, %s2644_s18  ;;  %2488 = vrot.lane.b32.xlu0 %v2696_v14, %s2644_s18 }
  0x56   :  { %2503 = vrot.lane.b32.xlu1 %v2714_v26, %s2643_s17  ;;  %2498 = vrot.lane.b32.xlu0 %v2716_v27, %s2643_s17 }
  0x5a   :  { %2513 = vrot.lane.b32.xlu1 %v2714_v26, %s2644_s18  ;;  %2508 = vrot.lane.b32.xlu0 %v2716_v27, %s2644_s18 }
  0x5e   :  { %2523 = vrot.lane.b32.xlu1 %v2718_v30, %s2643_s17  ;;  %2518 = vrot.lane.b32.xlu0 %v2722_v31, %s2643_s17 }
  0x62   :  { %2533 = vrot.lane.b32.xlu1 %v2718_v30, %s2644_s18  ;;  %2528 = vrot.lane.b32.xlu0 %v2722_v31, %s2644_s18 }
  0x66   :  { %2543 = vrot.lane.b32.xlu1 %v2704_v19, %s2645_s19  ;;  %2538 = vrot.lane.b32.xlu0 %v2698_v15, %s2645_s19 }
  0x6a   :  { %2553 = vrot.lane.b32.xlu1 %v2704_v19, %s2646_s20  ;;  %2548 = vrot.lane.b32.xlu0 %v2698_v15, %s2646_s20 }
  0x6e   :  { %2563 = vrot.lane.b32.xlu1 %v2702_v18, %s2645_s19  ;;  %2558 = vrot.lane.b32.xlu0 %v2696_v14, %s2645_s19 }
  0x72   :  { %2573 = vrot.lane.b32.xlu1 %v2702_v18, %s2646_s20  ;;  %2568 = vrot.lane.b32.xlu0 %v2696_v14, %s2646_s20 }
  0x76   :  { %2583 = vrot.lane.b32.xlu1 %v2714_v26, %s2645_s19  ;;  %2578 = vrot.lane.b32.xlu0 %v2716_v27, %s2645_s19 }
  0x78   :  { %v2309_v36 = vpop.permute.xlu1 %2308  ;;  %v2299_v37 = vpop.permute.xlu0 %2298 }
  0x79   :  { %v2301_v38 = vunpack.i.h.bf16 %v2299_v37  ;;  %v2300_v39 = vunpack.i.l.bf16 %v2299_v37  ;;  %v2311_v46 = vunpack.i.h.bf16 %v2309_v36  ;;  %v2310_v47 = vunpack.i.l.bf16 %v2309_v36 }
  0x7a   :  { %2593 = vrot.lane.b32.xlu1 %v2714_v26, %s2646_s20  ;;  %2588 = vrot.lane.b32.xlu0 %v2716_v27, %s2646_s20 }
  0x7b   :  { %v697_v48 = vsel %vm696_vm1, %v2300_v39, %v2301_v38  ;;  %v699_v58 = vsel %vm696_vm1, %v2310_v47, %v2311_v46 }
  0x7c   :  { %v2314_v40 = vpop.permute.xlu1 %2313  ;;  %v2304_v41 = vpop.permute.xlu0 %2303 }
  0x7d   :  { %v2316_v42 = vunpack.i.h.bf16 %v2314_v40  ;;  %v2315_v43 = vunpack.i.l.bf16 %v2314_v40  ;;  %v2306_v44 = vunpack.i.h.bf16 %v2304_v41  ;;  %v2305_v45 = vunpack.i.l.bf16 %v2304_v41 }
  0x7e   :  { %2603 = vrot.lane.b32.xlu1 %v2718_v30, %s2645_s19  ;;  %2598 = vrot.lane.b32.xlu0 %v2722_v31, %s2645_s19 }
  0x7f   :  { %v698_v49 = vsel %vm696_vm1, %v2305_v45, %v2306_v44  ;;  %v700_v53 = vsel %vm696_vm1, %v2315_v43, %v2316_v42  ;;  %v2841_v44 = vld [vmem:[%s3025_s1 + $0x50] sm:$0xff]  }
  0x80   :  { %v2324_v50 = vpop.permute.xlu1 %2323  ;;  %v2319_v51 = vpop.permute.xlu0 %2318  ;;  %v2160_v52 = vpack.c.bf16 %v698_v49, %v697_v48  ;;  %v2164_v59 = vpack.c.bf16 %v700_v53, %v699_v58 }
  0x81   :  { %v2326_v54 = vunpack.i.h.bf16 %v2324_v50  ;;  %v2325_v55 = vunpack.i.l.bf16 %v2324_v50  ;;  %v2321_v56 = vunpack.i.h.bf16 %v2319_v51  ;;  %v2320_v57 = vunpack.i.l.bf16 %v2319_v51 }
  0x82   :  { %2613 = vrot.lane.b32.xlu1 %v2718_v30, %s2646_s20  ;;  %2608 = vrot.lane.b32.xlu0 %v2722_v31, %s2646_s20  ;;  %v1764_v30 = vld [vmem:[%s3025_s1 + $0x48] sm:$0xff]   ;;  %v1719_v31 = vunpack.c.h.bf16 %v2729_v32  ;;  %v1726_v50 = vunpack.c.l.bf16 %v2841_v44 }
  0x83   :  { %2161 = vmatprep.subr.bf16.mxu0 %v2160_v52  ;;  %v701_v1 = vsel %vm696_vm1, %v2320_v57, %v2321_v56  ;;  %v702_v2 = vsel %vm696_vm1, %v2325_v55, %v2326_v54  ;;  %v1722_v39 = vunpack.c.l.bf16 %v1764_v30  ;;  %v1723_v46 = vunpack.c.h.bf16 %v1764_v30 }
  0x84   :  { %2163 = vmatpush3.bf16.msra.mxu0 %v2160_v52  ;;  %v2334_v63 = vpop.permute.xlu1 %2333  ;;  %v2329_v0 = vpop.permute.xlu0 %2328  ;;  %v2168_v7 = vpack.c.bf16 %v702_v2, %v701_v1 }
  0x85   :  { %v2336_v3 = vunpack.i.h.bf16 %v2334_v63  ;;  %v2335_v4 = vunpack.i.l.bf16 %v2334_v63  ;;  %v2331_v5 = vunpack.i.h.bf16 %v2329_v0  ;;  %v2330_v6 = vunpack.i.l.bf16 %v2329_v0  ;;  %2165 = vmatprep.subr.bf16.mxu0 %v2164_v59 }
  0x86   :  { %1461 = vperm.xlu1 %2618, %v1451_v61   ;;  %1456 = vperm.xlu0 %2617, %v1450_v62  }
  0x87   :  { %v703_v12 = vsel %vm696_vm1, %v2330_v6, %v2331_v5  ;;  %v704_v13 = vsel %vm696_vm1, %v2335_v4, %v2336_v3 }
  0x88   :  { %2167 = vmatpush3.bf16.msra.mxu0 %v2164_v59  ;;  %v2344_v10 = vpop.permute.xlu1 %2343  ;;  %v2339_v11 = vpop.permute.xlu0 %2338  ;;  %v2172_v18 = vpack.c.bf16 %v704_v13, %v703_v12 }
  0x89   :  { %v2346_v14 = vunpack.i.h.bf16 %v2344_v10  ;;  %v2345_v15 = vunpack.i.l.bf16 %v2344_v10  ;;  %v2341_v16 = vunpack.i.h.bf16 %v2339_v11  ;;  %v2340_v17 = vunpack.i.l.bf16 %v2339_v11  ;;  %2169 = vmatprep.subr.bf16.mxu0 %v2168_v7 }
  0x8a   :  { %1466 = vperm.xlu1 %2618, %v1452_v8   ;;  %1471 = vperm.xlu0 %2617, %v1453_v9  }
  0x8b   :  { %v126_v19 = vsel %vm125_vm2, %v2340_v17, %v2341_v16  ;;  %v127_v20 = vsel %vm125_vm2, %v2345_v15, %v2346_v14 }
  0x8c   :  { %2171 = vmatpush3.bf16.msra.mxu0 %v2168_v7  ;;  %v2354_v22 = vpop.permute.xlu1 %2353  ;;  %v2349_v23 = vpop.permute.xlu0 %2348  ;;  %v2096_v24 = vpack.c.bf16 %v127_v20, %v126_v19 }
  0x8d   :  { %v2356_v26 = vunpack.i.h.bf16 %v2354_v22  ;;  %v2355_v27 = vunpack.i.l.bf16 %v2354_v22  ;;  %v2351_v28 = vunpack.i.h.bf16 %v2349_v23  ;;  %v2350_v29 = vunpack.i.l.bf16 %v2349_v23  ;;  %2173 = vmatprep.subr.bf16.mxu0 %v2172_v18  ;;  %v2619_v23 = vld [vmem:[%s3024_s0] ss:$8 sps:$4 sm:$0xff]  }
  0x8e   :  { %2097 = vmatprep.subr.bf16.mxu1 %v2096_v24  ;;  %1514 = vperm.xlu1 %2618, %v1510_v21  }
  0x8f   :  { %2099 = vmatpush3.bf16.msra.mxu1 %v2096_v24  ;;  %v856_v33 = vsel %vm855_vm3, %v2350_v29, %v2351_v28  ;;  %v857_v35 = vsel %vm855_vm3, %v2355_v27, %v2356_v26  ;;  %1519 = vperm.xlu0 %2617, %v1511_v25   ;;  %v1758_v28 = vld [vmem:[%s3025_s1 + $0x18] sm:$0xff]   ;;  %v1695_v29 = vunpack.c.h.bf16 %v2748_v34  ;;  %v2873_v34 = vld [vmem:[%s3025_s1] sm:$0xff]  }
  0x90   :  { %2175 = vmatpush3.bf16.msra.mxu0 %v2172_v18  ;;  %v2364_v36 = vpop.permute.xlu1 %2363  ;;  %v2359_v37 = vpop.permute.xlu0 %2358  ;;  %v2176_v38 = vpack.c.bf16 %v857_v35, %v856_v33 }
  0x91   :  { %v2366_v40 = vunpack.i.h.bf16 %v2364_v36  ;;  %v2365_v41 = vunpack.i.l.bf16 %v2364_v36  ;;  %v2361_v42 = vunpack.i.h.bf16 %v2359_v37  ;;  %v2360_v43 = vunpack.i.l.bf16 %v2359_v37  ;;  %v2620_v37 = vld [vmem:[%s3024_s0 + $0x10] ss:$8 sps:$4 sm:$0xff]  }
  0x92   :  { %2177 = vmatprep.subr.bf16.mxu0 %v2176_v38 }
  0x93   :  { %1992 = vmatmul.mubr.msk.f32.vlgmr.msra.gmra.mrb[0].mxu0 %vm142_vm0, %v1719_v31  ;;  %v128_v32 = vsel %vm125_vm2, %v2360_v43, %v2361_v42  ;;  %v129_v45 = vsel %vm125_vm2, %v2365_v41, %v2366_v40  ;;  %v1766_v43 = vld [vmem:[%s3025_s1 + $0x58] sm:$0xff]  }
  0x94   :  { %2179 = vmatpush3.bf16.msra.mxu0 %v2176_v38  ;;  %v2374_v47 = vpop.permute.xlu1 %2373  ;;  %v2369_v48 = vpop.permute.xlu0 %2368  ;;  %v2100_v49 = vpack.c.bf16 %v129_v45, %v128_v32  ;;  %1994 = vmatprep.mubr.msk.f32.mxu0 %vm142_vm0, %v1722_v39  ;;  %v1698_v38 = vunpack.c.l.bf16 %v1758_v28  ;;  %v1727_v32 = vunpack.c.h.bf16 %v2841_v44  ;;  %v1686_v44 = vunpack.c.l.bf16 %v2873_v34 }
  0x95   :  { %v2376_v51 = vunpack.i.h.bf16 %v2374_v47  ;;  %v2375_v52 = vunpack.i.l.bf16 %v2374_v47  ;;  %v2371_v53 = vunpack.i.h.bf16 %v2369_v48  ;;  %v2370_v54 = vunpack.i.l.bf16 %v2369_v48 }
  0x96   :  { %2101 = vmatprep.subr.bf16.mxu1 %v2100_v49 }
  0x97   :  { %2103 = vmatpush3.bf16.msra.mxu1 %v2100_v49  ;;  %v858_v55 = vsel %vm855_vm3, %v2370_v54, %v2371_v53  ;;  %v859_v56 = vsel %vm855_vm3, %v2375_v52, %v2376_v51  ;;  %1995 = vmatmul.mubr.msk.f32.gmra.mrb[2].mxu0 %vm142_vm0, %v1723_v46  ;;  %v1699_v51 = vunpack.c.h.bf16 %v1758_v28  ;;  %v1730_v52 = vunpack.c.l.bf16 %v1766_v43  ;;  %v2918_v28 = vld [vmem:[%s3025_s1 + $0x20] sm:$0xff]  }
  0x98   :  { %v2384_v57 = vpop.permute.xlu1 %2383  ;;  %v2379_v58 = vpop.permute.xlu0 %2378  ;;  %v2180_v59 = vpack.c.bf16 %v859_v56, %v858_v55  ;;  %2013 = vmatprep.mubr.msk.f32.mxu0 %vm142_vm0, %v1726_v50  ;;  %v2621_v50 = vld [vmem:[%s3024_s0 + $0x20] ss:$8 sps:$4 sm:$0xff]  }
  0x99   :  { %v2386_v60 = vunpack.i.h.bf16 %v2384_v57  ;;  %v2385_v61 = vunpack.i.l.bf16 %v2384_v57  ;;  %v2381_v62 = vunpack.i.h.bf16 %v2379_v58  ;;  %v2380_v63 = vunpack.i.l.bf16 %v2379_v58  ;;  %v2890_v57 = vld [vmem:[%s3025_s1 + $0x60] sm:$0xff]  }
  0x9a   :  { %2181 = vmatprep.subr.bf16.mxu0 %v2180_v59  ;;  %v1731_v58 = vunpack.c.h.bf16 %v1766_v43 }
  0x9b   :  { %2183 = vmatpush3.bf16.msra.mxu0 %v2180_v59  ;;  %v130_v0 = vsel %vm125_vm2, %v2380_v63, %v2381_v62  ;;  %v131_v1 = vsel %vm125_vm2, %v2385_v61, %v2386_v60 }
  0x9c   :  { %v2394_v2 = vpop.permute.xlu1 %2393  ;;  %v2389_v3 = vpop.permute.xlu0 %2388  ;;  %v2104_v4 = vpack.c.bf16 %v131_v1, %v130_v0  ;;  %v2622_v0 = vld [vmem:[%s3024_s0 + $0x30] ss:$8 sps:$4 sm:$0xff]   ;;  %v1734_v1 = vunpack.c.l.bf16 %v2890_v57 }
  0x9d   :  { %v2396_v5 = vunpack.i.h.bf16 %v2394_v2  ;;  %v2395_v6 = vunpack.i.l.bf16 %v2394_v2  ;;  %v2391_v7 = vunpack.i.h.bf16 %v2389_v3  ;;  %v2390_v8 = vunpack.i.l.bf16 %v2389_v3 }
  0x9e   :  { %2105 = vmatprep.subr.bf16.mxu1 %v2104_v4 }
  0x9f   :  { %2107 = vmatpush3.bf16.msra.mxu1 %v2104_v4  ;;  %v860_v9 = vsel %vm855_vm3, %v2390_v8, %v2391_v7  ;;  %v861_v10 = vsel %vm855_vm3, %v2395_v6, %v2396_v5 }
  0xa0   :  { %v2404_v11 = vpop.permute.xlu1 %2403  ;;  %v2399_v12 = vpop.permute.xlu0 %2398  ;;  %v2184_v13 = vpack.c.bf16 %v861_v10, %v860_v9 }
  0xa1   :  { %v2406_v14 = vunpack.i.h.bf16 %v2404_v11  ;;  %v2405_v15 = vunpack.i.l.bf16 %v2404_v11  ;;  %v2401_v16 = vunpack.i.h.bf16 %v2399_v12  ;;  %v2400_v17 = vunpack.i.l.bf16 %v2399_v12  ;;  %v1756_v11 = vld [vmem:[%s3025_s1 + $0x8] sm:$0xff]  }
  0xa2   :  { %2185 = vmatprep.subr.bf16.mxu0 %v2184_v13 }
  0xa3   :  { %2187 = vmatpush3.bf16.msra.mxu0 %v2184_v13  ;;  %v132_v18 = vsel %vm125_vm2, %v2400_v17, %v2401_v16  ;;  %v133_v19 = vsel %vm125_vm2, %v2405_v15, %v2406_v14  ;;  %v1687_v16 = vunpack.c.h.bf16 %v2873_v34 }
  0xa4   :  { %v2414_v20 = vpop.permute.xlu1 %2413  ;;  %v2409_v21 = vpop.permute.xlu0 %2408  ;;  %v2108_v22 = vpack.c.bf16 %v133_v19, %v132_v18  ;;  %v1690_v19 = vunpack.c.l.bf16 %v1756_v11 }
  0xa5   :  { %v2416_v24 = vunpack.i.h.bf16 %v2414_v20  ;;  %v2415_v25 = vunpack.i.l.bf16 %v2414_v20  ;;  %v2411_v26 = vunpack.i.h.bf16 %v2409_v21  ;;  %v2410_v27 = vunpack.i.l.bf16 %v2409_v21 }
  0xa6   :  { %2109 = vmatprep.subr.bf16.mxu1 %v2108_v22 }
  0xa7   :  { %2111 = vmatpush3.bf16.msra.mxu1 %v2108_v22  ;;  %v862_v30 = vsel %vm855_vm3, %v2410_v27, %v2411_v26  ;;  %v863_v31 = vsel %vm855_vm3, %v2415_v25, %v2416_v24 }
  0xa8   :  { %v2424_v33 = vpop.permute.xlu1 %2423  ;;  %v2419_v35 = vpop.permute.xlu0 %2418  ;;  %v2188_v36 = vpack.c.bf16 %v863_v31, %v862_v30  ;;  %2113 = vmatprep.subr.bf16.mxu1 %v2619_v23 }
  0xa9   :  { %v2426_v39 = vunpack.i.h.bf16 %v2424_v33  ;;  %v2425_v40 = vunpack.i.l.bf16 %v2424_v33  ;;  %v2421_v41 = vunpack.i.h.bf16 %v2419_v35  ;;  %v2420_v42 = vunpack.i.l.bf16 %v2419_v35 }
  0xaa   :  { %2189 = vmatprep.subr.bf16.mxu0 %v2188_v36  ;;  %1904 = vmatmul.mubr.msk.f32.vlgmr.msra.gmra.mrb[0].mxu1 %vm142_vm0, %v1695_v29  ;;  %v1735_v29 = vunpack.c.h.bf16 %v2890_v57 }
  0xab   :  { %2191 = vmatpush3.bf16.msra.mxu0 %v2188_v36  ;;  %v1015_v45 = vsel %vm1014_vm4, %v2420_v42, %v2421_v41  ;;  %v1016_v46 = vsel %vm1014_vm4, %v2425_v40, %v2426_v39  ;;  %2115 = vmatpush3.bf16.msra.mxu1 %v2619_v23  ;;  %v1768_v23 = vld [vmem:[%s3025_s1 + $0x68] sm:$0xff]   ;;  %v1702_v39 = vunpack.c.l.bf16 %v2918_v28  ;;  %v2929_v40 = vld [vmem:[%s3025_s1 + $0x70] sm:$0xff]  }
  0xac   :  { %v2434_v47 = vpop.permute.xlu1 %2433  ;;  %v2429_v48 = vpop.permute.xlu0 %2428  ;;  %v2192_v49 = vpack.c.bf16 %v1016_v46, %v1015_v45  ;;  %2117 = vmatprep.subr.bf16.mxu1 %v2620_v37  ;;  %1906 = vmatprep.mubr.msk.f32.mxu1 %vm142_vm0, %v1698_v38  ;;  %v1738_v33 = vunpack.c.l.bf16 %v1768_v23  ;;  %v1691_v38 = vunpack.c.h.bf16 %v1756_v11 }
  0xad   :  { %v2436_v53 = vunpack.i.h.bf16 %v2434_v47  ;;  %v2435_v54 = vunpack.i.l.bf16 %v2434_v47  ;;  %v2431_v55 = vunpack.i.h.bf16 %v2429_v48  ;;  %v2430_v56 = vunpack.i.l.bf16 %v2429_v48 }
  0xae   :  { %2193 = vmatprep.subr.bf16.mxu0 %v2192_v49  ;;  %2014 = vmatmul.mubr.msk.f32.vlgmr.msra.gmra.mrb[0].mxu0 %vm142_vm0, %v1727_v32  ;;  %v1739_v32 = vunpack.c.h.bf16 %v1768_v23  ;;  %v1742_v47 = vunpack.c.l.bf16 %v2929_v40 }
  0xaf   :  { %2195 = vmatpush3.bf16.msra.mxu0 %v2192_v49  ;;  %v1017_v59 = vsel %vm1014_vm4, %v2430_v56, %v2431_v55  ;;  %v1018_v60 = vsel %vm1014_vm4, %v2435_v54, %v2436_v53  ;;  %2119 = vmatpush3.bf16.msra.mxu1 %v2620_v37 }
  0xb0   :  { %v2444_v61 = vpop.permute.xlu1 %2443  ;;  %v2439_v62 = vpop.permute.xlu0 %2438  ;;  %v2196_v63 = vpack.c.bf16 %v1018_v60, %v1017_v59  ;;  %2121 = vmatprep.subr.bf16.mxu1 %v2621_v50  ;;  %1907 = vmatmul.mubr.msk.f32.gmra.mrb[2].mxu1 %vm142_vm0, %v1699_v51 }
  0xb1   :  { %v2446_v2 = vunpack.i.h.bf16 %v2444_v61  ;;  %v2445_v3 = vunpack.i.l.bf16 %v2444_v61  ;;  %v2441_v4 = vunpack.i.h.bf16 %v2439_v62  ;;  %v2440_v5 = vunpack.i.l.bf16 %v2439_v62  ;;  %1925 = vmatprep.mubr.msk.f32.mxu1 %vm142_vm0, %v1686_v44  ;;  %2016 = vmatprep.mubr.msk.f32.mxu0 %vm142_vm0, %v1730_v52 }
  0xb2   :  { %2197 = vmatprep.subr.bf16.mxu0 %v2196_v63  ;;  %2017 = vmatmul.mubr.msk.f32.gmra.mrb[2].mxu0 %vm142_vm0, %v1731_v58 }
  0xb3   :  { %2199 = vmatpush3.bf16.msra.mxu0 %v2196_v63  ;;  %v1019_v6 = vsel %vm1014_vm4, %v2440_v5, %v2441_v4  ;;  %v1020_v7 = vsel %vm1014_vm4, %v2445_v3, %v2446_v2  ;;  %2123 = vmatpush3.bf16.msra.mxu1 %v2621_v50 }
  0xb4   :  { %v2454_v8 = vpop.permute.xlu1 %2453  ;;  %v2449_v9 = vpop.permute.xlu0 %2448  ;;  %v2200_v10 = vpack.c.bf16 %v1020_v7, %v1019_v6  ;;  %2125 = vmatprep.subr.bf16.mxu1 %v2622_v0  ;;  %2035 = vmatprep.mubr.msk.f32.mxu0 %vm142_vm0, %v1734_v1 }
  0xb5   :  { %v2456_v12 = vunpack.i.h.bf16 %v2454_v8  ;;  %v2455_v13 = vunpack.i.l.bf16 %v2454_v8  ;;  %v2451_v14 = vunpack.i.h.bf16 %v2449_v9  ;;  %v2450_v15 = vunpack.i.l.bf16 %v2449_v9 }
  0xb6   :  { %2201 = vmatprep.subr.bf16.mxu0 %v2200_v10 }
  0xb7   :  { %2203 = vmatpush3.bf16.msra.mxu0 %v2200_v10  ;;  %v1021_v17 = vsel %vm1014_vm4, %v2450_v15, %v2451_v14  ;;  %v1022_v18 = vsel %vm1014_vm4, %v2455_v13, %v2456_v12  ;;  %2127 = vmatpush3.bf16.msra.mxu1 %v2622_v0 }
  0xb8   :  { %v2464_v20 = vpop.permute.xlu1 %2463  ;;  %v2459_v21 = vpop.permute.xlu0 %2458  ;;  %v2204_v22 = vpack.c.bf16 %v1022_v18, %v1021_v17 }
  0xb9   :  { %v2466_v24 = vunpack.i.h.bf16 %v2464_v20  ;;  %v2465_v25 = vunpack.i.l.bf16 %v2464_v20  ;;  %v2461_v26 = vunpack.i.h.bf16 %v2459_v21  ;;  %v2460_v27 = vunpack.i.l.bf16 %v2459_v21 }
  0xba   :  { %2205 = vmatprep.subr.bf16.mxu0 %v2204_v22  ;;  %1926 = vmatmul.mubr.msk.f32.vlgmr.msra.gmra.mrb[0].mxu1 %vm142_vm0, %v1687_v16 }
  0xbb   :  { %2207 = vmatpush3.bf16.msra.mxu0 %v2204_v22  ;;  %v379_v30 = vsel %vm378_vm5, %v2460_v27, %v2461_v26  ;;  %v380_v31 = vsel %vm378_vm5, %v2465_v25, %v2466_v24  ;;  %1928 = vmatprep.mubr.msk.f32.mxu1 %vm142_vm0, %v1690_v19 }
  0xbc   :  { %v2474_v35 = vpop.permute.xlu1 %2473  ;;  %v2469_v36 = vpop.permute.xlu0 %2468  ;;  %v2128_v37 = vpack.c.bf16 %v380_v31, %v379_v30 }
  0xbd   :  { %v2476_v41 = vunpack.i.h.bf16 %v2474_v35  ;;  %v2475_v42 = vunpack.i.l.bf16 %v2474_v35  ;;  %v2471_v34 = vunpack.i.h.bf16 %v2469_v36  ;;  %v2470_v43 = vunpack.i.l.bf16 %v2469_v36 }
  0xbe   :  { %2129 = vmatprep.subr.bf16.mxu1 %v2128_v37  ;;  %2036 = vmatmul.mubr.msk.f32.vlgmr.msra.gmra.mrb[0].mxu0 %vm142_vm0, %v1735_v29 }
  0xbf   :  { %2131 = vmatpush3.bf16.msra.mxu1 %v2128_v37  ;;  %v1174_v45 = vsel %vm1173_vm6, %v2470_v43, %v2471_v34  ;;  %v1175_v46 = vsel %vm1173_vm6, %v2475_v42, %v2476_v41  ;;  %2038 = vmatprep.mubr.msk.f32.mxu0 %vm142_vm0, %v1738_v33  ;;  %v1760_v33 = vld [vmem:[%s3025_s1 + $0x28] sm:$0xff]  }
  0xc0   :  { %v2484_v48 = vpop.permute.xlu1 %2483  ;;  %v2479_v49 = vpop.permute.xlu0 %2478  ;;  %v2208_v50 = vpack.c.bf16 %v1175_v46, %v1174_v45  ;;  %1929 = vmatmul.mubr.msk.f32.gmra.mrb[2].mxu1 %vm142_vm0, %v1691_v38  ;;  %v1706_v34 = vunpack.c.l.bf16 %v1760_v33  ;;  %v1770_v46 = vld [vmem:[%s3025_s1 + $0x78] sm:$0xff]  }
  0xc1   :  { %v2486_v51 = vunpack.i.h.bf16 %v2484_v48  ;;  %v2485_v44 = vunpack.i.l.bf16 %v2484_v48  ;;  %v2481_v52 = vunpack.i.h.bf16 %v2479_v49  ;;  %v2480_v53 = vunpack.i.l.bf16 %v2479_v49  ;;  %1947 = vmatprep.mubr.msk.f32.mxu1 %vm142_vm0, %v1702_v39 }
  0xc2   :  { %2209 = vmatprep.subr.bf16.mxu0 %v2208_v50  ;;  %2039 = vmatmul.mubr.msk.f32.gmra.mrb[2].mxu0 %vm142_vm0, %v1739_v32  ;;  %v1703_v39 = vunpack.c.h.bf16 %v2918_v28  ;;  %v2962_v28 = vld [vmem:[%s3025_s1 + $0x30] sm:$0xff]  }
  0xc3   :  { %2211 = vmatpush3.bf16.msra.mxu0 %v2208_v50  ;;  %v381_v54 = vsel %vm378_vm5, %v2480_v53, %v2481_v52  ;;  %v382_v55 = vsel %vm378_vm5, %v2485_v44, %v2486_v51  ;;  %2057 = vmatprep.mubr.msk.f32.mxu0 %vm142_vm0, %v1742_v47  ;;  %v1743_v51 = vunpack.c.h.bf16 %v2929_v40  ;;  %v1746_v53 = vunpack.c.l.bf16 %v1770_v46 }
  0xc4   :  { %v2494_v56 = vpop.permute.xlu1 %2493  ;;  %v2489_v57 = vpop.permute.xlu0 %2488  ;;  %v2132_v58 = vpack.c.bf16 %v382_v55, %v381_v54 }
  0xc5   :  { %v2496_v59 = vunpack.i.h.bf16 %v2494_v56  ;;  %v2495_v60 = vunpack.i.l.bf16 %v2494_v56  ;;  %v2491_v61 = vunpack.i.h.bf16 %v2489_v57  ;;  %v2490_v62 = vunpack.i.l.bf16 %v2489_v57 }
  0xc6   :  { %2133 = vmatprep.subr.bf16.mxu1 %v2132_v58  ;;  %v1707_v57 = vunpack.c.h.bf16 %v1760_v33 }
  0xc7   :  { %2135 = vmatpush3.bf16.msra.mxu1 %v2132_v58  ;;  %v1176_v63 = vsel %vm1173_vm6, %v2490_v62, %v2491_v61  ;;  %v1177_v0 = vsel %vm1173_vm6, %v2495_v60, %v2496_v59  ;;  %v1710_v58 = vunpack.c.l.bf16 %v2962_v28  ;;  %v2973_v59 = vld [vmem:[%s3025_s1 + $0x80] sm:$0xff]  }
  0xc8   :  { %v2504_v1 = vpop.permute.xlu1 %2503  ;;  %v2499_v2 = vpop.permute.xlu0 %2498  ;;  %v2212_v3 = vpack.c.bf16 %v1177_v0, %v1176_v63  ;;  %v1747_v63 = vunpack.c.h.bf16 %v1770_v46 }
  0xc9   :  { %v2506_v4 = vunpack.i.h.bf16 %v2504_v1  ;;  %v2505_v5 = vunpack.i.l.bf16 %v2504_v1  ;;  %v2501_v6 = vunpack.i.h.bf16 %v2499_v2  ;;  %v2500_v7 = vunpack.i.l.bf16 %v2499_v2 }
  0xca   :  { %2213 = vmatprep.subr.bf16.mxu0 %v2212_v3  ;;  %v1750_v2 = vunpack.c.l.bf16 %v2973_v59 }
  0xcb   :  { %2215 = vmatpush3.bf16.msra.mxu0 %v2212_v3  ;;  %v383_v8 = vsel %vm378_vm5, %v2500_v7, %v2501_v6  ;;  %v384_v9 = vsel %vm378_vm5, %v2505_v5, %v2506_v4 }
  0xcc   :  { %v2514_v10 = vpop.permute.xlu1 %2513  ;;  %v2509_v11 = vpop.permute.xlu0 %2508  ;;  %v2136_v12 = vpack.c.bf16 %v384_v9, %v383_v8 }
  0xcd   :  { %v2516_v13 = vunpack.i.h.bf16 %v2514_v10  ;;  %v2515_v14 = vunpack.i.l.bf16 %v2514_v10  ;;  %v2511_v15 = vunpack.i.h.bf16 %v2509_v11  ;;  %v2510_v16 = vunpack.i.l.bf16 %v2509_v11 }
  0xce   :  { %2137 = vmatprep.subr.bf16.mxu1 %v2136_v12 }
  0xcf   :  { %2139 = vmatpush3.bf16.msra.mxu1 %v2136_v12  ;;  %v1178_v17 = vsel %vm1173_vm6, %v2510_v16, %v2511_v15  ;;  %v1179_v18 = vsel %vm1173_vm6, %v2515_v14, %v2516_v13 }
  0xd0   :  { %v2524_v19 = vpop.permute.xlu1 %2523  ;;  %v2519_v20 = vpop.permute.xlu0 %2518  ;;  %v2216_v21 = vpack.c.bf16 %v1179_v18, %v1178_v17 }
  0xd1   :  { %v2526_v22 = vunpack.i.h.bf16 %v2524_v19  ;;  %v2525_v23 = vunpack.i.l.bf16 %v2524_v19  ;;  %v2521_v24 = vunpack.i.h.bf16 %v2519_v20  ;;  %v2520_v25 = vunpack.i.l.bf16 %v2519_v20 }
  0xd2   :  { %2217 = vmatprep.subr.bf16.mxu0 %v2216_v21 }
  0xd3   :  { %2219 = vmatpush3.bf16.msra.mxu0 %v2216_v21  ;;  %v385_v26 = vsel %vm378_vm5, %v2520_v25, %v2521_v24  ;;  %v386_v27 = vsel %vm378_vm5, %v2525_v23, %v2526_v22 }
  0xd4   :  { %v2534_v29 = vpop.permute.xlu1 %2533  ;;  %v2529_v30 = vpop.permute.xlu0 %2528  ;;  %v2140_v31 = vpack.c.bf16 %v386_v27, %v385_v26 }
  0xd5   :  { %v2536_v35 = vunpack.i.h.bf16 %v2534_v29  ;;  %v2535_v36 = vunpack.i.l.bf16 %v2534_v29  ;;  %v2531_v37 = vunpack.i.h.bf16 %v2529_v30  ;;  %v2530_v38 = vunpack.i.l.bf16 %v2529_v30 }
  0xd6   :  { %2141 = vmatprep.subr.bf16.mxu1 %v2140_v31 }
  0xd7   :  { %2143 = vmatpush3.bf16.msra.mxu1 %v2140_v31  ;;  %v1180_v41 = vsel %vm1173_vm6, %v2530_v38, %v2531_v37  ;;  %v1181_v42 = vsel %vm1173_vm6, %v2535_v36, %v2536_v35 }
  0xd8   :  { %v2544_v43 = vpop.permute.xlu1 %2543  ;;  %v2539_v32 = vpop.permute.xlu0 %2538  ;;  %v2220_v45 = vpack.c.bf16 %v1181_v42, %v1180_v41 }
  0xd9   :  { %v2546_v47 = vunpack.i.h.bf16 %v2544_v43  ;;  %v2545_v48 = vunpack.i.l.bf16 %v2544_v43  ;;  %v2541_v49 = vunpack.i.h.bf16 %v2539_v32  ;;  %v2540_v50 = vunpack.i.l.bf16 %v2539_v32 }
  0xda   :  { %2221 = vmatprep.subr.bf16.mxu0 %v2220_v45  ;;  %1948 = vmatmul.mubr.msk.f32.vlgmr.msra.gmra.mrb[0].mxu1 %vm142_vm0, %v1703_v39 }
  0xdb   :  { %2223 = vmatpush3.bf16.msra.mxu0 %v2220_v45  ;;  %v538_v44 = vsel %vm537_vm7, %v2540_v50, %v2541_v49  ;;  %v539_v52 = vsel %vm537_vm7, %v2545_v48, %v2546_v47  ;;  %1950 = vmatprep.mubr.msk.f32.mxu1 %vm142_vm0, %v1706_v34 }
  0xdc   :  { %v2554_v54 = vpop.permute.xlu1 %2553  ;;  %v2549_v55 = vpop.permute.xlu0 %2548  ;;  %v2144_v56 = vpack.c.bf16 %v539_v52, %v538_v44 }
  0xdd   :  { %v2556_v40 = vunpack.i.h.bf16 %v2554_v54  ;;  %v2555_v60 = vunpack.i.l.bf16 %v2554_v54  ;;  %v2551_v61 = vunpack.i.h.bf16 %v2549_v55  ;;  %v2550_v62 = vunpack.i.l.bf16 %v2549_v55 }
  0xde   :  { %2145 = vmatprep.subr.bf16.mxu1 %v2144_v56  ;;  %2058 = vmatmul.mubr.msk.f32.vlgmr.msra.gmra.mrb[0].mxu0 %vm142_vm0, %v1743_v51 }
  0xdf   :  { %2147 = vmatpush3.bf16.msra.mxu1 %v2144_v56  ;;  %v1333_v0 = vsel %vm1332_vm8, %v2550_v62, %v2551_v61  ;;  %v1334_v1 = vsel %vm1332_vm8, %v2555_v60, %v2556_v40  ;;  %2060 = vmatprep.mubr.msk.f32.mxu0 %vm142_vm0, %v1746_v53  ;;  %v1762_v53 = vld [vmem:[%s3025_s1 + $0x38] sm:$0xff]  }
  0xe0   :  { %v2564_v3 = vpop.permute.xlu1 %2563  ;;  %v2559_v4 = vpop.permute.xlu0 %2558  ;;  %v2224_v5 = vpack.c.bf16 %v1334_v1, %v1333_v0  ;;  %1951 = vmatmul.mubr.msk.f32.gmra.mrb[2].mxu1 %vm142_vm0, %v1707_v57  ;;  %v1714_v61 = vunpack.c.l.bf16 %v1762_v53  ;;  %v1751_v0 = vunpack.c.h.bf16 %v2973_v59  ;;  %v1715_v1 = vunpack.c.h.bf16 %v1762_v53 }
  0xe1   :  { %v2566_v6 = vunpack.i.h.bf16 %v2564_v3  ;;  %v2565_v7 = vunpack.i.l.bf16 %v2564_v3  ;;  %v2561_v8 = vunpack.i.h.bf16 %v2559_v4  ;;  %v2560_v9 = vunpack.i.l.bf16 %v2559_v4  ;;  %1969 = vmatprep.mubr.msk.f32.mxu1 %vm142_vm0, %v1710_v58  ;;  %v1506_v3 = vld [vmem:[%s3028_s3] sm:$0xf] }
  0xe2   :  { %2225 = vmatprep.subr.bf16.mxu0 %v2224_v5  ;;  %2061 = vmatmul.mubr.msk.f32.gmra.mrb[2].mxu0 %vm142_vm0, %v1747_v63  ;;  %v1711_v58 = vunpack.c.h.bf16 %v2962_v28  ;;  %v1772_v63 = vld [vmem:[%s3025_s1 + $0x88] sm:$0xff]   ;;  %v1508_v59 = vunpack.c.l.bf16 %v1506_v3 }
  0xe3   :  { %2227 = vmatpush3.bf16.msra.mxu0 %v2224_v5  ;;  %v540_v10 = vsel %vm537_vm7, %v2560_v9, %v2561_v8  ;;  %v541_v11 = vsel %vm537_vm7, %v2565_v7, %v2566_v6  ;;  %2079 = vmatprep.mubr.msk.f32.mxu0 %vm142_vm0, %v1750_v2  ;;  %v1754_v28 = vunpack.c.l.bf16 %v1772_v63  ;;  %v1755_v2 = vunpack.c.h.bf16 %v1772_v63 }
  0xe4   :  { %v2574_v12 = vpop.permute.xlu1 %2573  ;;  %v2569_v13 = vpop.permute.xlu0 %2568  ;;  %v2148_v14 = vpack.c.bf16 %v541_v11, %v540_v10 }
  0xe5   :  { %v2576_v15 = vunpack.i.h.bf16 %v2574_v12  ;;  %v2575_v16 = vunpack.i.l.bf16 %v2574_v12  ;;  %v2571_v17 = vunpack.i.h.bf16 %v2569_v13  ;;  %v2570_v18 = vunpack.i.l.bf16 %v2569_v13 }
  0xe6   :  { %2149 = vmatprep.subr.bf16.mxu1 %v2148_v14 }
  0xe7   :  { %2151 = vmatpush3.bf16.msra.mxu1 %v2148_v14  ;;  %v1335_v19 = vsel %vm1332_vm8, %v2570_v18, %v2571_v17  ;;  %v1336_v20 = vsel %vm1332_vm8, %v2575_v16, %v2576_v15 }
  0xe8   :  { %v2584_v21 = vpop.permute.xlu1 %2583  ;;  %v2579_v22 = vpop.permute.xlu0 %2578  ;;  %v2228_v23 = vpack.c.bf16 %v1336_v20, %v1335_v19 }
  0xe9   :  { %v2586_v24 = vunpack.i.h.bf16 %v2584_v21  ;;  %v2585_v25 = vunpack.i.l.bf16 %v2584_v21  ;;  %v2581_v26 = vunpack.i.h.bf16 %v2579_v22  ;;  %v2580_v27 = vunpack.i.l.bf16 %v2579_v22 }
  0xea   :  { %2229 = vmatprep.subr.bf16.mxu0 %v2228_v23 }
  0xeb   :  { %2231 = vmatpush3.bf16.msra.mxu0 %v2228_v23  ;;  %v542_v29 = vsel %vm537_vm7, %v2580_v27, %v2581_v26  ;;  %v543_v30 = vsel %vm537_vm7, %v2585_v25, %v2586_v24 }
  0xec   :  { %v2594_v31 = vpop.permute.xlu1 %2593  ;;  %v2589_v33 = vpop.permute.xlu0 %2588  ;;  %v2152_v35 = vpack.c.bf16 %v543_v30, %v542_v29 }
  0xed   :  { %v2596_v36 = vunpack.i.h.bf16 %v2594_v31  ;;  %v2595_v37 = vunpack.i.l.bf16 %v2594_v31  ;;  %v2591_v38 = vunpack.i.h.bf16 %v2589_v33  ;;  %v2590_v39 = vunpack.i.l.bf16 %v2589_v33 }
  0xee   :  { %2153 = vmatprep.subr.bf16.mxu1 %v2152_v35 }
  0xef   :  { %2155 = vmatpush3.bf16.msra.mxu1 %v2152_v35  ;;  %v1337_v41 = vsel %vm1332_vm8, %v2590_v39, %v2591_v38  ;;  %v1338_v42 = vsel %vm1332_vm8, %v2595_v37, %v2596_v36 }
  0xf0   :  { %v2604_v34 = vpop.permute.xlu1 %2603  ;;  %v2599_v43 = vpop.permute.xlu0 %2598  ;;  %v2232_v32 = vpack.c.bf16 %v1338_v42, %v1337_v41 }
  0xf1   :  { %v2606_v45 = vunpack.i.h.bf16 %v2604_v34  ;;  %v2605_v46 = vunpack.i.l.bf16 %v2604_v34  ;;  %v2601_v47 = vunpack.i.h.bf16 %v2599_v43  ;;  %v2600_v48 = vunpack.i.l.bf16 %v2599_v43 }
  0xf2   :  { %2233 = vmatprep.subr.bf16.mxu0 %v2232_v32 }
  0xf3   :  { %2235 = vmatpush3.bf16.msra.mxu0 %v2232_v32  ;;  %v544_v49 = vsel %vm537_vm7, %v2600_v48, %v2601_v47  ;;  %v545_v50 = vsel %vm537_vm7, %v2605_v46, %v2606_v45  ;;  %v1507_v48 = vld [vmem:[%s3028_s3 + $0x4] sm:$0x3] }
  0xf4   :  { %v2614_v51 = vpop.permute.xlu1 %2613  ;;  %v2609_v44 = vpop.permute.xlu0 %2608  ;;  %v2156_v52 = vpack.c.bf16 %v545_v50, %v544_v49  ;;  %v1509_v50 = vunpack.c.l.bf16 %v1507_v48 }
  0xf5   :  { %v2616_v54 = vunpack.i.h.bf16 %v2614_v51  ;;  %v2615_v55 = vunpack.i.l.bf16 %v2614_v51  ;;  %v2611_v56 = vunpack.i.h.bf16 %v2609_v44  ;;  %v2610_v57 = vunpack.i.l.bf16 %v2609_v44 }
  0xf6   :  { %2157 = vmatprep.subr.bf16.mxu1 %v2156_v52 }
  0xf7   :  { %2159 = vmatpush3.bf16.msra.mxu1 %v2156_v52  ;;  %v1339_v40 = vsel %vm1332_vm8, %v2610_v57, %v2611_v56  ;;  %v1340_v60 = vsel %vm1332_vm8, %v2615_v55, %v2616_v54 }
  0xf8   :  { %v2236_v62 = vpack.c.bf16 %v1340_v60, %v1339_v40 }
  0xfa   :  { %1970 = vmatmul.mubr.msk.f32.vlgmr.msra.gmra.mrb[0].mxu1 %vm142_vm0, %v1711_v58  ;;  %2237 = vmatprep.subr.bf16.mxu0 %v2236_v62 }
  0xfb   :  { %2239 = vmatpush3.bf16.msra.mxu0 %v2236_v62  ;;  %1972 = vmatprep.mubr.msk.f32.mxu1 %vm142_vm0, %v1714_v61 }
  0xfe   :  { %1973 = vmatmul.mubr.msk.f32.gmra.mrb[2].mxu1 %vm142_vm0, %v1715_v1  ;;  %2080 = vmatmul.mubr.msk.f32.vlgmr.msra.gmra.mrb[0].mxu0 %vm142_vm0, %v1751_v0 }
  0xff   :  { %2082 = vmatprep.mubr.msk.f32.mxu0 %vm142_vm0, %v1754_v28  ;;  %2093 = vmatprep.mubr.msk.f32.mxu1 %vm1522_vm9, %v1508_v59 }
 0x102   :  { %2083 = vmatmul.mubr.msk.f32.gmra.mrb[2].mxu0 %vm142_vm0, %v1755_v2 }
 0x105   :  { %v1462_v6 = vpop.permute.xlu1 %1461  ;;  %v1457_v7 = vpop.permute.xlu0 %1456 }
 0x109   :  { %v1472_v20 = vpop.permute.xlu0 %1471  ;;  %v1467_v23 = vpop.permute.xlu1 %1466 }
 0x10d   :  { %v1515_v52 = vpop.permute.xlu1 %1514 }
 0x10e   :  { %v1520_v51 = vpop.permute.xlu0 %1519 }
 0x1cd   :  { %v1971_v4 = vpop.f32.mrb[0].mxu1 }
 0x1ce   :  { %v632_v5 = vpop.f32.mrb[1].mxu1 }
 0x1d1   :  { %v1974_v8 = vpop.f32.mrb[2].mxu1  ;;  %v2081_v9 = vpop.f32.mrb[0].mxu0 }
 0x1d2   :  { %v2248_v10 = vadd.f32 %v2081_v9, %v1971_v4  ;;  %v642_v11 = vpop.f32.mrb[3].mxu1  ;;  %v1427_v12 = vpop.f32.mrb[1].mxu0 }
 0x1d3   :  { %v2249_v13 = vadd.f32 %v1427_v12, %v632_v5 }
 0x1d4   :  { %v1475_v14 = vadd.f32 %v2248_v10, %v1462_v6 }
 0x1d5   :  { %v1474_v15 = vadd.f32 %v2249_v13, %v1457_v7  ;;  %v2084_v16 = vpop.f32.mrb[2].mxu0 }
 0x1d6   :  { %v1679_v17 = vmul.f32 -1.442695, %v1475_v14  ;;  %v2250_v18 = vadd.f32 %v2084_v16, %v1974_v8  ;;  %v1437_v19 = vpop.f32.mrb[3].mxu0 }
 0x1d7   :  { %v1678_v21 = vmul.f32 -1.442695, %v1474_v15  ;;  %v2251_v22 = vadd.f32 %v1437_v19, %v642_v11 }
 0x1d8   :  { %2623 = vpow2.f32 %v1679_v17  ;;  %v1477_v24 = vadd.f32 %v2250_v18, %v1472_v20 }
 0x1d9   :  { %2625 = vpow2.f32 %v1678_v21  ;;  %v1476_v25 = vadd.f32 %v2251_v22, %v1467_v23 }
 0x1da   :  { %v1681_v26 = vmul.f32 -1.442695, %v1477_v24 }
 0x1db   :  { %v1680_v27 = vmul.f32 -1.442695, %v1476_v25 }
 0x1dc   :  { %2627 = vpow2.f32 %v1681_v26 }
 0x1dd   :  { %2629 = vpow2.f32 %v1680_v27 }
 0x1e2   :  { %v2624_v29 = vpop.eup %2623 }
 0x1e3   :  { %v2626_v30 = vpop.eup %2625  ;;  %v1491_v31 = vadd.f32 1.0, %v2624_v29 }
 0x1e4   :  { %v1490_v33 = vadd.f32 1.0, %v2626_v30 }
 0x1e5   :  { %2631 = vrcp.f32 %v1491_v31 }
 0x1e6   :  { %v2628_v35 = vpop.eup %2627  ;;  %2633 = vrcp.f32 %v1490_v33 }
 0x1e7   :  { %v2630_v36 = vpop.eup %2629  ;;  %v1493_v37 = vadd.f32 1.0, %v2628_v35 }
 0x1e8   :  { %v1492_v38 = vadd.f32 1.0, %v2630_v36 }
 0x1e9   :  { %2635 = vrcp.f32 %v1493_v37 }
 0x1ea   :  { %2637 = vrcp.f32 %v1492_v38 }
 0x1ef   :  { %v2632_v39 = vpop.eup %2631 }
 0x1f0   :  { %v2634_v41 = vpop.eup %2633  ;;  %v1503_v42 = vmul.f32 %v2632_v39, %v1475_v14 }
 0x1f1   :  { %v1502_v34 = vmul.f32 %v2634_v41, %v1474_v15 }
 0x1f3   :  { %v2636_v43 = vpop.eup %2635  ;;  %v2240_v32 = vpack.c.bf16 %v1503_v42, %v1502_v34 }
 0x1f4   :  { %v2638_v45 = vpop.eup %2637  ;;  %v1505_v46 = vmul.f32 %v2636_v43, %v1477_v24 }
 0x1f5   :  { %v1504_v47 = vmul.f32 %v2638_v45, %v1476_v25  ;;  %2241 = vmatprep.subr.bf16.mxu1 %v2240_v32 }
 0x1f6   :  { %2243 = vmatpush3.bf16.msra.mxu1 %v2240_v32 }
 0x1f7   :  { %v2244_v49 = vpack.c.bf16 %v1505_v46, %v1504_v47 }
 0x1f9   :  { %2245 = vmatprep.subr.bf16.mxu1 %v2244_v49 }
 0x1fa   :  { %2247 = vmatpush3.bf16.msra.mxu1 %v2244_v49 }
 0x1fd   :  { %2094 = vmatmul.mubr.msk.f32.vlgmr.msra.gmra.mrb[4].mxu1 %vm1522_vm9, %v1509_v50 }
 0x2d0   :  { %v2095_v44 = vpop.f32.mrb[4].mxu1 }
 0x2d1   :  { %v1601_v53 = vadd.f32 %v2095_v44, %v1520_v51  ;;  %v1595_v54 = vpop.f32.mrb[5].mxu1 }
 0x2d2   :  { %v1596_v55 = vadd.f32 %v1595_v54, %v1515_v52 }
 0x2d3   :  { %1605 = vst [vmem:[%s3029_s5 + $0x8] sm:$0xf] %v1601_v53 }
 0x2d4   :  { %1604 = vst [vmem:[%s3029_s5] sm:$0xff] %v1596_v55 }

// kernel: refnet_forward.14
= control target key start
LH: loop header
LB: loop body
LE: loop exit
PB: predicated region body
PF: predicated region fallthrough
CT: control target
= control target key end

     0   :  { %s2639_s30 = smov 121   ;;  %vm142_vm0 = vcmask 523264   ;;  %s2640_s12 = smov 127   ;;  %vm696_vm1 = vcmask 990208   ;;  %v2647_v60 = vmov 0   ;;  %vm125_vm2 = vcmask 1039360   ;;  %s3024_s0 = inlined_call_operand.vmem [shape: bf16[64,256], index: 0, kind: input, shape index: {}]   ;;  %s3025_s1 = inlined_call_operand.vmem [shape: bf16[9,32,64], index: 1, kind: input, shape index: {}]   ;;  %s3026_s2 = inlined_call_operand.vmem [shape: f32[32,1], index: 2, kind: input, shape index: {}]   ;;  %s3027_s4 = inlined_call_operand.vmem [shape: f32[12,1], index: 4, kind: input, shape index: {}]   ;;  %s3028_s3 = inlined_call_operand.vmem [shape: bf16[12,32], index: 3, kind: input, shape index: {}]   ;;  %s3029_s5 = inlined_call_operand.vmem [shape: f32[12,128], index: 5, kind: output, shape index: {}]  }
   0x1   :  { %v46_v0 = vld [vmem:[%s3024_s0 + $0x10] sm:$0xff]  ;;  %v44_v1 = vld [vmem:[%s3024_s0] sm:$0xff]  ;;  %v47_v2 = vld [vmem:[%s3024_s0 + $0x18] sm:$0xff]  ;;  %s2641_s13 = smov 120   ;;  %s2642_s16 = smov 116   ;;  %2618 = vset.pattern.permute.xlu1 %v2647_v60  ;;  %2617 = vset.pattern.permute.xlu0 %v2647_v60  ;;  %vm855_vm3 = vcmask 982016  }
   0x2   :  { %v56_v3 = vunpack.c.l.bf16 %v46_v0  ;;  %v57_v4 = vunpack.c.h.bf16 %v46_v0  ;;  %v52_v5 = vunpack.c.l.bf16 %v44_v1  ;;  %v53_v6 = vunpack.c.h.bf16 %v44_v1  ;;  %v45_v7 = vld [vmem:[%s3024_s0 + $0x8] sm:$0xff]  ;;  %v48_v13 = vld [vmem:[%s3024_s0 + $0x20] sm:$0xff]  ;;  %v51_v22 = vld [vmem:[%s3024_s0 + $0x38] sm:$0xff]  ;;  %s2643_s17 = smov 126   ;;  %s2644_s18 = smov 115  }
   0x3   :  { %v49_v8 = vld [vmem:[%s3024_s0 + $0x28] sm:$0xff]  ;;  %v58_v9 = vunpack.c.l.bf16 %v47_v2  ;;  %v59_v10 = vunpack.c.h.bf16 %v47_v2  ;;  %v54_v11 = vunpack.c.l.bf16 %v45_v7  ;;  %v55_v12 = vunpack.c.h.bf16 %v45_v7  ;;  %v50_v23 = vld [vmem:[%s3024_s0 + $0x30] sm:$0xff]  ;;  %v2729_v32 = vld [vmem:[%s3025_s1 + $0x40] sm:$0xff]   ;;  %s2645_s19 = smov 122   ;;  %s2646_s20 = smov 114  }
   0x4   :  { %v2696_v14 = vpack.i.bf16 %v57_v4, %v56_v3  ;;  %v2698_v15 = vpack.i.bf16 %v53_v6, %v52_v5  ;;  %v62_v16 = vunpack.c.l.bf16 %v49_v8  ;;  %v63_v17 = vunpack.c.h.bf16 %v49_v8  ;;  %v2748_v34 = vld [vmem:[%s3025_s1 + $0x10] sm:$0xff]   ;;  %v1451_v61 = vld [vmem:[%s3026_s2 + $0x8] sm:$0xff]  ;;  %v1450_v62 = vld [vmem:[%s3026_s2] sm:$0xff] }
   0x5   :  { %v2702_v18 = vpack.i.bf16 %v59_v10, %v58_v9  ;;  %v2704_v19 = vpack.i.bf16 %v55_v12, %v54_v11  ;;  %v60_v20 = vunpack.c.l.bf16 %v48_v13  ;;  %v61_v21 = vunpack.c.h.bf16 %v48_v13  ;;  %v1452_v8 = vld [vmem:[%s3026_s2 + $0x10] sm:$0xff]  ;;  %v1453_v9 = vld [vmem:[%s3026_s2 + $0x18] sm:$0xff] }
   0x6   :  { %2308 = vrot.lane.b32.xlu1 %v2696_v14, %s2639_s30  ;;  %2298 = vrot.lane.b32.xlu0 %v2698_v15, %s2639_s30  ;;  %v66_v24 = vunpack.c.l.bf16 %v51_v22  ;;  %v67_v25 = vunpack.c.h.bf16 %v51_v22  ;;  %v2714_v26 = vpack.i.bf16 %v63_v17, %v62_v16  ;;  %v64_v28 = vunpack.c.l.bf16 %v50_v23 }
   0x7   :  { %v2716_v27 = vpack.i.bf16 %v61_v21, %v60_v20  ;;  %v65_v29 = vunpack.c.h.bf16 %v50_v23  ;;  %v1718_v33 = vunpack.c.l.bf16 %v2729_v32  ;;  %v1694_v35 = vunpack.c.l.bf16 %v2748_v34  ;;  %v1510_v21 = vld [vmem:[%s3027_s4] sm:$0xff] }
   0x8   :  { %v2718_v30 = vpack.i.bf16 %v67_v25, %v66_v24  ;;  %v1511_v25 = vld [vmem:[%s3027_s4 + $0x8] sm:$0xf]  ;;  %vm1014_vm4 = vcmask 949248   ;;  %vm378_vm5 = vcmask 1031168   ;;  %vm1173_vm6 = vcmask 941056  }
   0x9   :  { %v2722_v31 = vpack.i.bf16 %v65_v29, %v64_v28  ;;  %1991 = vmatprep.mubr.msk.f32.mxu0 %vm142_vm0, %v1718_v33  ;;  %1903 = vmatprep.mubr.msk.f32.mxu1 %vm142_vm0, %v1694_v35  ;;  %vm537_vm7 = vcmask 998400   ;;  %vm1332_vm8 = vcmask 932864   ;;  %vm1522_vm9 = vcmask 261120  }
   0xa   :  { %2313 = vrot.lane.b32.xlu1 %v2702_v18, %s2639_s30  ;;  %2303 = vrot.lane.b32.xlu0 %v2704_v19, %s2639_s30 }
   0xe   :  { %2323 = vrot.lane.b32.xlu1 %v2714_v26, %s2639_s30  ;;  %2318 = vrot.lane.b32.xlu0 %v2716_v27, %s2639_s30 }
  0x12   :  { %2333 = vrot.lane.b32.xlu1 %v2718_v30, %s2639_s30  ;;  %2328 = vrot.lane.b32.xlu0 %v2722_v31, %s2639_s30 }
  0x16   :  { %2343 = vrot.lane.b32.xlu1 %v2704_v19, %s2640_s12  ;;  %2338 = vrot.lane.b32.xlu0 %v2698_v15, %s2640_s12 }
  0x1a   :  { %2353 = vrot.lane.b32.xlu1 %v2704_v19, %s2641_s13  ;;  %2348 = vrot.lane.b32.xlu0 %v2698_v15, %s2641_s13 }
  0x1e   :  { %2363 = vrot.lane.b32.xlu1 %v2702_v18, %s2640_s12  ;;  %2358 = vrot.lane.b32.xlu0 %v2696_v14, %s2640_s12 }
  0x22   :  { %2373 = vrot.lane.b32.xlu1 %v2702_v18, %s2641_s13  ;;  %2368 = vrot.lane.b32.xlu0 %v2696_v14, %s2641_s13 }
  0x26   :  { %2383 = vrot.lane.b32.xlu1 %v2714_v26, %s2640_s12  ;;  %2378 = vrot.lane.b32.xlu0 %v2716_v27, %s2640_s12 }
  0x2a   :  { %2393 = vrot.lane.b32.xlu1 %v2714_v26, %s2641_s13  ;;  %2388 = vrot.lane.b32.xlu0 %v2716_v27, %s2641_s13 }
  0x2e   :  { %2403 = vrot.lane.b32.xlu1 %v2718_v30, %s2640_s12  ;;  %2398 = vrot.lane.b32.xlu0 %v2722_v31, %s2640_s12 }
  0x32   :  { %2413 = vrot.lane.b32.xlu1 %v2718_v30, %s2641_s13  ;;  %2408 = vrot.lane.b32.xlu0 %v2722_v31, %s2641_s13 }
  0x36   :  { %2423 = vrot.lane.b32.xlu1 %v2704_v19, %s2642_s16  ;;  %2418 = vrot.lane.b32.xlu0 %v2698_v15, %s2642_s16 }
  0x3a   :  { %2433 = vrot.lane.b32.xlu1 %v2702_v18, %s2642_s16  ;;  %2428 = vrot.lane.b32.xlu0 %v2696_v14, %s2642_s16 }
  0x3e   :  { %2443 = vrot.lane.b32.xlu1 %v2714_v26, %s2642_s16  ;;  %2438 = vrot.lane.b32.xlu0 %v2716_v27, %s2642_s16 }
  0x42   :  { %2453 = vrot.lane.b32.xlu1 %v2718_v30, %s2642_s16  ;;  %2448 = vrot.lane.b32.xlu0 %v2722_v31, %s2642_s16 }
  0x46   :  { %2463 = vrot.lane.b32.xlu1 %v2704_v19, %s2643_s17  ;;  %2458 = vrot.lane.b32.xlu0 %v2698_v15, %s2643_s17 }
  0x4a   :  { %2473 = vrot.lane.b32.xlu1 %v2704_v19, %s2644_s18  ;;  %2468 = vrot.lane.b32.xlu0 %v2698_v15, %s2644_s18 }
  0x4e   :  { %2483 = vrot.lane.b32.xlu1 %v2702_v18, %s2643_s17  ;;  %2478 = vrot.lane.b32.xlu0 %v2696_v14, %s2643_s17 }
  0x52   :  { %2493 = vrot.lane.b32.xlu1 %v2702_v18, %s2644_s18  ;;  %2488 = vrot.lane.b32.xlu0 %v2696_v14, %s2644_s18 }
  0x56   :  { %2503 = vrot.lane.b32.xlu1 %v2714_v26, %s2643_s17  ;;  %2498 = vrot.lane.b32.xlu0 %v2716_v27, %s2643_s17 }
  0x5a   :  { %2513 = vrot.lane.b32.xlu1 %v2714_v26, %s2644_s18  ;;  %2508 = vrot.lane.b32.xlu0 %v2716_v27, %s2644_s18 }
  0x5e   :  { %2523 = vrot.lane.b32.xlu1 %v2718_v30, %s2643_s17  ;;  %2518 = vrot.lane.b32.xlu0 %v2722_v31, %s2643_s17 }
  0x62   :  { %2533 = vrot.lane.b32.xlu1 %v2718_v30, %s2644_s18  ;;  %2528 = vrot.lane.b32.xlu0 %v2722_v31, %s2644_s18 }
  0x66   :  { %2543 = vrot.lane.b32.xlu1 %v2704_v19, %s2645_s19  ;;  %2538 = vrot.lane.b32.xlu0 %v2698_v15, %s2645_s19 }
  0x6a   :  { %2553 = vrot.lane.b32.xlu1 %v2704_v19, %s2646_s20  ;;  %2548 = vrot.lane.b32.xlu0 %v2698_v15, %s2646_s20 }
  0x6e   :  { %2563 = vrot.lane.b32.xlu1 %v2702_v18, %s2645_s19  ;;  %2558 = vrot.lane.b32.xlu0 %v2696_v14, %s2645_s19 }
  0x72   :  { %2573 = vrot.lane.b32.xlu1 %v2702_v18, %s2646_s20  ;;  %2568 = vrot.lane.b32.xlu0 %v2696_v14, %s2646_s20 }
  0x76   :  { %2583 = vrot.lane.b32.xlu1 %v2714_v26, %s2645_s19  ;;  %2578 = vrot.lane.b32.xlu0 %v2716_v27, %s2645_s19 }
  0x78   :  { %v2309_v36 = vpop.permute.xlu1 %2308  ;;  %v2299_v37 = vpop.permute.xlu0 %2298 }
  0x79   :  { %v2301_v38 = vunpack.i.h.bf16 %v2299_v37  ;;  %v2300_v39 = vunpack.i.l.bf16 %v2299_v37  ;;  %v2311_v46 = vunpack.i.h.bf16 %v2309_v36  ;;  %v2310_v47 = vunpack.i.l.bf16 %v2309_v36 }
  0x7a   :  { %2593 = vrot.lane.b32.xlu1 %v2714_v26, %s2646_s20  ;;  %2588 = vrot.lane.b32.xlu0 %v2716_v27, %s2646_s20 }
  0x7b   :  { %v697_v48 = vsel %vm696_vm1, %v2300_v39, %v2301_v38  ;;  %v699_v58 = vsel %vm696_vm1, %v2310_v47, %v2311_v46 }
  0x7c   :  { %v2314_v40 = vpop.permute.xlu1 %2313  ;;  %v2304_v41 = vpop.permute.xlu0 %2303 }
  0x7d   :  { %v2316_v42 = vunpack.i.h.bf16 %v2314_v40  ;;  %v2315_v43 = vunpack.i.l.bf16 %v2314_v40  ;;  %v2306_v44 = vunpack.i.h.bf16 %v2304_v41  ;;  %v2305_v45 = vunpack.i.l.bf16 %v2304_v41 }
  0x7e   :  { %2603 = vrot.lane.b32.xlu1 %v2718_v30, %s2645_s19  ;;  %2598 = vrot.lane.b32.xlu0 %v2722_v31, %s2645_s19 }
  0x7f   :  { %v698_v49 = vsel %vm696_vm1, %v2305_v45, %v2306_v44  ;;  %v700_v53 = vsel %vm696_vm1, %v2315_v43, %v2316_v42  ;;  %v2841_v44 = vld [vmem:[%s3025_s1 + $0x50] sm:$0xff]  }
  0x80   :  { %v2324_v50 = vpop.permute.xlu1 %2323  ;;  %v2319_v51 = vpop.permute.xlu0 %2318  ;;  %v2160_v52 = vpack.c.bf16 %v698_v49, %v697_v48  ;;  %v2164_v59 = vpack.c.bf16 %v700_v53, %v699_v58 }
  0x81   :  { %v2326_v54 = vunpack.i.h.bf16 %v2324_v50  ;;  %v2325_v55 = vunpack.i.l.bf16 %v2324_v50  ;;  %v2321_v56 = vunpack.i.h.bf16 %v2319_v51  ;;  %v2320_v57 = vunpack.i.l.bf16 %v2319_v51 }
  0x82   :  { %2613 = vrot.lane.b32.xlu1 %v2718_v30, %s2646_s20  ;;  %2608 = vrot.lane.b32.xlu0 %v2722_v31, %s2646_s20  ;;  %v1764_v30 = vld [vmem:[%s3025_s1 + $0x48] sm:$0xff]   ;;  %v1719_v31 = vunpack.c.h.bf16 %v2729_v32  ;;  %v1726_v50 = vunpack.c.l.bf16 %v2841_v44 }
  0x83   :  { %2161 = vmatprep.subr.bf16.mxu0 %v2160_v52  ;;  %v701_v1 = vsel %vm696_vm1, %v2320_v57, %v2321_v56  ;;  %v702_v2 = vsel %vm696_vm1, %v2325_v55, %v2326_v54  ;;  %v1722_v39 = vunpack.c.l.bf16 %v1764_v30  ;;  %v1723_v46 = vunpack.c.h.bf16 %v1764_v30 }
  0x84   :  { %2163 = vmatpush3.bf16.msra.mxu0 %v2160_v52  ;;  %v2334_v63 = vpop.permute.xlu1 %2333  ;;  %v2329_v0 = vpop.permute.xlu0 %2328  ;;  %v2168_v7 = vpack.c.bf16 %v702_v2, %v701_v1 }
  0x85   :  { %v2336_v3 = vunpack.i.h.bf16 %v2334_v63  ;;  %v2335_v4 = vunpack.i.l.bf16 %v2334_v63  ;;  %v2331_v5 = vunpack.i.h.bf16 %v2329_v0  ;;  %v2330_v6 = vunpack.i.l.bf16 %v2329_v0  ;;  %2165 = vmatprep.subr.bf16.mxu0 %v2164_v59 }
  0x86   :  { %1461 = vperm.xlu1 %2618, %v1451_v61   ;;  %1456 = vperm.xlu0 %2617, %v1450_v62  }
  0x87   :  { %v703_v12 = vsel %vm696_vm1, %v2330_v6, %v2331_v5  ;;  %v704_v13 = vsel %vm696_vm1, %v2335_v4, %v2336_v3 }
  0x88   :  { %2167 = vmatpush3.bf16.msra.mxu0 %v2164_v59  ;;  %v2344_v10 = vpop.permute.xlu1 %2343  ;;  %v2339_v11 = vpop.permute.xlu0 %2338  ;;  %v2172_v18 = vpack.c.bf16 %v704_v13, %v703_v12 }
  0x89   :  { %v2346_v14 = vunpack.i.h.bf16 %v2344_v10  ;;  %v2345_v15 = vunpack.i.l.bf16 %v2344_v10  ;;  %v2341_v16 = vunpack.i.h.bf16 %v2339_v11  ;;  %v2340_v17 = vunpack.i.l.bf16 %v2339_v11  ;;  %2169 = vmatprep.subr.bf16.mxu0 %v2168_v7 }
  0x8a   :  { %1466 = vperm.xlu1 %2618, %v1452_v8   ;;  %1471 = vperm.xlu0 %2617, %v1453_v9  }
  0x8b   :  { %v126_v19 = vsel %vm125_vm2, %v2340_v17, %v2341_v16  ;;  %v127_v20 = vsel %vm125_vm2, %v2345_v15, %v2346_v14 }
  0x8c   :  { %2171 = vmatpush3.bf16.msra.mxu0 %v2168_v7  ;;  %v2354_v22 = vpop.permute.xlu1 %2353  ;;  %v2349_v23 = vpop.permute.xlu0 %2348  ;;  %v2096_v24 = vpack.c.bf16 %v127_v20, %v126_v19 }
  0x8d   :  { %v2356_v26 = vunpack.i.h.bf16 %v2354_v22  ;;  %v2355_v27 = vunpack.i.l.bf16 %v2354_v22  ;;  %v2351_v28 = vunpack.i.h.bf16 %v2349_v23  ;;  %v2350_v29 = vunpack.i.l.bf16 %v2349_v23  ;;  %2173 = vmatprep.subr.bf16.mxu0 %v2172_v18  ;;  %v2619_v23 = vld [vmem:[%s3024_s0] ss:$8 sps:$4 sm:$0xff]  }
  0x8e   :  { %2097 = vmatprep.subr.bf16.mxu1 %v2096_v24  ;;  %1514 = vperm.xlu1 %2618, %v1510_v21  }
  0x8f   :  { %2099 = vmatpush3.bf16.msra.mxu1 %v2096_v24  ;;  %v856_v33 = vsel %vm855_vm3, %v2350_v29, %v2351_v28  ;;  %v857_v35 = vsel %vm855_vm3, %v2355_v27, %v2356_v26  ;;  %1519 = vperm.xlu0 %2617, %v1511_v25   ;;  %v1758_v28 = vld [vmem:[%s3025_s1 + $0x18] sm:$0xff]   ;;  %v1695_v29 = vunpack.c.h.bf16 %v2748_v34  ;;  %v2873_v34 = vld [vmem:[%s3025_s1] sm:$0xff]  }
  0x90   :  { %2175 = vmatpush3.bf16.msra.mxu0 %v2172_v18  ;;  %v2364_v36 = vpop.permute.xlu1 %2363  ;;  %v2359_v37 = vpop.permute.xlu0 %2358  ;;  %v2176_v38 = vpack.c.bf16 %v857_v35, %v856_v33 }
  0x91   :  { %v2366_v40 = vunpack.i.h.bf16 %v2364_v36  ;;  %v2365_v41 = vunpack.i.l.bf16 %v2364_v36  ;;  %v2361_v42 = vunpack.i.h.bf16 %v2359_v37  ;;  %v2360_v43 = vunpack.i.l.bf16 %v2359_v37  ;;  %v2620_v37 = vld [vmem:[%s3024_s0 + $0x10] ss:$8 sps:$4 sm:$0xff]  }
  0x92   :  { %2177 = vmatprep.subr.bf16.mxu0 %v2176_v38 }
  0x93   :  { %1992 = vmatmul.mubr.msk.f32.vlgmr.msra.gmra.mrb[0].mxu0 %vm142_vm0, %v1719_v31  ;;  %v128_v32 = vsel %vm125_vm2, %v2360_v43, %v2361_v42  ;;  %v129_v45 = vsel %vm125_vm2, %v2365_v41, %v2366_v40  ;;  %v1766_v43 = vld [vmem:[%s3025_s1 + $0x58] sm:$0xff]  }
  0x94   :  { %2179 = vmatpush3.bf16.msra.mxu0 %v2176_v38  ;;  %v2374_v47 = vpop.permute.xlu1 %2373  ;;  %v2369_v48 = vpop.permute.xlu0 %2368  ;;  %v2100_v49 = vpack.c.bf16 %v129_v45, %v128_v32  ;;  %1994 = vmatprep.mubr.msk.f32.mxu0 %vm142_vm0, %v1722_v39  ;;  %v1698_v38 = vunpack.c.l.bf16 %v1758_v28  ;;  %v1727_v32 = vunpack.c.h.bf16 %v2841_v44  ;;  %v1686_v44 = vunpack.c.l.bf16 %v2873_v34 }
  0x95   :  { %v2376_v51 = vunpack.i.h.bf16 %v2374_v47  ;;  %v2375_v52 = vunpack.i.l.bf16 %v2374_v47  ;;  %v2371_v53 = vunpack.i.h.bf16 %v2369_v48  ;;  %v2370_v54 = vunpack.i.l.bf16 %v2369_v48 }
  0x96   :  { %2101 = vmatprep.subr.bf16.mxu1 %v2100_v49 }
  0x97   :  { %2103 = vmatpush3.bf16.msra.mxu1 %v2100_v49  ;;  %v858_v55 = vsel %vm855_vm3, %v2370_v54, %v2371_v53  ;;  %v859_v56 = vsel %vm855_vm3, %v2375_v52, %v2376_v51  ;;  %1995 = vmatmul.mubr.msk.f32.gmra.mrb[2].mxu0 %vm142_vm0, %v1723_v46  ;;  %v1699_v51 = vunpack.c.h.bf16 %v1758_v28  ;;  %v1730_v52 = vunpack.c.l.bf16 %v1766_v43  ;;  %v2918_v28 = vld [vmem:[%s3025_s1 + $0x20] sm:$0xff]  }
  0x98   :  { %v2384_v57 = vpop.permute.xlu1 %2383  ;;  %v2379_v58 = vpop.permute.xlu0 %2378  ;;  %v2180_v59 = vpack.c.bf16 %v859_v56, %v858_v55  ;;  %2013 = vmatprep.mubr.msk.f32.mxu0 %vm142_vm0, %v1726_v50  ;;  %v2621_v50 = vld [vmem:[%s3024_s0 + $0x20] ss:$8 sps:$4 sm:$0xff]  }
  0x99   :  { %v2386_v60 = vunpack.i.h.bf16 %v2384_v57  ;;  %v2385_v61 = vunpack.i.l.bf16 %v2384_v57  ;;  %v2381_v62 = vunpack.i.h.bf16 %v2379_v58  ;;  %v2380_v63 = vunpack.i.l.bf16 %v2379_v58  ;;  %v2890_v57 = vld [vmem:[%s3025_s1 + $0x60] sm:$0xff]  }
  0x9a   :  { %2181 = vmatprep.subr.bf16.mxu0 %v2180_v59  ;;  %v1731_v58 = vunpack.c.h.bf16 %v1766_v43 }
  0x9b   :  { %2183 = vmatpush3.bf16.msra.mxu0 %v2180_v59  ;;  %v130_v0 = vsel %vm125_vm2, %v2380_v63, %v2381_v62  ;;  %v131_v1 = vsel %vm125_vm2, %v2385_v61, %v2386_v60 }
  0x9c   :  { %v2394_v2 = vpop.permute.xlu1 %2393  ;;  %v2389_v3 = vpop.permute.xlu0 %2388  ;;  %v2104_v4 = vpack.c.bf16 %v131_v1, %v130_v0  ;;  %v2622_v0 = vld [vmem:[%s3024_s0 + $0x30] ss:$8 sps:$4 sm:$0xff]   ;;  %v1734_v1 = vunpack.c.l.bf16 %v2890_v57 }
  0x9d   :  { %v2396_v5 = vunpack.i.h.bf16 %v2394_v2  ;;  %v2395_v6 = vunpack.i.l.bf16 %v2394_v2  ;;  %v2391_v7 = vunpack.i.h.bf16 %v2389_v3  ;;  %v2390_v8 = vunpack.i.l.bf16 %v2389_v3 }
  0x9e   :  { %2105 = vmatprep.subr.bf16.mxu1 %v2104_v4 }
  0x9f   :  { %2107 = vmatpush3.bf16.msra.mxu1 %v2104_v4  ;;  %v860_v9 = vsel %vm855_vm3, %v2390_v8, %v2391_v7  ;;  %v861_v10 = vsel %vm855_vm3, %v2395_v6, %v2396_v5 }
  0xa0   :  { %v2404_v11 = vpop.permute.xlu1 %2403  ;;  %v2399_v12 = vpop.permute.xlu0 %2398  ;;  %v2184_v13 = vpack.c.bf16 %v861_v10, %v860_v9 }
  0xa1   :  { %v2406_v14 = vunpack.i.h.bf16 %v2404_v11  ;;  %v2405_v15 = vunpack.i.l.bf16 %v2404_v11  ;;  %v2401_v16 = vunpack.i.h.bf16 %v2399_v12  ;;  %v2400_v17 = vunpack.i.l.bf16 %v2399_v12  ;;  %v1756_v11 = vld [vmem:[%s3025_s1 + $0x8] sm:$0xff]  }
  0xa2   :  { %2185 = vmatprep.subr.bf16.mxu0 %v2184_v13 }
  0xa3   :  { %2187 = vmatpush3.bf16.msra.mxu0 %v2184_v13  ;;  %v132_v18 = vsel %vm125_vm2, %v2400_v17, %v2401_v16  ;;  %v133_v19 = vsel %vm125_vm2, %v2405_v15, %v2406_v14  ;;  %v1687_v16 = vunpack.c.h.bf16 %v2873_v34 }
  0xa4   :  { %v2414_v20 = vpop.permute.xlu1 %2413  ;;  %v2409_v21 = vpop.permute.xlu0 %2408  ;;  %v2108_v22 = vpack.c.bf16 %v133_v19, %v132_v18  ;;  %v1690_v19 = vunpack.c.l.bf16 %v1756_v11 }
  0xa5   :  { %v2416_v24 = vunpack.i.h.bf16 %v2414_v20  ;;  %v2415_v25 = vunpack.i.l.bf16 %v2414_v20  ;;  %v2411_v26 = vunpack.i.h.bf16 %v2409_v21  ;;  %v2410_v27 = vunpack.i.l.bf16 %v2409_v21 }
  0xa6   :  { %2109 = vmatprep.subr.bf16.mxu1 %v2108_v22 }
  0xa7   :  { %2111 = vmatpush3.bf16.msra.mxu1 %v2108_v22  ;;  %v862_v30 = vsel %vm855_vm3, %v2410_v27, %v2411_v26  ;;  %v863_v31 = vsel %vm855_vm3, %v2415_v25, %v2416_v24 }
  0xa8   :  { %v2424_v33 = vpop.permute.xlu1 %2423  ;;  %v2419_v35 = vpop.permute.xlu0 %2418  ;;  %v2188_v36 = vpack.c.bf16 %v863_v31, %v862_v30  ;;  %2113 = vmatprep.subr.bf16.mxu1 %v2619_v23 }
  0xa9   :  { %v2426_v39 = vunpack.i.h.bf16 %v2424_v33  ;;  %v2425_v40 = vunpack.i.l.bf16 %v2424_v33  ;;  %v2421_v41 = vunpack.i.h.bf16 %v2419_v35  ;;  %v2420_v42 = vunpack.i.l.bf16 %v2419_v35 }
  0xaa   :  { %2189 = vmatprep.subr.bf16.mxu0 %v2188_v36  ;;  %1904 = vmatmul.mubr.msk.f32.vlgmr.msra.gmra.mrb[0].mxu1 %vm142_vm0, %v1695_v29  ;;  %v1735_v29 = vunpack.c.h.bf16 %v2890_v57 }
  0xab   :  { %2191 = vmatpush3.bf16.msra.mxu0 %v2188_v36  ;;  %v1015_v45 = vsel %vm1014_vm4, %v2420_v42, %v2421_v41  ;;  %v1016_v46 = vsel %vm1014_vm4, %v2425_v40, %v2426_v39  ;;  %2115 = vmatpush3.bf16.msra.mxu1 %v2619_v23  ;;  %v1768_v23 = vld [vmem:[%s3025_s1 + $0x68] sm:$0xff]   ;;  %v1702_v39 = vunpack.c.l.bf16 %v2918_v28  ;;  %v2929_v40 = vld [vmem:[%s3025_s1 + $0x70] sm:$0xff]  }
  0xac   :  { %v2434_v47 = vpop.permute.xlu1 %2433  ;;  %v2429_v48 = vpop.permute.xlu0 %2428  ;;  %v2192_v49 = vpack.c.bf16 %v1016_v46, %v1015_v45  ;;  %2117 = vmatprep.subr.bf16.mxu1 %v2620_v37  ;;  %1906 = vmatprep.mubr.msk.f32.mxu1 %vm142_vm0, %v1698_v38  ;;  %v1738_v33 = vunpack.c.l.bf16 %v1768_v23  ;;  %v1691_v38 = vunpack.c.h.bf16 %v1756_v11 }
  0xad   :  { %v2436_v53 = vunpack.i.h.bf16 %v2434_v47  ;;  %v2435_v54 = vunpack.i.l.bf16 %v2434_v47  ;;  %v2431_v55 = vunpack.i.h.bf16 %v2429_v48  ;;  %v2430_v56 = vunpack.i.l.bf16 %v2429_v48 }
  0xae   :  { %2193 = vmatprep.subr.bf16.mxu0 %v2192_v49  ;;  %2014 = vmatmul.mubr.msk.f32.vlgmr.msra.gmra.mrb[0].mxu0 %vm142_vm0, %v1727_v32  ;;  %v1739_v32 = vunpack.c.h.bf16 %v1768_v23  ;;  %v1742_v47 = vunpack.c.l.bf16 %v2929_v40 }
  0xaf   :  { %2195 = vmatpush3.bf16.msra.mxu0 %v2192_v49  ;;  %v1017_v59 = vsel %vm1014_vm4, %v2430_v56, %v2431_v55  ;;  %v1018_v60 = vsel %vm1014_vm4, %v2435_v54, %v2436_v53  ;;  %2119 = vmatpush3.bf16.msra.mxu1 %v2620_v37 }
  0xb0   :  { %v2444_v61 = vpop.permute.xlu1 %2443  ;;  %v2439_v62 = vpop.permute.xlu0 %2438  ;;  %v2196_v63 = vpack.c.bf16 %v1018_v60, %v1017_v59  ;;  %2121 = vmatprep.subr.bf16.mxu1 %v2621_v50  ;;  %1907 = vmatmul.mubr.msk.f32.gmra.mrb[2].mxu1 %vm142_vm0, %v1699_v51 }
  0xb1   :  { %v2446_v2 = vunpack.i.h.bf16 %v2444_v61  ;;  %v2445_v3 = vunpack.i.l.bf16 %v2444_v61  ;;  %v2441_v4 = vunpack.i.h.bf16 %v2439_v62  ;;  %v2440_v5 = vunpack.i.l.bf16 %v2439_v62  ;;  %1925 = vmatprep.mubr.msk.f32.mxu1 %vm142_vm0, %v1686_v44  ;;  %2016 = vmatprep.mubr.msk.f32.mxu0 %vm142_vm0, %v1730_v52 }
  0xb2   :  { %2197 = vmatprep.subr.bf16.mxu0 %v2196_v63  ;;  %2017 = vmatmul.mubr.msk.f32.gmra.mrb[2].mxu0 %vm142_vm0, %v1731_v58 }
  0xb3   :  { %2199 = vmatpush3.bf16.msra.mxu0 %v2196_v63  ;;  %v1019_v6 = vsel %vm1014_vm4, %v2440_v5, %v2441_v4  ;;  %v1020_v7 = vsel %vm1014_vm4, %v2445_v3, %v2446_v2  ;;  %2123 = vmatpush3.bf16.msra.mxu1 %v2621_v50 }
  0xb4   :  { %v2454_v8 = vpop.permute.xlu1 %2453  ;;  %v2449_v9 = vpop.permute.xlu0 %2448  ;;  %v2200_v10 = vpack.c.bf16 %v1020_v7, %v1019_v6  ;;  %2125 = vmatprep.subr.bf16.mxu1 %v2622_v0  ;;  %2035 = vmatprep.mubr.msk.f32.mxu0 %vm142_vm0, %v1734_v1 }
  0xb5   :  { %v2456_v12 = vunpack.i.h.bf16 %v2454_v8  ;;  %v2455_v13 = vunpack.i.l.bf16 %v2454_v8  ;;  %v2451_v14 = vunpack.i.h.bf16 %v2449_v9  ;;  %v2450_v15 = vunpack.i.l.bf16 %v2449_v9 }
  0xb6   :  { %2201 = vmatprep.subr.bf16.mxu0 %v2200_v10 }
  0xb7   :  { %2203 = vmatpush3.bf16.msra.mxu0 %v2200_v10  ;;  %v1021_v17 = vsel %vm1014_vm4, %v2450_v15, %v2451_v14  ;;  %v1022_v18 = vsel %vm1014_vm4, %v2455_v13, %v2456_v12  ;;  %2127 = vmatpush3.bf16.msra.mxu1 %v2622_v0 }
  0xb8   :  { %v2464_v20 = vpop.permute.xlu1 %2463  ;;  %v2459_v21 = vpop.permute.xlu0 %2458  ;;  %v2204_v22 = vpack.c.bf16 %v1022_v18, %v1021_v17 }
  0xb9   :  { %v2466_v24 = vunpack.i.h.bf16 %v2464_v20  ;;  %v2465_v25 = vunpack.i.l.bf16 %v2464_v20  ;;  %v2461_v26 = vunpack.i.h.bf16 %v2459_v21  ;;  %v2460_v27 = vunpack.i.l.bf16 %v2459_v21 }
  0xba   :  { %2205 = vmatprep.subr.bf16.mxu0 %v2204_v22  ;;  %1926 = vmatmul.mubr.msk.f32.vlgmr.msra.gmra.mrb[0].mxu1 %vm142_vm0, %v1687_v16 }
  0xbb   :  { %2207 = vmatpush3.bf16.msra.mxu0 %v2204_v22  ;;  %v379_v30 = vsel %vm378_vm5, %v2460_v27, %v2461_v26  ;;  %v380_v31 = vsel %vm378_vm5, %v2465_v25, %v2466_v24  ;;  %1928 = vmatprep.mubr.msk.f32.mxu1 %vm142_vm0, %v1690_v19 }
  0xbc   :  { %v2474_v35 = vpop.permute.xlu1 %2473  ;;  %v2469_v36 = vpop.permute.xlu0 %2468  ;;  %v2128_v37 = vpack.c.bf16 %v380_v31, %v379_v30 }
  0xbd   :  { %v2476_v41 = vunpack.i.h.bf16 %v2474_v35  ;;  %v2475_v42 = vunpack.i.l.bf16 %v2474_v35  ;;  %v2471_v34 = vunpack.i.h.bf16 %v2469_v36  ;;  %v2470_v43 = vunpack.i.l.bf16 %v2469_v36 }
  0xbe   :  { %2129 = vmatprep.subr.bf16.mxu1 %v2128_v37  ;;  %2036 = vmatmul.mubr.msk.f32.vlgmr.msra.gmra.mrb[0].mxu0 %vm142_vm0, %v1735_v29 }
  0xbf   :  { %2131 = vmatpush3.bf16.msra.mxu1 %v2128_v37  ;;  %v1174_v45 = vsel %vm1173_vm6, %v2470_v43, %v2471_v34  ;;  %v1175_v46 = vsel %vm1173_vm6, %v2475_v42, %v2476_v41  ;;  %2038 = vmatprep.mubr.msk.f32.mxu0 %vm142_vm0, %v1738_v33  ;;  %v1760_v33 = vld [vmem:[%s3025_s1 + $0x28] sm:$0xff]  }
  0xc0   :  { %v2484_v48 = vpop.permute.xlu1 %2483  ;;  %v2479_v49 = vpop.permute.xlu0 %2478  ;;  %v2208_v50 = vpack.c.bf16 %v1175_v46, %v1174_v45  ;;  %1929 = vmatmul.mubr.msk.f32.gmra.mrb[2].mxu1 %vm142_vm0, %v1691_v38  ;;  %v1706_v34 = vunpack.c.l.bf16 %v1760_v33  ;;  %v1770_v46 = vld [vmem:[%s3025_s1 + $0x78] sm:$0xff]  }
  0xc1   :  { %v2486_v51 = vunpack.i.h.bf16 %v2484_v48  ;;  %v2485_v44 = vunpack.i.l.bf16 %v2484_v48  ;;  %v2481_v52 = vunpack.i.h.bf16 %v2479_v49  ;;  %v2480_v53 = vunpack.i.l.bf16 %v2479_v49  ;;  %1947 = vmatprep.mubr.msk.f32.mxu1 %vm142_vm0, %v1702_v39 }
  0xc2   :  { %2209 = vmatprep.subr.bf16.mxu0 %v2208_v50  ;;  %2039 = vmatmul.mubr.msk.f32.gmra.mrb[2].mxu0 %vm142_vm0, %v1739_v32  ;;  %v1703_v39 = vunpack.c.h.bf16 %v2918_v28  ;;  %v2962_v28 = vld [vmem:[%s3025_s1 + $0x30] sm:$0xff]  }
  0xc3   :  { %2211 = vmatpush3.bf16.msra.mxu0 %v2208_v50  ;;  %v381_v54 = vsel %vm378_vm5, %v2480_v53, %v2481_v52  ;;  %v382_v55 = vsel %vm378_vm5, %v2485_v44, %v2486_v51  ;;  %2057 = vmatprep.mubr.msk.f32.mxu0 %vm142_vm0, %v1742_v47  ;;  %v1743_v51 = vunpack.c.h.bf16 %v2929_v40  ;;  %v1746_v53 = vunpack.c.l.bf16 %v1770_v46 }
  0xc4   :  { %v2494_v56 = vpop.permute.xlu1 %2493  ;;  %v2489_v57 = vpop.permute.xlu0 %2488  ;;  %v2132_v58 = vpack.c.bf16 %v382_v55, %v381_v54 }
  0xc5   :  { %v2496_v59 = vunpack.i.h.bf16 %v2494_v56  ;;  %v2495_v60 = vunpack.i.l.bf16 %v2494_v56  ;;  %v2491_v61 = vunpack.i.h.bf16 %v2489_v57  ;;  %v2490_v62 = vunpack.i.l.bf16 %v2489_v57 }
  0xc6   :  { %2133 = vmatprep.subr.bf16.mxu1 %v2132_v58  ;;  %v1707_v57 = vunpack.c.h.bf16 %v1760_v33 }
  0xc7   :  { %2135 = vmatpush3.bf16.msra.mxu1 %v2132_v58  ;;  %v1176_v63 = vsel %vm1173_vm6, %v2490_v62, %v2491_v61  ;;  %v1177_v0 = vsel %vm1173_vm6, %v2495_v60, %v2496_v59  ;;  %v1710_v58 = vunpack.c.l.bf16 %v2962_v28  ;;  %v2973_v59 = vld [vmem:[%s3025_s1 + $0x80] sm:$0xff]  }
  0xc8   :  { %v2504_v1 = vpop.permute.xlu1 %2503  ;;  %v2499_v2 = vpop.permute.xlu0 %2498  ;;  %v2212_v3 = vpack.c.bf16 %v1177_v0, %v1176_v63  ;;  %v1747_v63 = vunpack.c.h.bf16 %v1770_v46 }
  0xc9   :  { %v2506_v4 = vunpack.i.h.bf16 %v2504_v1  ;;  %v2505_v5 = vunpack.i.l.bf16 %v2504_v1  ;;  %v2501_v6 = vunpack.i.h.bf16 %v2499_v2  ;;  %v2500_v7 = vunpack.i.l.bf16 %v2499_v2 }
  0xca   :  { %2213 = vmatprep.subr.bf16.mxu0 %v2212_v3  ;;  %v1750_v2 = vunpack.c.l.bf16 %v2973_v59 }
  0xcb   :  { %2215 = vmatpush3.bf16.msra.mxu0 %v2212_v3  ;;  %v383_v8 = vsel %vm378_vm5, %v2500_v7, %v2501_v6  ;;  %v384_v9 = vsel %vm378_vm5, %v2505_v5, %v2506_v4 }
  0xcc   :  { %v2514_v10 = vpop.permute.xlu1 %2513  ;;  %v2509_v11 = vpop.permute.xlu0 %2508  ;;  %v2136_v12 = vpack.c.bf16 %v384_v9, %v383_v8 }
  0xcd   :  { %v2516_v13 = vunpack.i.h.bf16 %v2514_v10  ;;  %v2515_v14 = vunpack.i.l.bf16 %v2514_v10  ;;  %v2511_v15 = vunpack.i.h.bf16 %v2509_v11  ;;  %v2510_v16 = vunpack.i.l.bf16 %v2509_v11 }
  0xce   :  { %2137 = vmatprep.subr.bf16.mxu1 %v2136_v12 }
  0xcf   :  { %2139 = vmatpush3.bf16.msra.mxu1 %v2136_v12  ;;  %v1178_v17 = vsel %vm1173_vm6, %v2510_v16, %v2511_v15  ;;  %v1179_v18 = vsel %vm1173_vm6, %v2515_v14, %v2516_v13 }
  0xd0   :  { %v2524_v19 = vpop.permute.xlu1 %2523  ;;  %v2519_v20 = vpop.permute.xlu0 %2518  ;;  %v2216_v21 = vpack.c.bf16 %v1179_v18, %v1178_v17 }
  0xd1   :  { %v2526_v22 = vunpack.i.h.bf16 %v2524_v19  ;;  %v2525_v23 = vunpack.i.l.bf16 %v2524_v19  ;;  %v2521_v24 = vunpack.i.h.bf16 %v2519_v20  ;;  %v2520_v25 = vunpack.i.l.bf16 %v2519_v20 }
  0xd2   :  { %2217 = vmatprep.subr.bf16.mxu0 %v2216_v21 }
  0xd3   :  { %2219 = vmatpush3.bf16.msra.mxu0 %v2216_v21  ;;  %v385_v26 = vsel %vm378_vm5, %v2520_v25, %v2521_v24  ;;  %v386_v27 = vsel %vm378_vm5, %v2525_v23, %v2526_v22 }
  0xd4   :  { %v2534_v29 = vpop.permute.xlu1 %2533  ;;  %v2529_v30 = vpop.permute.xlu0 %2528  ;;  %v2140_v31 = vpack.c.bf16 %v386_v27, %v385_v26 }
  0xd5   :  { %v2536_v35 = vunpack.i.h.bf16 %v2534_v29  ;;  %v2535_v36 = vunpack.i.l.bf16 %v2534_v29  ;;  %v2531_v37 = vunpack.i.h.bf16 %v2529_v30  ;;  %v2530_v38 = vunpack.i.l.bf16 %v2529_v30 }
  0xd6   :  { %2141 = vmatprep.subr.bf16.mxu1 %v2140_v31 }
  0xd7   :  { %2143 = vmatpush3.bf16.msra.mxu1 %v2140_v31  ;;  %v1180_v41 = vsel %vm1173_vm6, %v2530_v38, %v2531_v37  ;;  %v1181_v42 = vsel %vm1173_vm6, %v2535_v36, %v2536_v35 }
  0xd8   :  { %v2544_v43 = vpop.permute.xlu1 %2543  ;;  %v2539_v32 = vpop.permute.xlu0 %2538  ;;  %v2220_v45 = vpack.c.bf16 %v1181_v42, %v1180_v41 }
  0xd9   :  { %v2546_v47 = vunpack.i.h.bf16 %v2544_v43  ;;  %v2545_v48 = vunpack.i.l.bf16 %v2544_v43  ;;  %v2541_v49 = vunpack.i.h.bf16 %v2539_v32  ;;  %v2540_v50 = vunpack.i.l.bf16 %v2539_v32 }
  0xda   :  { %2221 = vmatprep.subr.bf16.mxu0 %v2220_v45  ;;  %1948 = vmatmul.mubr.msk.f32.vlgmr.msra.gmra.mrb[0].mxu1 %vm142_vm0, %v1703_v39 }
  0xdb   :  { %2223 = vmatpush3.bf16.msra.mxu0 %v2220_v45  ;;  %v538_v44 = vsel %vm537_vm7, %v2540_v50, %v2541_v49  ;;  %v539_v52 = vsel %vm537_vm7, %v2545_v48, %v2546_v47  ;;  %1950 = vmatprep.mubr.msk.f32.mxu1 %vm142_vm0, %v1706_v34 }
  0xdc   :  { %v2554_v54 = vpop.permute.xlu1 %2553  ;;  %v2549_v55 = vpop.permute.xlu0 %2548  ;;  %v2144_v56 = vpack.c.bf16 %v539_v52, %v538_v44 }
  0xdd   :  { %v2556_v40 = vunpack.i.h.bf16 %v2554_v54  ;;  %v2555_v60 = vunpack.i.l.bf16 %v2554_v54  ;;  %v2551_v61 = vunpack.i.h.bf16 %v2549_v55  ;;  %v2550_v62 = vunpack.i.l.bf16 %v2549_v55 }
  0xde   :  { %2145 = vmatprep.subr.bf16.mxu1 %v2144_v56  ;;  %2058 = vmatmul.mubr.msk.f32.vlgmr.msra.gmra.mrb[0].mxu0 %vm142_vm0, %v1743_v51 }
  0xdf   :  { %2147 = vmatpush3.bf16.msra.mxu1 %v2144_v56  ;;  %v1333_v0 = vsel %vm1332_vm8, %v2550_v62, %v2551_v61  ;;  %v1334_v1 = vsel %vm1332_vm8, %v2555_v60, %v2556_v40  ;;  %2060 = vmatprep.mubr.msk.f32.mxu0 %vm142_vm0, %v1746_v53  ;;  %v1762_v53 = vld [vmem:[%s3025_s1 + $0x38] sm:$0xff]  }
  0xe0   :  { %v2564_v3 = vpop.permute.xlu1 %2563  ;;  %v2559_v4 = vpop.permute.xlu0 %2558  ;;  %v2224_v5 = vpack.c.bf16 %v1334_v1, %v1333_v0  ;;  %1951 = vmatmul.mubr.msk.f32.gmra.mrb[2].mxu1 %vm142_vm0, %v1707_v57  ;;  %v1714_v61 = vunpack.c.l.bf16 %v1762_v53  ;;  %v1751_v0 = vunpack.c.h.bf16 %v2973_v59  ;;  %v1715_v1 = vunpack.c.h.bf16 %v1762_v53 }
  0xe1   :  { %v2566_v6 = vunpack.i.h.bf16 %v2564_v3  ;;  %v2565_v7 = vunpack.i.l.bf16 %v2564_v3  ;;  %v2561_v8 = vunpack.i.h.bf16 %v2559_v4  ;;  %v2560_v9 = vunpack.i.l.bf16 %v2559_v4  ;;  %1969 = vmatprep.mubr.msk.f32.mxu1 %vm142_vm0, %v1710_v58  ;;  %v1506_v3 = vld [vmem:[%s3028_s3] sm:$0xf] }
  0xe2   :  { %2225 = vmatprep.subr.bf16.mxu0 %v2224_v5  ;;  %2061 = vmatmul.mubr.msk.f32.gmra.mrb[2].mxu0 %vm142_vm0, %v1747_v63  ;;  %v1711_v58 = vunpack.c.h.bf16 %v2962_v28  ;;  %v1772_v63 = vld [vmem:[%s3025_s1 + $0x88] sm:$0xff]   ;;  %v1508_v59 = vunpack.c.l.bf16 %v1506_v3 }
  0xe3   :  { %2227 = vmatpush3.bf16.msra.mxu0 %v2224_v5  ;;  %v540_v10 = vsel %vm537_vm7, %v2560_v9, %v2561_v8  ;;  %v541_v11 = vsel %vm537_vm7, %v2565_v7, %v2566_v6  ;;  %2079 = vmatprep.mubr.msk.f32.mxu0 %vm142_vm0, %v1750_v2  ;;  %v1754_v28 = vunpack.c.l.bf16 %v1772_v63  ;;  %v1755_v2 = vunpack.c.h.bf16 %v1772_v63 }
  0xe4   :  { %v2574_v12 = vpop.permute.xlu1 %2573  ;;  %v2569_v13 = vpop.permute.xlu0 %2568  ;;  %v2148_v14 = vpack.c.bf16 %v541_v11, %v540_v10 }
  0xe5   :  { %v2576_v15 = vunpack.i.h.bf16 %v2574_v12  ;;  %v2575_v16 = vunpack.i.l.bf16 %v2574_v12  ;;  %v2571_v17 = vunpack.i.h.bf16 %v2569_v13  ;;  %v2570_v18 = vunpack.i.l.bf16 %v2569_v13 }
  0xe6   :  { %2149 = vmatprep.subr.bf16.mxu1 %v2148_v14 }
  0xe7   :  { %2151 = vmatpush3.bf16.msra.mxu1 %v2148_v14  ;;  %v1335_v19 = vsel %vm1332_vm8, %v2570_v18, %v2571_v17  ;;  %v1336_v20 = vsel %vm1332_vm8, %v2575_v16, %v2576_v15 }
  0xe8   :  { %v2584_v21 = vpop.permute.xlu1 %2583  ;;  %v2579_v22 = vpop.permute.xlu0 %2578  ;;  %v2228_v23 = vpack.c.bf16 %v1336_v20, %v1335_v19 }
  0xe9   :  { %v2586_v24 = vunpack.i.h.bf16 %v2584_v21  ;;  %v2585_v25 = vunpack.i.l.bf16 %v2584_v21  ;;  %v2581_v26 = vunpack.i.h.bf16 %v2579_v22  ;;  %v2580_v27 = vunpack.i.l.bf16 %v2579_v22 }
  0xea   :  { %2229 = vmatprep.subr.bf16.mxu0 %v2228_v23 }
  0xeb   :  { %2231 = vmatpush3.bf16.msra.mxu0 %v2228_v23  ;;  %v542_v29 = vsel %vm537_vm7, %v2580_v27, %v2581_v26  ;;  %v543_v30 = vsel %vm537_vm7, %v2585_v25, %v2586_v24 }
  0xec   :  { %v2594_v31 = vpop.permute.xlu1 %2593  ;;  %v2589_v33 = vpop.permute.xlu0 %2588  ;;  %v2152_v35 = vpack.c.bf16 %v543_v30, %v542_v29 }
  0xed   :  { %v2596_v36 = vunpack.i.h.bf16 %v2594_v31  ;;  %v2595_v37 = vunpack.i.l.bf16 %v2594_v31  ;;  %v2591_v38 = vunpack.i.h.bf16 %v2589_v33  ;;  %v2590_v39 = vunpack.i.l.bf16 %v2589_v33 }
  0xee   :  { %2153 = vmatprep.subr.bf16.mxu1 %v2152_v35 }
  0xef   :  { %2155 = vmatpush3.bf16.msra.mxu1 %v2152_v35  ;;  %v1337_v41 = vsel %vm1332_vm8, %v2590_v39, %v2591_v38  ;;  %v1338_v42 = vsel %vm1332_vm8, %v2595_v37, %v2596_v36 }
  0xf0   :  { %v2604_v34 = vpop.permute.xlu1 %2603  ;;  %v2599_v43 = vpop.permute.xlu0 %2598  ;;  %v2232_v32 = vpack.c.bf16 %v1338_v42, %v1337_v41 }
  0xf1   :  { %v2606_v45 = vunpack.i.h.bf16 %v2604_v34  ;;  %v2605_v46 = vunpack.i.l.bf16 %v2604_v34  ;;  %v2601_v47 = vunpack.i.h.bf16 %v2599_v43  ;;  %v2600_v48 = vunpack.i.l.bf16 %v2599_v43 }
  0xf2   :  { %2233 = vmatprep.subr.bf16.mxu0 %v2232_v32 }
  0xf3   :  { %2235 = vmatpush3.bf16.msra.mxu0 %v2232_v32  ;;  %v544_v49 = vsel %vm537_vm7, %v2600_v48, %v2601_v47  ;;  %v545_v50 = vsel %vm537_vm7, %v2605_v46, %v2606_v45  ;;  %v1507_v48 = vld [vmem:[%s3028_s3 + $0x4] sm:$0x3] }
  0xf4   :  { %v2614_v51 = vpop.permute.xlu1 %2613  ;;  %v2609_v44 = vpop.permute.xlu0 %2608  ;;  %v2156_v52 = vpack.c.bf16 %v545_v50, %v544_v49  ;;  %v1509_v50 = vunpack.c.l.bf16 %v1507_v48 }
  0xf5   :  { %v2616_v54 = vunpack.i.h.bf16 %v2614_v51  ;;  %v2615_v55 = vunpack.i.l.bf16 %v2614_v51  ;;  %v2611_v56 = vunpack.i.h.bf16 %v2609_v44  ;;  %v2610_v57 = vunpack.i.l.bf16 %v2609_v44 }
  0xf6   :  { %2157 = vmatprep.subr.bf16.mxu1 %v2156_v52 }
  0xf7   :  { %2159 = vmatpush3.bf16.msra.mxu1 %v2156_v52  ;;  %v1339_v40 = vsel %vm1332_vm8, %v2610_v57, %v2611_v56  ;;  %v1340_v60 = vsel %vm1332_vm8, %v2615_v55, %v2616_v54 }
  0xf8   :  { %v2236_v62 = vpack.c.bf16 %v1340_v60, %v1339_v40 }
  0xfa   :  { %1970 = vmatmul.mubr.msk.f32.vlgmr.msra.gmra.mrb[0].mxu1 %vm142_vm0, %v1711_v58  ;;  %2237 = vmatprep.subr.bf16.mxu0 %v2236_v62 }
  0xfb   :  { %2239 = vmatpush3.bf16.msra.mxu0 %v2236_v62  ;;  %1972 = vmatprep.mubr.msk.f32.mxu1 %vm142_vm0, %v1714_v61 }
  0xfe   :  { %1973 = vmatmul.mubr.msk.f32.gmra.mrb[2].mxu1 %vm142_vm0, %v1715_v1  ;;  %2080 = vmatmul.mubr.msk.f32.vlgmr.msra.gmra.mrb[0].mxu0 %vm142_vm0, %v1751_v0 }
  0xff   :  { %2082 = vmatprep.mubr.msk.f32.mxu0 %vm142_vm0, %v1754_v28  ;;  %2093 = vmatprep.mubr.msk.f32.mxu1 %vm1522_vm9, %v1508_v59 }
 0x102   :  { %2083 = vmatmul.mubr.msk.f32.gmra.mrb[2].mxu0 %vm142_vm0, %v1755_v2 }
 0x105   :  { %v1462_v6 = vpop.permute.xlu1 %1461  ;;  %v1457_v7 = vpop.permute.xlu0 %1456 }
 0x109   :  { %v1472_v20 = vpop.permute.xlu0 %1471  ;;  %v1467_v23 = vpop.permute.xlu1 %1466 }
 0x10d   :  { %v1515_v52 = vpop.permute.xlu1 %1514 }
 0x10e   :  { %v1520_v51 = vpop.permute.xlu0 %1519 }
 0x1cd   :  { %v1971_v4 = vpop.f32.mrb[0].mxu1 }
 0x1ce   :  { %v632_v5 = vpop.f32.mrb[1].mxu1 }
 0x1d1   :  { %v1974_v8 = vpop.f32.mrb[2].mxu1  ;;  %v2081_v9 = vpop.f32.mrb[0].mxu0 }
 0x1d2   :  { %v2248_v10 = vadd.f32 %v2081_v9, %v1971_v4  ;;  %v642_v11 = vpop.f32.mrb[3].mxu1  ;;  %v1427_v12 = vpop.f32.mrb[1].mxu0 }
 0x1d3   :  { %v2249_v13 = vadd.f32 %v1427_v12, %v632_v5 }
 0x1d4   :  { %v1475_v14 = vadd.f32 %v2248_v10, %v1462_v6 }
 0x1d5   :  { %v1474_v15 = vadd.f32 %v2249_v13, %v1457_v7  ;;  %v2084_v16 = vpop.f32.mrb[2].mxu0 }
 0x1d6   :  { %v1679_v17 = vmul.f32 -1.442695, %v1475_v14  ;;  %v2250_v18 = vadd.f32 %v2084_v16, %v1974_v8  ;;  %v1437_v19 = vpop.f32.mrb[3].mxu0 }
 0x1d7   :  { %v1678_v21 = vmul.f32 -1.442695, %v1474_v15  ;;  %v2251_v22 = vadd.f32 %v1437_v19, %v642_v11 }
 0x1d8   :  { %2623 = vpow2.f32 %v1679_v17  ;;  %v1477_v24 = vadd.f32 %v2250_v18, %v1472_v20 }
 0x1d9   :  { %2625 = vpow2.f32 %v1678_v21  ;;  %v1476_v25 = vadd.f32 %v2251_v22, %v1467_v23 }
 0x1da   :  { %v1681_v26 = vmul.f32 -1.442695, %v1477_v24 }
 0x1db   :  { %v1680_v27 = vmul.f32 -1.442695, %v1476_v25 }
 0x1dc   :  { %2627 = vpow2.f32 %v1681_v26 }
 0x1dd   :  { %2629 = vpow2.f32 %v1680_v27 }
 0x1e2   :  { %v2624_v29 = vpop.eup %2623 }
 0x1e3   :  { %v2626_v30 = vpop.eup %2625  ;;  %v1491_v31 = vadd.f32 1.0, %v2624_v29 }
 0x1e4   :  { %v1490_v33 = vadd.f32 1.0, %v2626_v30 }
 0x1e5   :  { %2631 = vrcp.f32 %v1491_v31 }
 0x1e6   :  { %v2628_v35 = vpop.eup %2627  ;;  %2633 = vrcp.f32 %v1490_v33 }
 0x1e7   :  { %v2630_v36 = vpop.eup %2629  ;;  %v1493_v37 = vadd.f32 1.0, %v2628_v35 }
 0x1e8   :  { %v1492_v38 = vadd.f32 1.0, %v2630_v36 }
 0x1e9   :  { %2635 = vrcp.f32 %v1493_v37 }
 0x1ea   :  { %2637 = vrcp.f32 %v1492_v38 }
 0x1ef   :  { %v2632_v39 = vpop.eup %2631 }
 0x1f0   :  { %v2634_v41 = vpop.eup %2633  ;;  %v1503_v42 = vmul.f32 %v2632_v39, %v1475_v14 }
 0x1f1   :  { %v1502_v34 = vmul.f32 %v2634_v41, %v1474_v15 }
 0x1f3   :  { %v2636_v43 = vpop.eup %2635  ;;  %v2240_v32 = vpack.c.bf16 %v1503_v42, %v1502_v34 }
 0x1f4   :  { %v2638_v45 = vpop.eup %2637  ;;  %v1505_v46 = vmul.f32 %v2636_v43, %v1477_v24 }
 0x1f5   :  { %v1504_v47 = vmul.f32 %v2638_v45, %v1476_v25  ;;  %2241 = vmatprep.subr.bf16.mxu1 %v2240_v32 }
 0x1f6   :  { %2243 = vmatpush3.bf16.msra.mxu1 %v2240_v32 }
 0x1f7   :  { %v2244_v49 = vpack.c.bf16 %v1505_v46, %v1504_v47 }
 0x1f9   :  { %2245 = vmatprep.subr.bf16.mxu1 %v2244_v49 }
 0x1fa   :  { %2247 = vmatpush3.bf16.msra.mxu1 %v2244_v49 }
 0x1fd   :  { %2094 = vmatmul.mubr.msk.f32.vlgmr.msra.gmra.mrb[4].mxu1 %vm1522_vm9, %v1509_v50 }
 0x2d0   :  { %v2095_v44 = vpop.f32.mrb[4].mxu1 }
 0x2d1   :  { %v1601_v53 = vadd.f32 %v2095_v44, %v1520_v51  ;;  %v1595_v54 = vpop.f32.mrb[5].mxu1 }
 0x2d2   :  { %v1596_v55 = vadd.f32 %v1595_v54, %v1515_v52 }
 0x2d3   :  { %1605 = vst [vmem:[%s3029_s5 + $0x8] sm:$0xf] %v1601_v53 }
 0x2d4   :  { %1604 = vst [vmem:[%s3029_s5] sm:$0xff] %v1596_v55 }

// kernel: refnet_forward.13
= control target key start
LH: loop header
LB: loop body
LE: loop exit
PB: predicated region body
PF: predicated region fallthrough
CT: control target
= control target key end

     0   :  { %s2236_s30 = smov 117   ;;  %v2237_v24 = vmov 0.0   ;;  %s2239_s6 = smov 116   ;;  %v2245_v29 = vmov 0   ;;  %vm676_vm0 = vcmask 957440   ;;  %vm105_vm1 = vcmask 1039360   ;;  %s2578_s0 = inlined_call_operand.vmem [shape: bf16[32,384], index: 0, kind: input, shape index: {}]   ;;  %s2579_s2 = inlined_call_operand.vmem [shape: f32[32,1], index: 2, kind: input, shape index: {}]   ;;  %s2580_s4 = inlined_call_operand.vmem [shape: f32[12,1], index: 4, kind: input, shape index: {}]   ;;  %s2581_s1 = inlined_call_operand.vmem [shape: bf16[9,32,32], index: 1, kind: input, shape index: {}]   ;;  %s2582_s3 = inlined_call_operand.vmem [shape: bf16[12,32], index: 3, kind: input, shape index: {}]   ;;  %s2583_s5 = inlined_call_operand.vmem [shape: f32[12,256], index: 5, kind: output, shape index: {}]  }
   0x1   :  { %v2279_v0 = vld [vmem:[%s2578_s0] sm:$0xff]  ;;  %v41_v1 = vld [vmem:[%s2578_s0 + $0x8] ss:$12 sps:$4 sm:$0xff]   ;;  %v2287_v2 = vld [vmem:[%s2578_s0 + $0xc] sm:$0xff]  ;;  %769 = vmatprep.mubr.f32.mxu0 %v2237_v24  ;;  %199 = vmatprep.mubr.f32.mxu1 %v2237_v24  ;;  %s2240_s7 = smov 108   ;;  %s2241_s8 = smov 126  }
   0x2   :  { %v49_v3 = vunpack.c.h.bf16 %v2279_v0  ;;  %v50_v4 = vunpack.c.l.bf16 %v41_v1  ;;  %v48_v5 = vunpack.c.l.bf16 %v2279_v0  ;;  %v51_v6 = vunpack.c.l.bf16 %v2287_v2  ;;  %v2295_v7 = vld [vmem:[%s2578_s0 + $0x18] sm:$0xff]  ;;  %v45_v8 = vld [vmem:[%s2578_s0 + $0x20] ss:$12 sps:$4 sm:$0xff]   ;;  %v2303_v9 = vld [vmem:[%s2578_s0 + $0x24] sm:$0xff]  ;;  %s2238_s0 = smov 127   ;;  %s2242_s9 = smov 107   ;;  %2199 = vset.pattern.permute.xlu1 %v2245_v29  ;;  %2198 = vset.pattern.permute.xlu0 %v2245_v29 }
   0x3   :  { %v52_v10 = vunpack.c.h.bf16 %v2287_v2  ;;  %v53_v11 = vunpack.c.h.bf16 %v41_v1  ;;  %v55_v12 = vunpack.c.h.bf16 %v2295_v7  ;;  %v56_v13 = vunpack.c.l.bf16 %v45_v8  ;;  %s2243_s10 = smov 118   ;;  %s2244_s11 = smov 106   ;;  %v1438_v30 = vld [vmem:[%s2579_s2] sm:$0xff]  ;;  %v1439_v31 = vld [vmem:[%s2579_s2 + $0x8] sm:$0xff]  ;;  %v1441_v32 = vld [vmem:[%s2579_s2 + $0x18] sm:$0xff] }
   0x4   :  { %v1958_v14 = vpack.i.bf16 %v50_v4, %v49_v3  ;;  %v2307_v15 = vpack.i.bf16 %v51_v6, %v48_v5  ;;  %v58_v16 = vunpack.c.h.bf16 %v2303_v9  ;;  %v59_v17 = vunpack.c.h.bf16 %v45_v8  ;;  %v1440_v33 = vld [vmem:[%s2579_s2 + $0x10] sm:$0xff]  ;;  %v1531_v34 = vld [vmem:[%s2580_s4 + $0x8] sm:$0xf]  ;;  %v1530_v35 = vld [vmem:[%s2580_s4] sm:$0xff] }
   0x5   :  { %v1963_v18 = vpack.i.bf16 %v53_v11, %v52_v10  ;;  %v1973_v19 = vpack.i.bf16 %v56_v13, %v55_v12  ;;  %v54_v20 = vunpack.c.l.bf16 %v2295_v7  ;;  %v57_v21 = vunpack.c.l.bf16 %v2303_v9  ;;  %v1790_v1 = vld [vmem:[%s2581_s1 + $0x40] sm:$0xff]  }
   0x6   :  { %1959 = vrot.lane.b32.xlu0 %v1958_v14, %s2236_s30  ;;  %1969 = vrot.lane.b32.xlu1 %v2307_v15, %s2236_s30  ;;  %v1978_v22 = vpack.i.bf16 %v59_v17, %v58_v16  ;;  %v1944_v25 = vcombine.high %v2279_v0, %v2287_v2  ;;  %v1945_v26 = vcombine.low %v2279_v0, %v2287_v2  ;;  %v1745_v13 = vunpack.c.l.bf16 %v1790_v1 }
   0x7   :  { %v1983_v23 = vpack.i.bf16 %v57_v21, %v54_v20  ;;  %v1946_v27 = vcombine.high %v2295_v7, %v2303_v9  ;;  %v1947_v28 = vcombine.low %v2295_v7, %v2303_v9  ;;  %vm122_vm2 = vcmask 261120   ;;  %v1712_v7 = vld [vmem:[%s2581_s1] sm:$0xff]  }
   0x8   :  { %vm835_vm3 = vcmask 949248   ;;  %vm994_vm4 = vcmask 883712   ;;  %vm358_vm5 = vcmask 1031168   ;;  %v1794_v9 = vld [vmem:[%s2581_s1 + $0x60] sm:$0xff]   ;;  %vm1153_vm6 = vcmask 875520  }
   0x9   :  { %vm517_vm7 = vcmask 965632   ;;  %vm1312_vm8 = vcmask 867328  }
   0xa   :  { %1964 = vrot.lane.b32.xlu0 %v1963_v18, %s2236_s30  ;;  %1974 = vrot.lane.b32.xlu1 %v1973_v19, %s2236_s30 }
   0xe   :  { %1979 = vrot.lane.b32.xlu0 %v1978_v22, %s2236_s30  ;;  %1984 = vrot.lane.b32.xlu1 %v1983_v23, %s2236_s30 }
  0x12   :  { %1989 = vrot.lane.b32.xlu0 %v1958_v14, %s2238_s0  ;;  %1994 = vrot.lane.b32.xlu1 %v1963_v18, %s2238_s0 }
  0x16   :  { %1999 = vrot.lane.b32.xlu0 %v1958_v14, %s2239_s6  ;;  %2004 = vrot.lane.b32.xlu1 %v1963_v18, %s2239_s6 }
  0x1a   :  { %2009 = vrot.lane.b32.xlu0 %v2307_v15, %s2238_s0  ;;  %2014 = vrot.lane.b32.xlu1 %v2307_v15, %s2239_s6 }
  0x1e   :  { %2019 = vrot.lane.b32.xlu0 %v1973_v19, %s2238_s0  ;;  %2024 = vrot.lane.b32.xlu1 %v1978_v22, %s2238_s0 }
  0x22   :  { %2029 = vrot.lane.b32.xlu0 %v1973_v19, %s2239_s6  ;;  %2034 = vrot.lane.b32.xlu1 %v1978_v22, %s2239_s6 }
  0x26   :  { %2039 = vrot.lane.b32.xlu0 %v1983_v23, %s2238_s0  ;;  %2044 = vrot.lane.b32.xlu1 %v1983_v23, %s2239_s6 }
  0x2a   :  { %2049 = vrot.lane.b32.xlu0 %v1958_v14, %s2240_s7  ;;  %2054 = vrot.lane.b32.xlu1 %v1963_v18, %s2240_s7 }
  0x2e   :  { %2059 = vrot.lane.b32.xlu0 %v2307_v15, %s2240_s7  ;;  %2064 = vrot.lane.b32.xlu1 %v1973_v19, %s2240_s7 }
  0x32   :  { %2069 = vrot.lane.b32.xlu0 %v1978_v22, %s2240_s7  ;;  %2074 = vrot.lane.b32.xlu1 %v1983_v23, %s2240_s7 }
  0x36   :  { %2079 = vrot.lane.b32.xlu0 %v1958_v14, %s2241_s8  ;;  %2084 = vrot.lane.b32.xlu1 %v1963_v18, %s2241_s8 }
  0x3a   :  { %2089 = vrot.lane.b32.xlu0 %v1958_v14, %s2242_s9  ;;  %2094 = vrot.lane.b32.xlu1 %v1963_v18, %s2242_s9 }
  0x3e   :  { %2099 = vrot.lane.b32.xlu0 %v2307_v15, %s2241_s8  ;;  %2104 = vrot.lane.b32.xlu1 %v2307_v15, %s2242_s9 }
  0x42   :  { %2109 = vrot.lane.b32.xlu0 %v1973_v19, %s2241_s8  ;;  %2114 = vrot.lane.b32.xlu1 %v1978_v22, %s2241_s8 }
  0x46   :  { %2119 = vrot.lane.b32.xlu0 %v1973_v19, %s2242_s9  ;;  %2124 = vrot.lane.b32.xlu1 %v1978_v22, %s2242_s9 }
  0x4a   :  { %2129 = vrot.lane.b32.xlu0 %v1983_v23, %s2241_s8  ;;  %2134 = vrot.lane.b32.xlu1 %v1983_v23, %s2242_s9 }
  0x4e   :  { %2139 = vrot.lane.b32.xlu0 %v1958_v14, %s2243_s10  ;;  %2144 = vrot.lane.b32.xlu1 %v1963_v18, %s2243_s10 }
  0x52   :  { %2149 = vrot.lane.b32.xlu0 %v1958_v14, %s2244_s11  ;;  %2154 = vrot.lane.b32.xlu1 %v1963_v18, %s2244_s11 }
  0x56   :  { %2159 = vrot.lane.b32.xlu0 %v2307_v15, %s2243_s10  ;;  %2164 = vrot.lane.b32.xlu1 %v2307_v15, %s2244_s11 }
  0x5a   :  { %2169 = vrot.lane.b32.xlu0 %v1973_v19, %s2243_s10  ;;  %2174 = vrot.lane.b32.xlu1 %v1978_v22, %s2243_s10 }
  0x5e   :  { %2179 = vrot.lane.b32.xlu0 %v1973_v19, %s2244_s11  ;;  %2184 = vrot.lane.b32.xlu1 %v1978_v22, %s2244_s11 }
  0x62   :  { %2189 = vrot.lane.b32.xlu0 %v1983_v23, %s2243_s10  ;;  %2194 = vrot.lane.b32.xlu1 %v1983_v23, %s2244_s11  ;;  %v1746_v23 = vunpack.c.h.bf16 %v1790_v1 }
  0x66   :  { %1444 = vperm.xlu0 %2198, %v1438_v30   ;;  %1449 = vperm.xlu1 %2199, %v1439_v31   ;;  %v1791_v31 = vld [vmem:[%s2581_s1 + $0x48] sm:$0xff]  }
  0x6a   :  { %1459 = vperm.xlu0 %2198, %v1441_v32   ;;  %1454 = vperm.xlu1 %2199, %v1440_v33  }
  0x6e   :  { %1539 = vperm.xlu0 %2198, %v1531_v34   ;;  %1534 = vperm.xlu1 %2199, %v1530_v35  }
  0x78   :  { %v1960_v36 = vpop.permute.xlu0 %1959  ;;  %v1970_v37 = vpop.permute.xlu1 %1969 }
  0x79   :  { %v1962_v38 = vunpack.i.h.bf16 %v1960_v36  ;;  %v1961_v39 = vunpack.i.l.bf16 %v1960_v36  ;;  %v1971_v40 = vunpack.i.l.bf16 %v1970_v37  ;;  %v1972_v43 = vunpack.i.h.bf16 %v1970_v37 }
  0x7b   :  { %v678_v46 = vsel %vm676_vm0, %v1961_v39, %v1962_v38  ;;  %v677_v47 = vsel %vm676_vm0, %v1971_v40, %v1961_v39  ;;  %v1749_v39 = vunpack.c.l.bf16 %v1791_v31 }
  0x7c   :  { %v1965_v41 = vpop.permute.xlu0 %1964  ;;  %v1975_v42 = vpop.permute.xlu1 %1974 }
  0x7d   :  { %v1967_v44 = vunpack.i.h.bf16 %v1965_v41  ;;  %v1966_v45 = vunpack.i.l.bf16 %v1965_v41  ;;  %v1977_v48 = vunpack.i.h.bf16 %v1975_v42  ;;  %v1976_v49 = vunpack.i.l.bf16 %v1975_v42 }
  0x7f   :  { %v680_v50 = vsel %vm676_vm0, %v1966_v45, %v1967_v44  ;;  %v679_v51 = vsel %vm676_vm0, %v1972_v43, %v1966_v45  ;;  %v682_v60 = vsel %vm676_vm0, %v1976_v49, %v1977_v48 }
  0x80   :  { %v1980_v52 = vpop.permute.xlu0 %1979  ;;  %v1985_v53 = vpop.permute.xlu1 %1984  ;;  %v1832_v54 = vpack.c.bf16 %v680_v50, %v678_v46  ;;  %v1834_v55 = vpack.c.bf16 %v679_v51, %v677_v47 }
  0x81   :  { %v1982_v56 = vunpack.i.h.bf16 %v1980_v52  ;;  %v1981_v57 = vunpack.i.l.bf16 %v1980_v52  ;;  %v1987_v58 = vunpack.i.h.bf16 %v1985_v53  ;;  %v1986_v59 = vunpack.i.l.bf16 %v1985_v53 }
  0x82   :  { %1833 = vmatprep.subr.bf16.mxu0 %v1832_v54  ;;  %v1750_v54 = vunpack.c.h.bf16 %v1791_v31 }
  0x83   :  { %1835 = vmatpush1.bf16.msra.mxu0 %v1834_v55  ;;  %v684_v61 = vsel %vm676_vm0, %v1981_v57, %v1982_v56  ;;  %v681_v62 = vsel %vm676_vm0, %v1986_v59, %v1976_v49  ;;  %v683_v63 = vsel %vm676_vm0, %v1987_v58, %v1981_v57 }
  0x84   :  { %v1990_v3 = vpop.permute.xlu0 %1989  ;;  %v1995_v4 = vpop.permute.xlu1 %1994  ;;  %v1836_v5 = vpack.c.bf16 %v684_v61, %v682_v60  ;;  %v1838_v6 = vpack.c.bf16 %v683_v63, %v681_v62 }
  0x85   :  { %v1992_v8 = vunpack.i.h.bf16 %v1990_v3  ;;  %v1991_v10 = vunpack.i.l.bf16 %v1990_v3  ;;  %v1997_v11 = vunpack.i.h.bf16 %v1995_v4  ;;  %v1996_v12 = vunpack.i.l.bf16 %v1995_v4 }
  0x86   :  { %1837 = vmatprep.subr.bf16.mxu0 %v1836_v5 }
  0x87   :  { %1839 = vmatpush1.bf16.msra.mxu0 %v1838_v6  ;;  %v107_v14 = vsel %vm105_vm1, %v1991_v10, %v1992_v8  ;;  %v109_v15 = vsel %vm105_vm1, %v1996_v12, %v1997_v11  ;;  %v1784_v11 = vld [vmem:[%s2581_s1 + $0x10] sm:$0xff]  }
  0x88   :  { %v2000_v16 = vpop.permute.xlu0 %1999  ;;  %v2005_v17 = vpop.permute.xlu1 %2004  ;;  %v1800_v18 = vpack.c.bf16 %v109_v15, %v107_v14 }
  0x89   :  { %v2002_v19 = vunpack.i.h.bf16 %v2000_v16  ;;  %v2001_v20 = vunpack.i.l.bf16 %v2000_v16  ;;  %v2007_v21 = vunpack.i.h.bf16 %v2005_v17  ;;  %v2006_v22 = vunpack.i.l.bf16 %v2005_v17 }
  0x8a   :  { %1801 = vmatprep.subr.bf16.mxu1 %v1800_v18  ;;  %1665 = vmatmul.mubr.msk.f32.vlgmr.msra.gmra.mrb[0].mxu0 %vm122_vm2, %v1745_v13 }
  0x8b   :  { %v837_v29 = vsel %vm835_vm3, %v2001_v20, %v2002_v19  ;;  %v839_v30 = vsel %vm835_vm3, %v2006_v22, %v2007_v21  ;;  %775 = vmatprep.mubr.f32.mxu0 %v2237_v24  ;;  %v1721_v21 = vunpack.c.l.bf16 %v1784_v11 }
  0x8c   :  { %v2010_v32 = vpop.permute.xlu0 %2009  ;;  %v2015_v33 = vpop.permute.xlu1 %2014  ;;  %v1840_v34 = vpack.c.bf16 %v839_v30, %v837_v29 }
  0x8d   :  { %v2012_v35 = vunpack.i.h.bf16 %v2010_v32  ;;  %v2011_v36 = vunpack.i.l.bf16 %v2010_v32  ;;  %v2017_v37 = vunpack.i.h.bf16 %v2015_v33  ;;  %v2016_v38 = vunpack.i.l.bf16 %v2015_v33 }
  0x8e   :  { %1841 = vmatprep.subr.bf16.mxu0 %v1840_v34  ;;  %1666 = vmatmul.mubr.msk.f32.gmra.mrb[2].mxu0 %vm122_vm2, %v1746_v23 }
  0x8f   :  { %v836_v40 = vsel %vm835_vm3, %v2016_v38, %v2001_v20  ;;  %v838_v41 = vsel %vm835_vm3, %v2017_v37, %v2006_v22  ;;  %v106_v42 = vsel %vm105_vm1, %v2011_v36, %v1991_v10  ;;  %v108_v43 = vsel %vm105_vm1, %v2012_v35, %v1996_v12  ;;  %781 = vmatprep.mubr.f32.mxu0 %v2237_v24  ;;  %v1792_v12 = vld [vmem:[%s2581_s1 + $0x50] sm:$0xff]  }
  0x90   :  { %v1842_v44 = vpack.c.bf16 %v838_v41, %v836_v40  ;;  %v2020_v45 = vpop.permute.xlu0 %2019  ;;  %v2025_v46 = vpop.permute.xlu1 %2024  ;;  %v1802_v47 = vpack.c.bf16 %v108_v43, %v106_v42  ;;  %v1753_v22 = vunpack.c.l.bf16 %v1792_v12  ;;  %v1754_v40 = vunpack.c.h.bf16 %v1792_v12  ;;  %v1785_v41 = vld [vmem:[%s2581_s1 + $0x18] sm:$0xff]  }
  0x91   :  { %v2022_v48 = vunpack.i.h.bf16 %v2020_v45  ;;  %v2021_v49 = vunpack.i.l.bf16 %v2020_v45  ;;  %v2027_v50 = vunpack.i.h.bf16 %v2025_v46  ;;  %v2026_v51 = vunpack.i.l.bf16 %v2025_v46  ;;  %v1793_v42 = vld [vmem:[%s2581_s1 + $0x58] sm:$0xff]  }
  0x92   :  { %1803 = vmatpush1.bf16.msra.mxu1 %v1802_v47  ;;  %1843 = vmatpush1.bf16.msra.mxu0 %v1842_v44 }
  0x93   :  { %v111_v52 = vsel %vm105_vm1, %v2021_v49, %v2022_v48  ;;  %v113_v53 = vsel %vm105_vm1, %v2026_v51, %v2027_v50  ;;  %1667 = vmatmul.mubr.msk.f32.gmra.mrb[4].mxu0 %vm122_vm2, %v1749_v39  ;;  %v1722_v39 = vunpack.c.h.bf16 %v1784_v11  ;;  %v1757_v50 = vunpack.c.l.bf16 %v1793_v42 }
  0x94   :  { %v2030_v55 = vpop.permute.xlu0 %2029  ;;  %v2035_v56 = vpop.permute.xlu1 %2034  ;;  %v1804_v57 = vpack.c.bf16 %v113_v53, %v111_v52  ;;  %787 = vmatprep.mubr.f32.mxu0 %v2237_v24 }
  0x95   :  { %v2032_v58 = vunpack.i.h.bf16 %v2030_v55  ;;  %v2031_v59 = vunpack.i.l.bf16 %v2030_v55  ;;  %v2037_v60 = vunpack.i.h.bf16 %v2035_v56  ;;  %v2036_v61 = vunpack.i.l.bf16 %v2035_v56 }
  0x96   :  { %1805 = vmatprep.subr.bf16.mxu1 %v1804_v57 }
  0x97   :  { %v841_v62 = vsel %vm835_vm3, %v2031_v59, %v2032_v58  ;;  %v843_v63 = vsel %vm835_vm3, %v2036_v61, %v2037_v60  ;;  %1668 = vmatmul.mubr.msk.f32.gmra.mrb[6].mxu0 %vm122_vm2, %v1750_v54  ;;  %v1758_v60 = vunpack.c.h.bf16 %v1793_v42 }
  0x98   :  { %v2040_v1 = vpop.permute.xlu0 %2039  ;;  %v2045_v3 = vpop.permute.xlu1 %2044  ;;  %v1844_v4 = vpack.c.bf16 %v843_v63, %v841_v62  ;;  %928 = vmatprep.mubr.f32.mxu0 %v2237_v24 }
  0x99   :  { %v2042_v5 = vunpack.i.h.bf16 %v2040_v1  ;;  %v2041_v6 = vunpack.i.l.bf16 %v2040_v1  ;;  %v2047_v8 = vunpack.i.h.bf16 %v2045_v3  ;;  %v2046_v10 = vunpack.i.l.bf16 %v2045_v3 }
  0x9a   :  { %1845 = vmatprep.subr.bf16.mxu0 %v1844_v4 }
  0x9b   :  { %v840_v13 = vsel %vm835_vm3, %v2046_v10, %v2031_v59  ;;  %v842_v14 = vsel %vm835_vm3, %v2047_v8, %v2036_v61  ;;  %v110_v15 = vsel %vm105_vm1, %v2041_v6, %v2021_v49  ;;  %v112_v16 = vsel %vm105_vm1, %v2042_v5, %v2026_v51 }
  0x9c   :  { %v1846_v17 = vpack.c.bf16 %v842_v14, %v840_v13  ;;  %v2050_v18 = vpop.permute.xlu0 %2049  ;;  %v2055_v19 = vpop.permute.xlu1 %2054  ;;  %v1806_v20 = vpack.c.bf16 %v112_v16, %v110_v15  ;;  %v1725_v49 = vunpack.c.l.bf16 %v1785_v41  ;;  %v1726_v59 = vunpack.c.h.bf16 %v1785_v41 }
  0x9d   :  { %v2052_v23 = vunpack.i.h.bf16 %v2050_v18  ;;  %v2051_v29 = vunpack.i.l.bf16 %v2050_v18  ;;  %v2057_v30 = vunpack.i.h.bf16 %v2055_v19  ;;  %v2056_v31 = vunpack.i.l.bf16 %v2055_v19 }
  0x9e   :  { %1807 = vmatpush1.bf16.msra.mxu1 %v1806_v20  ;;  %1847 = vmatpush1.bf16.msra.mxu0 %v1846_v17  ;;  %v1713_v8 = vunpack.c.l.bf16 %v1712_v7  ;;  %v1761_v10 = vunpack.c.l.bf16 %v1794_v9  ;;  %v1714_v20 = vunpack.c.h.bf16 %v1712_v7 }
  0x9f   :  { %v996_v32 = vsel %vm994_vm4, %v2051_v29, %v2052_v23  ;;  %v998_v33 = vsel %vm994_vm4, %v2056_v31, %v2057_v30  ;;  %1809 = vmatprep.subr.bf16.mxu1 %v1944_v25 }
  0xa0   :  { %v2060_v34 = vpop.permute.xlu0 %2059  ;;  %v2065_v35 = vpop.permute.xlu1 %2064  ;;  %v1848_v36 = vpack.c.bf16 %v998_v33, %v996_v32  ;;  %v1795_v32 = vld [vmem:[%s2581_s1 + $0x68] sm:$0xff]  }
  0xa1   :  { %v2062_v37 = vunpack.i.h.bf16 %v2060_v34  ;;  %v2061_v38 = vunpack.i.l.bf16 %v2060_v34  ;;  %1637 = vmatmul.mubr.msk.f32.vlgmr.msra.gmra.mrb[0].mxu1 %vm122_vm2, %v1721_v21  ;;  %1673 = vmatmul.mubr.msk.f32.vlgmr.msra.gmra.mrb[0].mxu0 %vm122_vm2, %v1753_v22  ;;  %v2067_v25 = vunpack.i.h.bf16 %v2065_v35  ;;  %v2066_v43 = vunpack.i.l.bf16 %v2065_v35 }
  0xa2   :  { %1849 = vmatprep.subr.bf16.mxu0 %v1848_v36  ;;  %205 = vmatprep.mubr.f32.mxu1 %v2237_v24  ;;  %v1762_v21 = vunpack.c.h.bf16 %v1794_v9  ;;  %v1765_v42 = vunpack.c.l.bf16 %v1795_v32 }
  0xa3   :  { %v995_v44 = vsel %vm994_vm4, %v2061_v38, %v2051_v29  ;;  %v997_v45 = vsel %vm994_vm4, %v2062_v37, %v2056_v31  ;;  %1811 = vmatpush1.bf16.msra.mxu1 %v1945_v26  ;;  %934 = vmatprep.mubr.f32.mxu0 %v2237_v24  ;;  %v1000_v0 = vsel %vm994_vm4, %v2066_v43, %v2067_v25  ;;  %v1783_v31 = vld [vmem:[%s2581_s1 + $0x8] sm:$0xff]  }
  0xa4   :  { %v1850_v46 = vpack.c.bf16 %v997_v45, %v995_v44  ;;  %v2070_v47 = vpop.permute.xlu0 %2069  ;;  %v2075_v48 = vpop.permute.xlu1 %2074  ;;  %1813 = vmatprep.subr.bf16.mxu1 %v1946_v27  ;;  %v1717_v41 = vunpack.c.l.bf16 %v1783_v31 }
  0xa5   :  { %v2072_v51 = vunpack.i.h.bf16 %v2070_v47  ;;  %v2071_v52 = vunpack.i.l.bf16 %v2070_v47  ;;  %v2077_v53 = vunpack.i.h.bf16 %v2075_v48  ;;  %v2076_v54 = vunpack.i.l.bf16 %v2075_v48  ;;  %1638 = vmatmul.mubr.msk.f32.gmra.mrb[2].mxu1 %vm122_vm2, %v1722_v39  ;;  %1674 = vmatmul.mubr.msk.f32.gmra.mrb[2].mxu0 %vm122_vm2, %v1754_v40 }
  0xa6   :  { %1851 = vmatpush1.bf16.msra.mxu0 %v1850_v46  ;;  %211 = vmatprep.mubr.f32.mxu1 %v2237_v24 }
  0xa7   :  { %v1001_v2 = vsel %vm994_vm4, %v2077_v53, %v2071_v52  ;;  %v999_v26 = vsel %vm994_vm4, %v2076_v54, %v2066_v43  ;;  %v1002_v27 = vsel %vm994_vm4, %v2071_v52, %v2072_v51  ;;  %1815 = vmatpush1.bf16.msra.mxu1 %v1947_v28  ;;  %940 = vmatprep.mubr.f32.mxu0 %v2237_v24  ;;  %v1718_v51 = vunpack.c.h.bf16 %v1783_v31  ;;  %v1787_v31 = vld [vmem:[%s2581_s1 + $0x28] sm:$0xff]  }
  0xa8   :  { %v1854_v55 = vpack.c.bf16 %v1001_v2, %v999_v26  ;;  %v2080_v56 = vpop.permute.xlu0 %2079  ;;  %v2085_v57 = vpop.permute.xlu1 %2084  ;;  %v1852_v58 = vpack.c.bf16 %v1002_v27, %v1000_v0  ;;  %v1766_v52 = vunpack.c.h.bf16 %v1795_v32  ;;  %v1797_v32 = vld [vmem:[%s2581_s1 + $0x78] sm:$0xff]  }
  0xa9   :  { %v2082_v61 = vunpack.i.h.bf16 %v2080_v56  ;;  %v2081_v62 = vunpack.i.l.bf16 %v2080_v56  ;;  %v2087_v63 = vunpack.i.h.bf16 %v2085_v57  ;;  %v2086_v1 = vunpack.i.l.bf16 %v2085_v57  ;;  %1639 = vmatmul.mubr.msk.f32.gmra.mrb[4].mxu1 %vm122_vm2, %v1725_v49  ;;  %1675 = vmatmul.mubr.msk.f32.gmra.mrb[4].mxu0 %vm122_vm2, %v1757_v50 }
  0xaa   :  { %1853 = vmatprep.subr.bf16.mxu0 %v1852_v58  ;;  %217 = vmatprep.mubr.f32.mxu1 %v2237_v24 }
  0xab   :  { %1855 = vmatpush1.bf16.msra.mxu0 %v1854_v55  ;;  %v360_v28 = vsel %vm358_vm5, %v2081_v62, %v2082_v61  ;;  %v362_v3 = vsel %vm358_vm5, %v2086_v1, %v2087_v63  ;;  %946 = vmatprep.mubr.f32.mxu0 %v2237_v24  ;;  %v1796_v63 = vld [vmem:[%s2581_s1 + $0x70] sm:$0xff]  }
  0xac   :  { %v2090_v4 = vpop.permute.xlu0 %2089  ;;  %v2095_v5 = vpop.permute.xlu1 %2094  ;;  %v1816_v6 = vpack.c.bf16 %v362_v3, %v360_v28 }
  0xad   :  { %v2092_v11 = vunpack.i.h.bf16 %v2090_v4  ;;  %v2091_v12 = vunpack.i.l.bf16 %v2090_v4  ;;  %v2097_v13 = vunpack.i.h.bf16 %v2095_v5  ;;  %v2096_v14 = vunpack.i.l.bf16 %v2095_v5  ;;  %1640 = vmatmul.mubr.msk.f32.gmra.mrb[6].mxu1 %vm122_vm2, %v1726_v59  ;;  %1676 = vmatmul.mubr.msk.f32.gmra.mrb[6].mxu0 %vm122_vm2, %v1758_v60 }
  0xae   :  { %1817 = vmatprep.subr.bf16.mxu1 %v1816_v6  ;;  %300 = vmatprep.mubr.f32.mxu1 %v2237_v24 }
  0xaf   :  { %v1155_v15 = vsel %vm1153_vm6, %v2091_v12, %v2092_v11  ;;  %v1157_v16 = vsel %vm1153_vm6, %v2096_v14, %v2097_v13  ;;  %1087 = vmatprep.mubr.f32.mxu0 %v2237_v24 }
  0xb0   :  { %v2100_v17 = vpop.permute.xlu0 %2099  ;;  %v2105_v18 = vpop.permute.xlu1 %2104  ;;  %v1856_v19 = vpack.c.bf16 %v1157_v16, %v1155_v15 }
  0xb1   :  { %v2102_v22 = vunpack.i.h.bf16 %v2100_v17  ;;  %v2101_v23 = vunpack.i.l.bf16 %v2100_v17  ;;  %v2107_v29 = vunpack.i.h.bf16 %v2105_v18  ;;  %v2106_v30 = vunpack.i.l.bf16 %v2105_v18  ;;  %1641 = vmatmul.mubr.msk.f32.vlgmr.msra.gmra.mrb[0].mxu1 %vm122_vm2, %v1713_v8  ;;  %1681 = vmatmul.mubr.msk.f32.vlgmr.msra.gmra.mrb[0].mxu0 %vm122_vm2, %v1761_v10 }
  0xb2   :  { %1857 = vmatprep.subr.bf16.mxu0 %v1856_v19  ;;  %306 = vmatprep.mubr.f32.mxu1 %v2237_v24  ;;  %v1769_v10 = vunpack.c.l.bf16 %v1796_v63 }
  0xb3   :  { %v359_v33 = vsel %vm358_vm5, %v2101_v23, %v2081_v62  ;;  %v361_v34 = vsel %vm358_vm5, %v2102_v22, %v2086_v1  ;;  %v1154_v35 = vsel %vm1153_vm6, %v2106_v30, %v2091_v12  ;;  %v1156_v36 = vsel %vm1153_vm6, %v2107_v29, %v2096_v14  ;;  %1093 = vmatprep.mubr.f32.mxu0 %v2237_v24  ;;  %v1786_v62 = vld [vmem:[%s2581_s1 + $0x20] sm:$0xff]  }
  0xb4   :  { %v1818_v37 = vpack.c.bf16 %v361_v34, %v359_v33  ;;  %v1858_v38 = vpack.c.bf16 %v1156_v36, %v1154_v35  ;;  %v2110_v39 = vpop.permute.xlu0 %2109  ;;  %v2115_v40 = vpop.permute.xlu1 %2114  ;;  %v1729_v8 = vunpack.c.l.bf16 %v1786_v62 }
  0xb5   :  { %v2112_v25 = vunpack.i.h.bf16 %v2110_v39  ;;  %v2111_v43 = vunpack.i.l.bf16 %v2110_v39  ;;  %v2117_v44 = vunpack.i.h.bf16 %v2115_v40  ;;  %v2116_v45 = vunpack.i.l.bf16 %v2115_v40  ;;  %1642 = vmatmul.mubr.msk.f32.gmra.mrb[2].mxu1 %vm122_vm2, %v1714_v20  ;;  %1682 = vmatmul.mubr.msk.f32.gmra.mrb[2].mxu0 %vm122_vm2, %v1762_v21 }
  0xb6   :  { %1819 = vmatpush1.bf16.msra.mxu1 %v1818_v37  ;;  %1859 = vmatpush1.bf16.msra.mxu0 %v1858_v38  ;;  %v1730_v20 = vunpack.c.h.bf16 %v1786_v62  ;;  %v1770_v21 = vunpack.c.h.bf16 %v1796_v63  ;;  %v1733_v38 = vunpack.c.l.bf16 %v1787_v31  ;;  %v1773_v39 = vunpack.c.l.bf16 %v1797_v32 }
  0xb7   :  { %v364_v46 = vsel %vm358_vm5, %v2111_v43, %v2112_v25  ;;  %v366_v47 = vsel %vm358_vm5, %v2116_v45, %v2117_v44  ;;  %312 = vmatprep.mubr.f32.mxu1 %v2237_v24  ;;  %1099 = vmatprep.mubr.f32.mxu0 %v2237_v24 }
  0xb8   :  { %v2120_v48 = vpop.permute.xlu0 %2119  ;;  %v2125_v49 = vpop.permute.xlu1 %2124  ;;  %v1820_v50 = vpack.c.bf16 %v366_v47, %v364_v46 }
  0xb9   :  { %v2122_v53 = vunpack.i.h.bf16 %v2120_v48  ;;  %v2121_v54 = vunpack.i.l.bf16 %v2120_v48  ;;  %v2127_v0 = vunpack.i.h.bf16 %v2125_v49  ;;  %v2126_v2 = vunpack.i.l.bf16 %v2125_v49  ;;  %1643 = vmatmul.mubr.msk.f32.gmra.mrb[4].mxu1 %vm122_vm2, %v1717_v41  ;;  %1683 = vmatmul.mubr.msk.f32.gmra.mrb[4].mxu0 %vm122_vm2, %v1765_v42 }
  0xba   :  { %1821 = vmatprep.subr.bf16.mxu1 %v1820_v50  ;;  %318 = vmatprep.mubr.f32.mxu1 %v2237_v24 }
  0xbb   :  { %v1159_v26 = vsel %vm1153_vm6, %v2121_v54, %v2122_v53  ;;  %v1161_v27 = vsel %vm1153_vm6, %v2126_v2, %v2127_v0  ;;  %1105 = vmatprep.mubr.f32.mxu0 %v2237_v24 }
  0xbc   :  { %v2130_v55 = vpop.permute.xlu0 %2129  ;;  %v2135_v56 = vpop.permute.xlu1 %2134  ;;  %v1860_v57 = vpack.c.bf16 %v1161_v27, %v1159_v26 }
  0xbd   :  { %v2132_v58 = vunpack.i.h.bf16 %v2130_v55  ;;  %v2131_v59 = vunpack.i.l.bf16 %v2130_v55  ;;  %v2137_v60 = vunpack.i.h.bf16 %v2135_v56  ;;  %v2136_v61 = vunpack.i.l.bf16 %v2135_v56  ;;  %1644 = vmatmul.mubr.msk.f32.gmra.mrb[6].mxu1 %vm122_vm2, %v1718_v51  ;;  %1684 = vmatmul.mubr.msk.f32.gmra.mrb[6].mxu0 %vm122_vm2, %v1766_v52 }
  0xbe   :  { %1861 = vmatprep.subr.bf16.mxu0 %v1860_v57  ;;  %451 = vmatprep.mubr.f32.mxu1 %v2237_v24  ;;  %v1734_v51 = vunpack.c.h.bf16 %v1787_v31  ;;  %v1774_v52 = vunpack.c.h.bf16 %v1797_v32 }
  0xbf   :  { %v363_v1 = vsel %vm358_vm5, %v2131_v59, %v2111_v43  ;;  %v365_v7 = vsel %vm358_vm5, %v2132_v58, %v2116_v45  ;;  %v1158_v9 = vsel %vm1153_vm6, %v2136_v61, %v2121_v54  ;;  %v1160_v28 = vsel %vm1153_vm6, %v2137_v60, %v2126_v2  ;;  %1246 = vmatprep.mubr.f32.mxu0 %v2237_v24 }
  0xc0   :  { %v1822_v3 = vpack.c.bf16 %v365_v7, %v363_v1  ;;  %v1862_v4 = vpack.c.bf16 %v1160_v28, %v1158_v9  ;;  %v2140_v5 = vpop.permute.xlu0 %2139  ;;  %v2145_v6 = vpop.permute.xlu1 %2144 }
  0xc1   :  { %v2142_v11 = vunpack.i.h.bf16 %v2140_v5  ;;  %v2141_v12 = vunpack.i.l.bf16 %v2140_v5  ;;  %v2147_v13 = vunpack.i.h.bf16 %v2145_v6  ;;  %v2146_v14 = vunpack.i.l.bf16 %v2145_v6  ;;  %v1788_v6 = vld [vmem:[%s2581_s1 + $0x30] sm:$0xff]  }
  0xc2   :  { %1823 = vmatpush1.bf16.msra.mxu1 %v1822_v3  ;;  %1863 = vmatpush1.bf16.msra.mxu0 %v1862_v4 }
  0xc3   :  { %v519_v15 = vsel %vm517_vm7, %v2141_v12, %v2142_v11  ;;  %v521_v16 = vsel %vm517_vm7, %v2146_v14, %v2147_v13 }
  0xc4   :  { %v2150_v17 = vpop.permute.xlu0 %2149  ;;  %v2155_v18 = vpop.permute.xlu1 %2154  ;;  %v1824_v19 = vpack.c.bf16 %v521_v16, %v519_v15  ;;  %v1737_v16 = vunpack.c.l.bf16 %v1788_v6 }
  0xc5   :  { %v2152_v22 = vunpack.i.h.bf16 %v2150_v17  ;;  %v2151_v23 = vunpack.i.l.bf16 %v2150_v17  ;;  %v2157_v29 = vunpack.i.h.bf16 %v2155_v18  ;;  %v2156_v30 = vunpack.i.l.bf16 %v2155_v18  ;;  %1649 = vmatmul.mubr.msk.f32.vlgmr.msra.gmra.mrb[0].mxu1 %vm122_vm2, %v1729_v8  ;;  %1689 = vmatmul.mubr.msk.f32.vlgmr.msra.gmra.mrb[0].mxu0 %vm122_vm2, %v1769_v10  ;;  %v1798_v8 = vld [vmem:[%s2581_s1 + $0x80] sm:$0xff]  }
  0xc6   :  { %1825 = vmatprep.subr.bf16.mxu1 %v1824_v19  ;;  %457 = vmatprep.mubr.f32.mxu1 %v2237_v24  ;;  %v1777_v17 = vunpack.c.l.bf16 %v1798_v8  ;;  %v1738_v18 = vunpack.c.h.bf16 %v1788_v6  ;;  %v1778_v19 = vunpack.c.h.bf16 %v1798_v8 }
  0xc7   :  { %v1314_v33 = vsel %vm1312_vm8, %v2151_v23, %v2152_v22  ;;  %v1316_v34 = vsel %vm1312_vm8, %v2156_v30, %v2157_v29  ;;  %1252 = vmatprep.mubr.f32.mxu0 %v2237_v24 }
  0xc8   :  { %v2160_v35 = vpop.permute.xlu0 %2159  ;;  %v2165_v36 = vpop.permute.xlu1 %2164  ;;  %v1864_v37 = vpack.c.bf16 %v1316_v34, %v1314_v33 }
  0xc9   :  { %v2162_v40 = vunpack.i.h.bf16 %v2160_v35  ;;  %v2161_v41 = vunpack.i.l.bf16 %v2160_v35  ;;  %v2167_v42 = vunpack.i.h.bf16 %v2165_v36  ;;  %v2166_v25 = vunpack.i.l.bf16 %v2165_v36  ;;  %1650 = vmatmul.mubr.msk.f32.gmra.mrb[2].mxu1 %vm122_vm2, %v1730_v20  ;;  %1690 = vmatmul.mubr.msk.f32.gmra.mrb[2].mxu0 %vm122_vm2, %v1770_v21  ;;  %v1789_v20 = vld [vmem:[%s2581_s1 + $0x38] sm:$0xff]   ;;  %v1799_v21 = vld [vmem:[%s2581_s1 + $0x88] sm:$0xff]  }
  0xca   :  { %1865 = vmatprep.subr.bf16.mxu0 %v1864_v37  ;;  %463 = vmatprep.mubr.f32.mxu1 %v2237_v24  ;;  %v1741_v22 = vunpack.c.l.bf16 %v1789_v20  ;;  %v1742_v29 = vunpack.c.h.bf16 %v1789_v20 }
  0xcb   :  { %v518_v43 = vsel %vm517_vm7, %v2161_v41, %v2141_v12  ;;  %v520_v44 = vsel %vm517_vm7, %v2162_v40, %v2146_v14  ;;  %v1313_v45 = vsel %vm1312_vm8, %v2166_v25, %v2151_v23  ;;  %v1315_v46 = vsel %vm1312_vm8, %v2167_v42, %v2156_v30  ;;  %1258 = vmatprep.mubr.f32.mxu0 %v2237_v24 }
  0xcc   :  { %v1826_v47 = vpack.c.bf16 %v520_v44, %v518_v43  ;;  %v1866_v48 = vpack.c.bf16 %v1315_v46, %v1313_v45  ;;  %v2170_v49 = vpop.permute.xlu0 %2169  ;;  %v2175_v50 = vpop.permute.xlu1 %2174  ;;  %v1781_v23 = vunpack.c.l.bf16 %v1799_v21  ;;  %v1782_v30 = vunpack.c.h.bf16 %v1799_v21 }
  0xcd   :  { %v2172_v53 = vunpack.i.h.bf16 %v2170_v49  ;;  %v2171_v54 = vunpack.i.l.bf16 %v2170_v49  ;;  %v2177_v0 = vunpack.i.h.bf16 %v2175_v50  ;;  %v2176_v2 = vunpack.i.l.bf16 %v2175_v50  ;;  %1651 = vmatmul.mubr.msk.f32.gmra.mrb[4].mxu1 %vm122_vm2, %v1733_v38  ;;  %1691 = vmatmul.mubr.msk.f32.gmra.mrb[4].mxu0 %vm122_vm2, %v1773_v39 }
  0xce   :  { %1827 = vmatpush1.bf16.msra.mxu1 %v1826_v47  ;;  %1867 = vmatpush1.bf16.msra.mxu0 %v1866_v48 }
  0xcf   :  { %v523_v26 = vsel %vm517_vm7, %v2171_v54, %v2172_v53  ;;  %v525_v27 = vsel %vm517_vm7, %v2176_v2, %v2177_v0  ;;  %469 = vmatprep.mubr.f32.mxu1 %v2237_v24  ;;  %1264 = vmatprep.mubr.f32.mxu0 %v2237_v24 }
  0xd0   :  { %v2180_v55 = vpop.permute.xlu0 %2179  ;;  %v2185_v56 = vpop.permute.xlu1 %2184  ;;  %v1828_v57 = vpack.c.bf16 %v525_v27, %v523_v26 }
  0xd1   :  { %v2182_v58 = vunpack.i.h.bf16 %v2180_v55  ;;  %v2181_v59 = vunpack.i.l.bf16 %v2180_v55  ;;  %v2187_v60 = vunpack.i.h.bf16 %v2185_v56  ;;  %v2186_v61 = vunpack.i.l.bf16 %v2185_v56  ;;  %1652 = vmatmul.mubr.msk.f32.gmra.mrb[6].mxu1 %vm122_vm2, %v1734_v51  ;;  %1692 = vmatmul.mubr.msk.f32.gmra.mrb[6].mxu0 %vm122_vm2, %v1774_v52 }
  0xd2   :  { %1829 = vmatprep.subr.bf16.mxu1 %v1828_v57  ;;  %610 = vmatprep.mubr.f32.mxu1 %v2237_v24 }
  0xd3   :  { %v1318_v62 = vsel %vm1312_vm8, %v2181_v59, %v2182_v58  ;;  %v1320_v63 = vsel %vm1312_vm8, %v2186_v61, %v2187_v60  ;;  %1405 = vmatprep.mubr.f32.mxu0 %v2237_v24 }
  0xd4   :  { %v2190_v1 = vpop.permute.xlu0 %2189  ;;  %v2195_v7 = vpop.permute.xlu1 %2194  ;;  %v1868_v9 = vpack.c.bf16 %v1320_v63, %v1318_v62 }
  0xd5   :  { %v2192_v28 = vunpack.i.h.bf16 %v2190_v1  ;;  %v2191_v3 = vunpack.i.l.bf16 %v2190_v1  ;;  %v2197_v4 = vunpack.i.h.bf16 %v2195_v7  ;;  %v2196_v5 = vunpack.i.l.bf16 %v2195_v7 }
  0xd6   :  { %1869 = vmatprep.subr.bf16.mxu0 %v1868_v9 }
  0xd7   :  { %v522_v10 = vsel %vm517_vm7, %v2191_v3, %v2171_v54  ;;  %v524_v11 = vsel %vm517_vm7, %v2192_v28, %v2176_v2  ;;  %v1317_v12 = vsel %vm1312_vm8, %v2196_v5, %v2181_v59  ;;  %v1319_v13 = vsel %vm1312_vm8, %v2197_v4, %v2186_v61 }
  0xd8   :  { %v1830_v14 = vpack.c.bf16 %v524_v11, %v522_v10  ;;  %v1870_v15 = vpack.c.bf16 %v1319_v13, %v1317_v12 }
  0xda   :  { %1831 = vmatpush1.bf16.msra.mxu1 %v1830_v14  ;;  %1871 = vmatpush1.bf16.msra.mxu0 %v1870_v15 }
  0xdd   :  { %1657 = vmatmul.mubr.msk.f32.vlgmr.msra.gmra.mrb[0].mxu1 %vm122_vm2, %v1737_v16  ;;  %1697 = vmatmul.mubr.msk.f32.vlgmr.msra.gmra.mrb[0].mxu0 %vm122_vm2, %v1777_v17 }
  0xde   :  { %616 = vmatprep.mubr.f32.mxu1 %v2237_v24  ;;  %1411 = vmatprep.mubr.f32.mxu0 %v2237_v24 }
  0xe1   :  { %1658 = vmatmul.mubr.msk.f32.gmra.mrb[2].mxu1 %vm122_vm2, %v1738_v18  ;;  %1698 = vmatmul.mubr.msk.f32.gmra.mrb[2].mxu0 %vm122_vm2, %v1778_v19 }
  0xe2   :  { %622 = vmatprep.mubr.f32.mxu1 %v2237_v24  ;;  %1417 = vmatprep.mubr.f32.mxu0 %v2237_v24 }
  0xe5   :  { %1659 = vmatmul.mubr.msk.f32.gmra.mrb[4].mxu1 %vm122_vm2, %v1741_v22  ;;  %1699 = vmatmul.mubr.msk.f32.gmra.mrb[4].mxu0 %vm122_vm2, %v1781_v23  ;;  %v1445_v31 = vpop.permute.xlu0 %1444  ;;  %v1450_v38 = vpop.permute.xlu1 %1449 }
  0xe6   :  { %628 = vmatprep.mubr.f32.mxu1 %v2237_v24  ;;  %1423 = vmatprep.mubr.f32.mxu0 %v2237_v24 }
  0xe9   :  { %1660 = vmatmul.mubr.msk.f32.gmra.mrb[6].mxu1 %vm122_vm2, %v1742_v29  ;;  %1700 = vmatmul.mubr.msk.f32.gmra.mrb[6].mxu0 %vm122_vm2, %v1782_v30  ;;  %v1455_v2 = vpop.permute.xlu1 %1454  ;;  %v1460_v63 = vpop.permute.xlu0 %1459 }
  0xea   :  { %1612 = vmatprep.mubr.f32.mxu1 %v2237_v24 }
 0x1b0   :  { %v612_v32 = vpop.f32.mrb[0].mxu1  ;;  %v1407_v33 = vpop.f32.mrb[0].mxu0 }
 0x1b1   :  { %v1880_v34 = vadd.f32 %v1407_v33, %v612_v32  ;;  %v614_v35 = vpop.f32.mrb[1].mxu1  ;;  %v1409_v36 = vpop.f32.mrb[1].mxu0 }
 0x1b2   :  { %v1881_v37 = vadd.f32 %v1409_v36, %v614_v35 }
 0x1b3   :  { %v2549_v39 = vadd.f32 %v1880_v34, %v1445_v31 }
 0x1b4   :  { %v2551_v40 = vadd.f32 %v1881_v37, %v1445_v31  ;;  %v618_v41 = vpop.f32.mrb[2].mxu1  ;;  %v1413_v42 = vpop.f32.mrb[2].mxu0 }
 0x1b5   :  { %v1701_v25 = vmul.f32 -1.442695, %v2549_v39  ;;  %v1882_v43 = vadd.f32 %v1413_v42, %v618_v41  ;;  %v620_v44 = vpop.f32.mrb[3].mxu1  ;;  %v1415_v45 = vpop.f32.mrb[3].mxu0 }
 0x1b6   :  { %v1702_v46 = vmul.f32 -1.442695, %v2551_v40  ;;  %v1883_v47 = vadd.f32 %v1415_v45, %v620_v44 }
 0x1b7   :  { %2204 = vpow2.f32 %v1701_v25  ;;  %v1464_v48 = vadd.f32 %v1882_v43, %v1450_v38 }
 0x1b8   :  { %2206 = vpow2.f32 %v1702_v46  ;;  %v1465_v49 = vadd.f32 %v1883_v47, %v1450_v38  ;;  %v624_v50 = vpop.f32.mrb[4].mxu1  ;;  %v1419_v51 = vpop.f32.mrb[4].mxu0 }
 0x1b9   :  { %v1703_v52 = vmul.f32 -1.442695, %v1464_v48  ;;  %v1884_v53 = vadd.f32 %v1419_v51, %v624_v50  ;;  %v626_v54 = vpop.f32.mrb[5].mxu1  ;;  %v1421_v0 = vpop.f32.mrb[5].mxu0 }
 0x1ba   :  { %v1704_v26 = vmul.f32 -1.442695, %v1465_v49  ;;  %v1885_v27 = vadd.f32 %v1421_v0, %v626_v54  ;;  %v1535_v51 = vpop.permute.xlu1 %1534 }
 0x1bb   :  { %2208 = vpow2.f32 %v1703_v52  ;;  %v1466_v55 = vadd.f32 %v1884_v53, %v1455_v2 }
 0x1bc   :  { %2210 = vpow2.f32 %v1704_v26  ;;  %v1467_v56 = vadd.f32 %v1885_v27, %v1455_v2  ;;  %v630_v57 = vpop.f32.mrb[6].mxu1  ;;  %v1425_v58 = vpop.f32.mrb[6].mxu0 }
 0x1bd   :  { %v1705_v59 = vmul.f32 -1.442695, %v1466_v55  ;;  %v1886_v60 = vadd.f32 %v1425_v58, %v630_v57  ;;  %v632_v61 = vpop.f32.mrb[7].mxu1  ;;  %v1427_v62 = vpop.f32.mrb[7].mxu0 }
 0x1be   :  { %v1706_v1 = vmul.f32 -1.442695, %v1467_v56  ;;  %v1887_v7 = vadd.f32 %v1427_v62, %v632_v61  ;;  %v1540_v2 = vpop.permute.xlu0 %1539 }
 0x1bf   :  { %2212 = vpow2.f32 %v1705_v59  ;;  %v1468_v9 = vadd.f32 %v1886_v60, %v1460_v63 }
 0x1c0   :  { %2214 = vpow2.f32 %v1706_v1  ;;  %v1469_v28 = vadd.f32 %v1887_v7, %v1460_v63 }
 0x1c1   :  { %v2205_v3 = vpop.eup %2204  ;;  %v1707_v4 = vmul.f32 -1.442695, %v1468_v9 }
 0x1c2   :  { %v2207_v5 = vpop.eup %2206  ;;  %v1494_v6 = vadd.f32 1.0, %v2205_v3  ;;  %v1708_v8 = vmul.f32 -1.442695, %v1469_v28 }
 0x1c3   :  { %v1495_v10 = vadd.f32 1.0, %v2207_v5  ;;  %2216 = vpow2.f32 %v1707_v4 }
 0x1c4   :  { %2218 = vrcp.f32 %v1494_v6 }
 0x1c5   :  { %v2209_v11 = vpop.eup %2208  ;;  %2220 = vpow2.f32 %v1708_v8 }
 0x1c6   :  { %v2211_v12 = vpop.eup %2210  ;;  %v1496_v13 = vadd.f32 1.0, %v2209_v11  ;;  %2222 = vrcp.f32 %v1495_v10 }
 0x1c7   :  { %v1497_v14 = vadd.f32 1.0, %v2211_v12 }
 0x1c8   :  { %2224 = vrcp.f32 %v1496_v13 }
 0x1c9   :  { %v2213_v15 = vpop.eup %2212  ;;  %2226 = vrcp.f32 %v1497_v14 }
 0x1ca   :  { %v2215_v16 = vpop.eup %2214  ;;  %v1498_v17 = vadd.f32 1.0, %v2213_v15 }
 0x1cb   :  { %v1499_v19 = vadd.f32 1.0, %v2215_v16 }
 0x1cc   :  { %2228 = vrcp.f32 %v1498_v17 }
 0x1cd   :  { %v2217_v18 = vpop.eup %2216 }
 0x1ce   :  { %v1500_v20 = vadd.f32 1.0, %v2217_v18  ;;  %v2219_v21 = vpop.eup %2218 }
 0x1cf   :  { %v2221_v22 = vpop.eup %2220  ;;  %v1518_v32 = vmul.f32 %v2219_v21, %v2549_v39  ;;  %v1526_v39 = vld [vmem:[%s2582_s3] sm:$0xf] }
 0x1d0   :  { %2230 = vrcp.f32 %v1500_v20  ;;  %v2223_v23 = vpop.eup %2222  ;;  %v1501_v29 = vadd.f32 1.0, %v2221_v22 }
 0x1d1   :  { %2232 = vrcp.f32 %v1499_v19  ;;  %v1519_v34 = vmul.f32 %v2223_v23, %v2551_v40  ;;  %v1528_v40 = vunpack.c.l.bf16 %v1526_v39 }
 0x1d2   :  { %v2225_v30 = vpop.eup %2224  ;;  %2234 = vrcp.f32 %v1501_v29 }
 0x1d3   :  { %v2227_v31 = vpop.eup %2226  ;;  %v1520_v33 = vmul.f32 %v2225_v30, %v1464_v48 }
 0x1d4   :  { %v1521_v35 = vmul.f32 %v2227_v31, %v1465_v49  ;;  %v1527_v49 = vld [vmem:[%s2582_s3 + $0x4] sm:$0x3] }
 0x1d5   :  { %v1874_v36 = vpack.c.bf16 %v1520_v33, %v1518_v32  ;;  %v1529_v50 = vunpack.c.l.bf16 %v1527_v49 }
 0x1d6   :  { %v1872_v37 = vpack.c.bf16 %v1521_v35, %v1519_v34  ;;  %v2229_v38 = vpop.eup %2228 }
 0x1d7   :  { %v1522_v25 = vmul.f32 %v2229_v38, %v1466_v55 }
 0x1d8   :  { %1873 = vmatprep.subr.bf16.mxu1 %v1872_v37 }
 0x1d9   :  { %1875 = vmatpush1.bf16.msra.mxu1 %v1874_v36 }
 0x1da   :  { %v2231_v41 = vpop.eup %2230 }
 0x1db   :  { %v2233_v42 = vpop.eup %2232  ;;  %v1524_v43 = vmul.f32 %v2231_v41, %v1468_v9 }
 0x1dc   :  { %v2235_v44 = vpop.eup %2234  ;;  %v1523_v46 = vmul.f32 %v2233_v42, %v1467_v56 }
 0x1dd   :  { %v1878_v45 = vpack.c.bf16 %v1524_v43, %v1522_v25  ;;  %v1525_v47 = vmul.f32 %v2235_v44, %v1469_v28 }
 0x1df   :  { %v1876_v48 = vpack.c.bf16 %v1525_v47, %v1523_v46 }
 0x1e1   :  { %1877 = vmatprep.subr.bf16.mxu1 %v1876_v48 }
 0x1e2   :  { %1879 = vmatpush1.bf16.msra.mxu1 %v1878_v45 }
 0x1e5   :  { %1709 = vmatmul.mubr.msk.f32.vlgmr.msra.gmra.mrb[8].mxu1 %vm122_vm2, %v1528_v40 }
 0x1e6   :  { %1618 = vmatprep.mubr.f32.mxu1 %v2237_v24 }
 0x1e9   :  { %1710 = vmatmul.mubr.msk.f32.gmra.mrb[10].mxu1 %vm122_vm2, %v1529_v50 }
 0x2b8   :  { %v1614_v52 = vpop.f32.mrb[8].mxu1 }
 0x2b9   :  { %v1615_v53 = vadd.f32 %v1614_v52, %v1535_v51  ;;  %v1616_v54 = vpop.f32.mrb[9].mxu1 }
 0x2ba   :  { %v1617_v0 = vadd.f32 %v1616_v54, %v1535_v51 }
 0x2bb   :  { %1625 = vst [vmem:[%s2583_s5] sm:$0xff] %v1615_v53 }
 0x2bc   :  { %1626 = vst [vmem:[%s2583_s5 + $0x8] sm:$0xff] %v1617_v0  ;;  %v1620_v26 = vpop.f32.mrb[10].mxu1 }
 0x2bd   :  { %v1621_v27 = vadd.f32 %v1620_v26, %v1540_v2  ;;  %v1622_v55 = vpop.f32.mrb[11].mxu1 }
 0x2be   :  { %v1623_v24 = vadd.f32 %v1622_v55, %v1540_v2 }
 0x2bf   :  { %1627 = vst [vmem:[%s2583_s5 + $0x10] sm:$0xf] %v1621_v27 }
 0x2c0   :  { %1628 = vst [vmem:[%s2583_s5 + $0x18] sm:$0xf] %v1623_v24 }

</bundles_post_ra>
